<compile_context>
chip_gen: v7x
topology: tpu7x:2x2x1
jax: 0.10.0
libtpu: 0.0.40
codegen_flags: <defaults>
</compile_context>

<pallas_src>
import functools
import math

import jax
import jax.numpy as jnp
from jax import lax
from jax.experimental import pallas as pl
from jax.experimental.pallas import tpu as pltpu


def _round_up(x, m):
    return ((x + m - 1) // m) * m


def _downsample_kernel(x_ref, w_ref, b_ref, o_ref, *, eps):
    # x_ref: (4, TM, C)  patch-position-major input rows (input dtype)
    # w_ref: (4, C, Np)  folded conv weights (gamma absorbed), bf16
    # b_ref: (1, Np)     folded bias (beta and conv bias absorbed), f32
    # o_ref: (TM, Np)    output tile
    c = x_ref.shape[-1]
    inv_c = 1.0 / float(c)

    y = b_ref[...]                                    # (1, Np), broadcasts below
    for p in range(4):                                # static unroll: 4 patch positions
        xp = x_ref[p].astype(jnp.float32)             # (TM, C)
        mean = jnp.sum(xp, axis=-1, keepdims=True) * inv_c
        xc = xp - mean
        # two-pass variance (matches torch's (x-u).pow(2).mean(); no cancellation)
        var = jnp.sum(xc * xc, axis=-1, keepdims=True) * inv_c
        xn = (xc * lax.rsqrt(var + eps)).astype(jnp.bfloat16)
        y = y + jnp.dot(xn, w_ref[p], preferred_element_type=jnp.float32)

    # exact GELU (erf formulation == nn.GELU() default)
    o = 0.5 * y * (1.0 + lax.erf(y * (1.0 / math.sqrt(2.0))))
    o_ref[...] = o.astype(o_ref.dtype)


def _est_vmem_bytes(tm, c, npad, in_item, out_item, w_bufs):
    in_b = 2 * 4 * tm * c * in_item               # double-buffered input tile
    out_b = 2 * tm * npad * out_item              # double-buffered output tile
    wts = w_bufs * (4 * c * npad * 2 + npad * 4)  # resident folded weights + bias
    live = 3 * tm * c * 4 + tm * npad * 4         # f32 temporaries + accumulator
    return in_b + out_b + wts + live


def _vmem_budget_and_limit():
    cap = None
    try:
        cap = int(getattr(pltpu.get_tpu_info(), "vmem_capacity_bytes", 0)) or None
    except Exception:
        cap = None
    if cap is None:
        cap = 64 * 1024 * 1024                    # conservative: v7x per-TC VMEM
    limit = min((cap * 3) // 4, 100 * 1024 * 1024)
    budget = (limit * 3) // 4
    return budget, limit


def _choose_tm(m, c, npad, in_item, out_item, budget):
    tm = 2048
    while tm > 128 and _est_vmem_bytes(tm, c, npad, in_item, out_item, 2) > budget:
        tm //= 2
    m8 = _round_up(max(m, 8), 8)
    if m8 <= tm:
        return m8                                 # whole problem fits in one step
    # keep >= 4 grid steps when there is enough work (2 v7x TCs x 2-deep pipeline)
    while tm > 256 and -(-m // tm) < 4:
        tm //= 2
    return tm


def downsample_layer(x, gamma, beta, conv_w, conv_b, *, eps=1e-6):
    """x: (B, C_in, H, W) NCHW.  Returns (B, C_out, H//2, W//2) NCHW."""
    B, C, H, W = x.shape
    Cout = conv_w.shape[0]
    assert H % 2 == 0 and W % 2 == 0
    Ho, Wo = H // 2, W // 2
    M = B * Ho * Wo
    Np = _round_up(Cout, 128)                     # lane-dense output width

    # Patch extraction, position-major: (B,C,H,W) -> (4, M, C), p = kh*2 + kw.
    xp = x.reshape(B, C, Ho, 2, Wo, 2)
    xp = jnp.transpose(xp, (3, 5, 0, 2, 4, 1)).reshape(4, M, C)

    # Conv weight (Cout,C,2,2) -> (p, C, Cout); fold the LN affine into W / b.
    w4 = jnp.transpose(conv_w.astype(jnp.float32), (2, 3, 1, 0)).reshape(4, C, Cout)
    w_fold = w4 * gamma.astype(jnp.float32)[None, :, None]           # diag(gamma) @ W_p
    b_fold = jnp.sum(beta.astype(jnp.float32)[None, :, None] * w4, axis=(0, 1))
    b_fold = b_fold + conv_b.astype(jnp.float32)                      # sum_p beta @ W_p + b

    w_p = jnp.zeros((4, C, Np), jnp.float32).at[..., :Cout].set(w_fold).astype(jnp.bfloat16)
    b_p = jnp.zeros((1, Np), jnp.float32).at[0, :Cout].set(b_fold)

    out_dtype = x.dtype                    # bf16 nets keep bf16 I/O (halves HBM traffic)
    out_item = jnp.dtype(out_dtype).itemsize
    budget, vmem_limit = _vmem_budget_and_limit()
    TM = _choose_tm(M, C, Np, jnp.dtype(x.dtype).itemsize, out_item, budget)
    Mp = _round_up(M, TM)
    if Mp != M:
        xp = jnp.zeros((4, Mp, C), xp.dtype).at[:, :M].set(xp)
    grid = (Mp // TM,)

    cost = pl.CostEstimate(
        flops=2 * M * 4 * C * Np + 10 * M * 4 * C,
        transcendentals=M * Np + 4 * M,
        bytes_accessed=int(4 * Mp * C * jnp.dtype(x.dtype).itemsize
                           + 4 * C * Np * 2 + Np * 4 + Mp * Np * out_item),
    )

    def build(single_buffer_consts):
        if single_buffer_consts:
            w_spec = pl.BlockSpec((4, C, Np), lambda i: (0, 0, 0),
                                  pipeline_mode=pl.Buffered(1))
            b_spec = pl.BlockSpec((1, Np), lambda i: (0, 0),
                                  pipeline_mode=pl.Buffered(1))
        else:
            w_spec = pl.BlockSpec((4, C, Np), lambda i: (0, 0, 0))
            b_spec = pl.BlockSpec((1, Np), lambda i: (0, 0))
        return pl.pallas_call(
            functools.partial(_downsample_kernel, eps=eps),
            out_shape=jax.ShapeDtypeStruct((Mp, Np), out_dtype),
            grid_spec=pltpu.PrefetchScalarGridSpec(
                num_scalar_prefetch=0,
                grid=grid,
                in_specs=[
                    pl.BlockSpec((4, TM, C), lambda i: (0, i, 0)),  # patch rows (tiled)
                    w_spec,                                          # folded conv weights
                    b_spec,                                          # folded bias
                ],
                out_specs=pl.BlockSpec((TM, Np), lambda i: (i, 0)),
            ),
            compiler_params=pltpu.CompilerParams(
                dimension_semantics=("parallel",),
                vmem_limit_bytes=int(vmem_limit)),
            cost_estimate=cost,
        )

    try:
        out = build(True)(xp, w_p, b_p)
    except Exception:
        # Older jax may reject pl.Buffered(1) for grid-invariant operands;
        # fall back to the default double-buffered specs (correctness identical).
        out = build(False)(xp, w_p, b_p)

    out = out[:M, :Cout].reshape(B, Ho, Wo, Cout)
    # TODO(synk): return NHWC / patch layout directly if the consumer can absorb it.
    return jnp.transpose(out, (0, 3, 1, 2))                          # back to NCHW


def _reference(x, gamma, beta, conv_w, conv_b, eps=1e-6):
    # Pure-JAX f32 reference of the PyTorch module.
    u = jnp.mean(x, axis=1, keepdims=True)
    s = jnp.mean((x - u) ** 2, axis=1, keepdims=True)
    xn = (x - u) / jnp.sqrt(s + eps)
    xn = gamma[None, :, None, None] * xn + beta[None, :, None, None]
    y = lax.conv_general_dilated(
        xn, conv_w, window_strides=(2, 2), padding="VALID",
        dimension_numbers=("NCHW", "OIHW", "NCHW"))
    y = y + conv_b[None, :, None, None]
    return 0.5 * y * (1.0 + lax.erf(y / jnp.sqrt(2.0)))


if __name__ == "__main__":
    key = jax.random.PRNGKey(0)
    B, Cin, Cout, H, W = 2, 4, 8, 16, 16

    kx, kw, kb, kg, kbt = jax.random.split(key, 5)
    x = jax.random.normal(kx, (B, Cin, H, W), dtype=jnp.float32)

    # Non-trivial LN affine so the weight-folding path is actually exercised.
    gamma = 1.0 + 0.1 * jax.random.normal(kg, (Cin,), dtype=jnp.float32)
    beta = 0.1 * jax.random.normal(kbt, (Cin,), dtype=jnp.float32)
    fan_in = Cin * 2 * 2
    conv_w = jax.random.normal(kw, (Cout, Cin, 2, 2), dtype=jnp.float32) / math.sqrt(fan_in)
    conv_b = 0.1 * jax.random.normal(kb, (Cout,), dtype=jnp.float32)

    out = jax.block_until_ready(downsample_layer(x, gamma, beta, conv_w, conv_b))
    ref = jax.block_until_ready(_reference(x, gamma, beta, conv_w, conv_b))

    assert out.shape == (B, Cout, H // 2, W // 2), out.shape
    # The conv matmul runs in bf16 on the MXU (stats/LN stay f32), so compare
    # against the f32 reference with a correspondingly relaxed tolerance.
    err = float(jnp.max(jnp.abs(out - ref)))
    assert err < 3e-2, err
    print("KERNEL_OK")
</pallas_src>

<mosaic_0001>
module attributes {stable_mosaic.version = 11 : i64} {
  func.func @_downsample_kernel(%arg0: i32, %arg1: memref<4x128x4xf32, #tpu.memory_space<vmem>>, %arg2: memref<4x4x128xbf16, #tpu.memory_space<vmem>>, %arg3: memref<1x128xf32, #tpu.memory_space<vmem>>, %arg4: memref<128x128xf32, #tpu.memory_space<vmem>>) attributes {dimension_semantics = [#tpu.dimension_semantics<parallel>], iteration_bounds = array<i64: 1>, scalar_prefetch = 0 : i64, scratch_operands = 0 : i64, tpu.core_type = #tpu.core_type<tc>, window_params = [{transform_indices = @transform_0, window_bounds = array<i64: 4, 128, 4>}, {pipeline_mode = #tpu.pipeline_mode<synchronous>, transform_indices = @transform_1, window_bounds = array<i64: 4, 4, 128>}, {pipeline_mode = #tpu.pipeline_mode<synchronous>, transform_indices = @transform_2, window_bounds = array<i64: 1, 128>}, {transform_indices = @transform_3, window_bounds = array<i64: 128, 128>}]} {
    %c0 = arith.constant 0 : index
    %c0_0 = arith.constant 0 : index
    %0 = vector.load %arg3[%c0, %c0_0] : memref<1x128xf32, #tpu.memory_space<vmem>>, vector<1x128xf32>
    %c0_1 = arith.constant 0 : index
    %c0_2 = arith.constant 0 : index
    %c0_3 = arith.constant 0 : index
    %1 = vector.load %arg1[%c0_1, %c0_2, %c0_3] : memref<4x128x4xf32, #tpu.memory_space<vmem>>, vector<1x128x4xf32>
    %2 = vector.shape_cast %1 : vector<1x128x4xf32> to vector<128x4xf32>
    %cst = arith.constant dense<0.000000e+00> : vector<128xf32>
    %3 = vector.multi_reduction <add>, %2, %cst [1] : vector<128x4xf32> to vector<128xf32>
    %4 = vector.shape_cast %3 : vector<128xf32> to vector<128x1xf32>
    %cst_4 = arith.constant 2.500000e-01 : f32
    %5 = vector.broadcast %cst_4 : f32 to vector<128x1xf32>
    %6 = arith.mulf %4, %5 : vector<128x1xf32>
    %7 = vector.broadcast %6 : vector<128x1xf32> to vector<128x4xf32>
    %8 = arith.subf %2, %7 : vector<128x4xf32>
    %9 = arith.mulf %8, %8 : vector<128x4xf32>
    %cst_5 = arith.constant dense<0.000000e+00> : vector<128xf32>
    %10 = vector.multi_reduction <add>, %9, %cst_5 [1] : vector<128x4xf32> to vector<128xf32>
    %11 = vector.shape_cast %10 : vector<128xf32> to vector<128x1xf32>
    %cst_6 = arith.constant 2.500000e-01 : f32
    %12 = vector.broadcast %cst_6 : f32 to vector<128x1xf32>
    %13 = arith.mulf %11, %12 : vector<128x1xf32>
    %cst_7 = arith.constant 9.99999997E-7 : f32
    %14 = vector.broadcast %cst_7 : f32 to vector<128x1xf32>
    %15 = arith.addf %13, %14 : vector<128x1xf32>
    %16 = math.rsqrt %15 : vector<128x1xf32>
    %17 = vector.broadcast %16 : vector<128x1xf32> to vector<128x4xf32>
    %18 = arith.mulf %8, %17 : vector<128x4xf32>
    %19 = arith.truncf %18 : vector<128x4xf32> to vector<128x4xbf16>
    %c0_8 = arith.constant 0 : index
    %c0_9 = arith.constant 0 : index
    %c0_10 = arith.constant 0 : index
    %20 = vector.load %arg2[%c0_8, %c0_9, %c0_10] : memref<4x4x128xbf16, #tpu.memory_space<vmem>>, vector<1x4x128xbf16>
    %21 = vector.shape_cast %20 : vector<1x4x128xbf16> to vector<4x128xbf16>
    %cst_11 = arith.constant dense<0.000000e+00> : vector<128x128xf32>
    %22 = tpu.matmul %19, %21, %cst_11 {dimension_numbers = #tpu.dot_dimension_numbers<[1], [0], [0], [1], [0, 0, 1, 1], [], []>} : vector<128x4xbf16>, vector<4x128xbf16>, vector<128x128xf32> -> vector<128x128xf32>
    %23 = vector.broadcast %0 : vector<1x128xf32> to vector<128x128xf32>
    %24 = arith.addf %23, %22 : vector<128x128xf32>
    %c1 = arith.constant 1 : index
    %c0_12 = arith.constant 0 : index
    %c0_13 = arith.constant 0 : index
    %25 = vector.load %arg1[%c1, %c0_12, %c0_13] : memref<4x128x4xf32, #tpu.memory_space<vmem>>, vector<1x128x4xf32>
    %26 = vector.shape_cast %25 : vector<1x128x4xf32> to vector<128x4xf32>
    %cst_14 = arith.constant dense<0.000000e+00> : vector<128xf32>
    %27 = vector.multi_reduction <add>, %26, %cst_14 [1] : vector<128x4xf32> to vector<128xf32>
    %28 = vector.shape_cast %27 : vector<128xf32> to vector<128x1xf32>
    %cst_15 = arith.constant 2.500000e-01 : f32
    %29 = vector.broadcast %cst_15 : f32 to vector<128x1xf32>
    %30 = arith.mulf %28, %29 : vector<128x1xf32>
    %31 = vector.broadcast %30 : vector<128x1xf32> to vector<128x4xf32>
    %32 = arith.subf %26, %31 : vector<128x4xf32>
    %33 = arith.mulf %32, %32 : vector<128x4xf32>
    %cst_16 = arith.constant dense<0.000000e+00> : vector<128xf32>
    %34 = vector.multi_reduction <add>, %33, %cst_16 [1] : vector<128x4xf32> to vector<128xf32>
    %35 = vector.shape_cast %34 : vector<128xf32> to vector<128x1xf32>
    %cst_17 = arith.constant 2.500000e-01 : f32
    %36 = vector.broadcast %cst_17 : f32 to vector<128x1xf32>
    %37 = arith.mulf %35, %36 : vector<128x1xf32>
    %cst_18 = arith.constant 9.99999997E-7 : f32
    %38 = vector.broadcast %cst_18 : f32 to vector<128x1xf32>
    %39 = arith.addf %37, %38 : vector<128x1xf32>
    %40 = math.rsqrt %39 : vector<128x1xf32>
    %41 = vector.broadcast %40 : vector<128x1xf32> to vector<128x4xf32>
    %42 = arith.mulf %32, %41 : vector<128x4xf32>
    %43 = arith.truncf %42 : vector<128x4xf32> to vector<128x4xbf16>
    %c1_19 = arith.constant 1 : index
    %c0_20 = arith.constant 0 : index
    %c0_21 = arith.constant 0 : index
    %44 = vector.load %arg2[%c1_19, %c0_20, %c0_21] : memref<4x4x128xbf16, #tpu.memory_space<vmem>>, vector<1x4x128xbf16>
    %45 = vector.shape_cast %44 : vector<1x4x128xbf16> to vector<4x128xbf16>
    %cst_22 = arith.constant dense<0.000000e+00> : vector<128x128xf32>
    %46 = tpu.matmul %43, %45, %cst_22 {dimension_numbers = #tpu.dot_dimension_numbers<[1], [0], [0], [1], [0, 0, 1, 1], [], []>} : vector<128x4xbf16>, vector<4x128xbf16>, vector<128x128xf32> -> vector<128x128xf32>
    %47 = arith.addf %24, %46 : vector<128x128xf32>
    %c2 = arith.constant 2 : index
    %c0_23 = arith.constant 0 : index
    %c0_24 = arith.constant 0 : index
    %48 = vector.load %arg1[%c2, %c0_23, %c0_24] : memref<4x128x4xf32, #tpu.memory_space<vmem>>, vector<1x128x4xf32>
    %49 = vector.shape_cast %48 : vector<1x128x4xf32> to vector<128x4xf32>
    %cst_25 = arith.constant dense<0.000000e+00> : vector<128xf32>
    %50 = vector.multi_reduction <add>, %49, %cst_25 [1] : vector<128x4xf32> to vector<128xf32>
    %51 = vector.shape_cast %50 : vector<128xf32> to vector<128x1xf32>
    %cst_26 = arith.constant 2.500000e-01 : f32
    %52 = vector.broadcast %cst_26 : f32 to vector<128x1xf32>
    %53 = arith.mulf %51, %52 : vector<128x1xf32>
    %54 = vector.broadcast %53 : vector<128x1xf32> to vector<128x4xf32>
    %55 = arith.subf %49, %54 : vector<128x4xf32>
    %56 = arith.mulf %55, %55 : vector<128x4xf32>
    %cst_27 = arith.constant dense<0.000000e+00> : vector<128xf32>
    %57 = vector.multi_reduction <add>, %56, %cst_27 [1] : vector<128x4xf32> to vector<128xf32>
    %58 = vector.shape_cast %57 : vector<128xf32> to vector<128x1xf32>
    %cst_28 = arith.constant 2.500000e-01 : f32
    %59 = vector.broadcast %cst_28 : f32 to vector<128x1xf32>
    %60 = arith.mulf %58, %59 : vector<128x1xf32>
    %cst_29 = arith.constant 9.99999997E-7 : f32
    %61 = vector.broadcast %cst_29 : f32 to vector<128x1xf32>
    %62 = arith.addf %60, %61 : vector<128x1xf32>
    %63 = math.rsqrt %62 : vector<128x1xf32>
    %64 = vector.broadcast %63 : vector<128x1xf32> to vector<128x4xf32>
    %65 = arith.mulf %55, %64 : vector<128x4xf32>
    %66 = arith.truncf %65 : vector<128x4xf32> to vector<128x4xbf16>
    %c2_30 = arith.constant 2 : index
    %c0_31 = arith.constant 0 : index
    %c0_32 = arith.constant 0 : index
    %67 = vector.load %arg2[%c2_30, %c0_31, %c0_32] : memref<4x4x128xbf16, #tpu.memory_space<vmem>>, vector<1x4x128xbf16>
    %68 = vector.shape_cast %67 : vector<1x4x128xbf16> to vector<4x128xbf16>
    %cst_33 = arith.constant dense<0.000000e+00> : vector<128x128xf32>
    %69 = tpu.matmul %66, %68, %cst_33 {dimension_numbers = #tpu.dot_dimension_numbers<[1], [0], [0], [1], [0, 0, 1, 1], [], []>} : vector<128x4xbf16>, vector<4x128xbf16>, vector<128x128xf32> -> vector<128x128xf32>
    %70 = arith.addf %47, %69 : vector<128x128xf32>
    %c3 = arith.constant 3 : index
    %c0_34 = arith.constant 0 : index
    %c0_35 = arith.constant 0 : index
    %71 = vector.load %arg1[%c3, %c0_34, %c0_35] : memref<4x128x4xf32, #tpu.memory_space<vmem>>, vector<1x128x4xf32>
    %72 = vector.shape_cast %71 : vector<1x128x4xf32> to vector<128x4xf32>
    %cst_36 = arith.constant dense<0.000000e+00> : vector<128xf32>
    %73 = vector.multi_reduction <add>, %72, %cst_36 [1] : vector<128x4xf32> to vector<128xf32>
    %74 = vector.shape_cast %73 : vector<128xf32> to vector<128x1xf32>
    %cst_37 = arith.constant 2.500000e-01 : f32
    %75 = vector.broadcast %cst_37 : f32 to vector<128x1xf32>
    %76 = arith.mulf %74, %75 : vector<128x1xf32>
    %77 = vector.broadcast %76 : vector<128x1xf32> to vector<128x4xf32>
    %78 = arith.subf %72, %77 : vector<128x4xf32>
    %79 = arith.mulf %78, %78 : vector<128x4xf32>
    %cst_38 = arith.constant dense<0.000000e+00> : vector<128xf32>
    %80 = vector.multi_reduction <add>, %79, %cst_38 [1] : vector<128x4xf32> to vector<128xf32>
    %81 = vector.shape_cast %80 : vector<128xf32> to vector<128x1xf32>
    %cst_39 = arith.constant 2.500000e-01 : f32
    %82 = vector.broadcast %cst_39 : f32 to vector<128x1xf32>
    %83 = arith.mulf %81, %82 : vector<128x1xf32>
    %cst_40 = arith.constant 9.99999997E-7 : f32
    %84 = vector.broadcast %cst_40 : f32 to vector<128x1xf32>
    %85 = arith.addf %83, %84 : vector<128x1xf32>
    %86 = math.rsqrt %85 : vector<128x1xf32>
    %87 = vector.broadcast %86 : vector<128x1xf32> to vector<128x4xf32>
    %88 = arith.mulf %78, %87 : vector<128x4xf32>
    %89 = arith.truncf %88 : vector<128x4xf32> to vector<128x4xbf16>
    %c3_41 = arith.constant 3 : index
    %c0_42 = arith.constant 0 : index
    %c0_43 = arith.constant 0 : index
    %90 = vector.load %arg2[%c3_41, %c0_42, %c0_43] : memref<4x4x128xbf16, #tpu.memory_space<vmem>>, vector<1x4x128xbf16>
    %91 = vector.shape_cast %90 : vector<1x4x128xbf16> to vector<4x128xbf16>
    %cst_44 = arith.constant dense<0.000000e+00> : vector<128x128xf32>
    %92 = tpu.matmul %89, %91, %cst_44 {dimension_numbers = #tpu.dot_dimension_numbers<[1], [0], [0], [1], [0, 0, 1, 1], [], []>} : vector<128x4xbf16>, vector<4x128xbf16>, vector<128x128xf32> -> vector<128x128xf32>
    %93 = arith.addf %70, %92 : vector<128x128xf32>
    %cst_45 = arith.constant 5.000000e-01 : f32
    %94 = vector.broadcast %cst_45 : f32 to vector<128x128xf32>
    %95 = arith.mulf %94, %93 : vector<128x128xf32>
    %cst_46 = arith.constant 0.707106769 : f32
    %96 = vector.broadcast %cst_46 : f32 to vector<128x128xf32>
    %97 = arith.mulf %93, %96 : vector<128x128xf32>
    %98 = math.erf %97 : vector<128x128xf32>
    %cst_47 = arith.constant 1.000000e+00 : f32
    %99 = vector.broadcast %cst_47 : f32 to vector<128x128xf32>
    %100 = arith.addf %99, %98 : vector<128x128xf32>
    %101 = arith.mulf %95, %100 : vector<128x128xf32>
    %c0_48 = arith.constant 0 : index
    %c0_49 = arith.constant 0 : index
    %102 = vector.load %arg4[%c0_48, %c0_49] : memref<128x128xf32, #tpu.memory_space<vmem>>, vector<128x128xf32>
    tpu.vector_store %arg4[%c0_48, %c0_49], %101 {strides = array<i32>} : memref<128x128xf32, #tpu.memory_space<vmem>>, vector<128x128xf32>,
    return
  }
  func.func @transform_0(%arg0: i32) -> (i32, i32, i32) {
    %c0_i32 = arith.constant 0 : i32
    %c0_i32_0 = arith.constant 0 : i32
    %c0_i32_1 = arith.constant 0 : i32
    return %c0_i32, %arg0, %c0_i32_0 : i32, i32, i32
  }
  func.func @transform_1(%arg0: i32) -> (i32, i32, i32) {
    %c0_i32 = arith.constant 0 : i32
    %c0_i32_0 = arith.constant 0 : i32
    %c0_i32_1 = arith.constant 0 : i32
    %c0_i32_2 = arith.constant 0 : i32
    return %c0_i32, %c0_i32_0, %c0_i32_1 : i32, i32, i32
  }
  func.func @transform_2(%arg0: i32) -> (i32, i32) {
    %c0_i32 = arith.constant 0 : i32
    %c0_i32_0 = arith.constant 0 : i32
    %c0_i32_1 = arith.constant 0 : i32
    return %c0_i32, %c0_i32_0 : i32, i32
  }
  func.func @transform_3(%arg0: i32) -> (i32, i32) {
    %c0_i32 = arith.constant 0 : i32
    %c0_i32_0 = arith.constant 0 : i32
    return %arg0, %c0_i32 : i32, i32
  }
}

module attributes {stable_mosaic.version = 11 : i64} {
  func.func @_downsample_kernel(%arg0: i32, %arg1: memref<4x128x4xf32, #tpu.memory_space<vmem>>, %arg2: memref<4x4x128xbf16, #tpu.memory_space<vmem>>, %arg3: memref<1x128xf32, #tpu.memory_space<vmem>>, %arg4: memref<128x128xf32, #tpu.memory_space<vmem>>) attributes {dimension_semantics = [#tpu.dimension_semantics<parallel>], iteration_bounds = array<i64: 1>, scalar_prefetch = 0 : i64, scratch_operands = 0 : i64, tpu.core_type = #tpu.core_type<tc>, window_params = [{transform_indices = @transform_0, window_bounds = array<i64: 4, 128, 4>}, {pipeline_mode = #tpu.pipeline_mode<synchronous>, transform_indices = @transform_1, window_bounds = array<i64: 4, 4, 128>}, {pipeline_mode = #tpu.pipeline_mode<synchronous>, transform_indices = @transform_2, window_bounds = array<i64: 1, 128>}, {transform_indices = @transform_3, window_bounds = array<i64: 128, 128>}]} {
    %c0 = arith.constant 0 : index
    %c0_0 = arith.constant 0 : index
    %0 = vector.load %arg3[%c0, %c0_0] : memref<1x128xf32, #tpu.memory_space<vmem>>, vector<1x128xf32>
    %c0_1 = arith.constant 0 : index
    %c0_2 = arith.constant 0 : index
    %c0_3 = arith.constant 0 : index
    %1 = vector.load %arg1[%c0_1, %c0_2, %c0_3] : memref<4x128x4xf32, #tpu.memory_space<vmem>>, vector<1x128x4xf32>
    %2 = vector.shape_cast %1 : vector<1x128x4xf32> to vector<128x4xf32>
    %cst = arith.constant dense<0.000000e+00> : vector<128xf32>
    %3 = vector.multi_reduction <add>, %2, %cst [1] : vector<128x4xf32> to vector<128xf32>
    %4 = vector.shape_cast %3 : vector<128xf32> to vector<128x1xf32>
    %cst_4 = arith.constant 2.500000e-01 : f32
    %5 = vector.broadcast %cst_4 : f32 to vector<128x1xf32>
    %6 = arith.mulf %4, %5 : vector<128x1xf32>
    %7 = vector.broadcast %6 : vector<128x1xf32> to vector<128x4xf32>
    %8 = arith.subf %2, %7 : vector<128x4xf32>
    %9 = arith.mulf %8, %8 : vector<128x4xf32>
    %cst_5 = arith.constant dense<0.000000e+00> : vector<128xf32>
    %10 = vector.multi_reduction <add>, %9, %cst_5 [1] : vector<128x4xf32> to vector<128xf32>
    %11 = vector.shape_cast %10 : vector<128xf32> to vector<128x1xf32>
    %cst_6 = arith.constant 2.500000e-01 : f32
    %12 = vector.broadcast %cst_6 : f32 to vector<128x1xf32>
    %13 = arith.mulf %11, %12 : vector<128x1xf32>
    %cst_7 = arith.constant 9.99999997E-7 : f32
    %14 = vector.broadcast %cst_7 : f32 to vector<128x1xf32>
    %15 = arith.addf %13, %14 : vector<128x1xf32>
    %16 = math.rsqrt %15 : vector<128x1xf32>
    %17 = vector.broadcast %16 : vector<128x1xf32> to vector<128x4xf32>
    %18 = arith.mulf %8, %17 : vector<128x4xf32>
    %19 = arith.truncf %18 : vector<128x4xf32> to vector<128x4xbf16>
    %c0_8 = arith.constant 0 : index
    %c0_9 = arith.constant 0 : index
    %c0_10 = arith.constant 0 : index
    %20 = vector.load %arg2[%c0_8, %c0_9, %c0_10] : memref<4x4x128xbf16, #tpu.memory_space<vmem>>, vector<1x4x128xbf16>
    %21 = vector.shape_cast %20 : vector<1x4x128xbf16> to vector<4x128xbf16>
    %cst_11 = arith.constant dense<0.000000e+00> : vector<128x128xf32>
    %22 = tpu.matmul %19, %21, %cst_11 {dimension_numbers = #tpu.dot_dimension_numbers<[1], [0], [0], [1], [0, 0, 1, 1], [], []>} : vector<128x4xbf16>, vector<4x128xbf16>, vector<128x128xf32> -> vector<128x128xf32>
    %23 = vector.broadcast %0 : vector<1x128xf32> to vector<128x128xf32>
    %24 = arith.addf %23, %22 : vector<128x128xf32>
    %c1 = arith.constant 1 : index
    %c0_12 = arith.constant 0 : index
    %c0_13 = arith.constant 0 : index
    %25 = vector.load %arg1[%c1, %c0_12, %c0_13] : memref<4x128x4xf32, #tpu.memory_space<vmem>>, vector<1x128x4xf32>
    %26 = vector.shape_cast %25 : vector<1x128x4xf32> to vector<128x4xf32>
    %cst_14 = arith.constant dense<0.000000e+00> : vector<128xf32>
    %27 = vector.multi_reduction <add>, %26, %cst_14 [1] : vector<128x4xf32> to vector<128xf32>
    %28 = vector.shape_cast %27 : vector<128xf32> to vector<128x1xf32>
    %cst_15 = arith.constant 2.500000e-01 : f32
    %29 = vector.broadcast %cst_15 : f32 to vector<128x1xf32>
    %30 = arith.mulf %28, %29 : vector<128x1xf32>
    %31 = vector.broadcast %30 : vector<128x1xf32> to vector<128x4xf32>
    %32 = arith.subf %26, %31 : vector<128x4xf32>
    %33 = arith.mulf %32, %32 : vector<128x4xf32>
    %cst_16 = arith.constant dense<0.000000e+00> : vector<128xf32>
    %34 = vector.multi_reduction <add>, %33, %cst_16 [1] : vector<128x4xf32> to vector<128xf32>
    %35 = vector.shape_cast %34 : vector<128xf32> to vector<128x1xf32>
    %cst_17 = arith.constant 2.500000e-01 : f32
    %36 = vector.broadcast %cst_17 : f32 to vector<128x1xf32>
    %37 = arith.mulf %35, %36 : vector<128x1xf32>
    %cst_18 = arith.constant 9.99999997E-7 : f32
    %38 = vector.broadcast %cst_18 : f32 to vector<128x1xf32>
    %39 = arith.addf %37, %38 : vector<128x1xf32>
    %40 = math.rsqrt %39 : vector<128x1xf32>
    %41 = vector.broadcast %40 : vector<128x1xf32> to vector<128x4xf32>
    %42 = arith.mulf %32, %41 : vector<128x4xf32>
    %43 = arith.truncf %42 : vector<128x4xf32> to vector<128x4xbf16>
    %c1_19 = arith.constant 1 : index
    %c0_20 = arith.constant 0 : index
    %c0_21 = arith.constant 0 : index
    %44 = vector.load %arg2[%c1_19, %c0_20, %c0_21] : memref<4x4x128xbf16, #tpu.memory_space<vmem>>, vector<1x4x128xbf16>
    %45 = vector.shape_cast %44 : vector<1x4x128xbf16> to vector<4x128xbf16>
    %cst_22 = arith.constant dense<0.000000e+00> : vector<128x128xf32>
    %46 = tpu.matmul %43, %45, %cst_22 {dimension_numbers = #tpu.dot_dimension_numbers<[1], [0], [0], [1], [0, 0, 1, 1], [], []>} : vector<128x4xbf16>, vector<4x128xbf16>, vector<128x128xf32> -> vector<128x128xf32>
    %47 = arith.addf %24, %46 : vector<128x128xf32>
    %c2 = arith.constant 2 : index
    %c0_23 = arith.constant 0 : index
    %c0_24 = arith.constant 0 : index
    %48 = vector.load %arg1[%c2, %c0_23, %c0_24] : memref<4x128x4xf32, #tpu.memory_space<vmem>>, vector<1x128x4xf32>
    %49 = vector.shape_cast %48 : vector<1x128x4xf32> to vector<128x4xf32>
    %cst_25 = arith.constant dense<0.000000e+00> : vector<128xf32>
    %50 = vector.multi_reduction <add>, %49, %cst_25 [1] : vector<128x4xf32> to vector<128xf32>
    %51 = vector.shape_cast %50 : vector<128xf32> to vector<128x1xf32>
    %cst_26 = arith.constant 2.500000e-01 : f32
    %52 = vector.broadcast %cst_26 : f32 to vector<128x1xf32>
    %53 = arith.mulf %51, %52 : vector<128x1xf32>
    %54 = vector.broadcast %53 : vector<128x1xf32> to vector<128x4xf32>
    %55 = arith.subf %49, %54 : vector<128x4xf32>
    %56 = arith.mulf %55, %55 : vector<128x4xf32>
    %cst_27 = arith.constant dense<0.000000e+00> : vector<128xf32>
    %57 = vector.multi_reduction <add>, %56, %cst_27 [1] : vector<128x4xf32> to vector<128xf32>
    %58 = vector.shape_cast %57 : vector<128xf32> to vector<128x1xf32>
    %cst_28 = arith.constant 2.500000e-01 : f32
    %59 = vector.broadcast %cst_28 : f32 to vector<128x1xf32>
    %60 = arith.mulf %58, %59 : vector<128x1xf32>
    %cst_29 = arith.constant 9.99999997E-7 : f32
    %61 = vector.broadcast %cst_29 : f32 to vector<128x1xf32>
    %62 = arith.addf %60, %61 : vector<128x1xf32>
    %63 = math.rsqrt %62 : vector<128x1xf32>
    %64 = vector.broadcast %63 : vector<128x1xf32> to vector<128x4xf32>
    %65 = arith.mulf %55, %64 : vector<128x4xf32>
    %66 = arith.truncf %65 : vector<128x4xf32> to vector<128x4xbf16>
    %c2_30 = arith.constant 2 : index
    %c0_31 = arith.constant 0 : index
    %c0_32 = arith.constant 0 : index
    %67 = vector.load %arg2[%c2_30, %c0_31, %c0_32] : memref<4x4x128xbf16, #tpu.memory_space<vmem>>, vector<1x4x128xbf16>
    %68 = vector.shape_cast %67 : vector<1x4x128xbf16> to vector<4x128xbf16>
    %cst_33 = arith.constant dense<0.000000e+00> : vector<128x128xf32>
    %69 = tpu.matmul %66, %68, %cst_33 {dimension_numbers = #tpu.dot_dimension_numbers<[1], [0], [0], [1], [0, 0, 1, 1], [], []>} : vector<128x4xbf16>, vector<4x128xbf16>, vector<128x128xf32> -> vector<128x128xf32>
    %70 = arith.addf %47, %69 : vector<128x128xf32>
    %c3 = arith.constant 3 : index
    %c0_34 = arith.constant 0 : index
    %c0_35 = arith.constant 0 : index
    %71 = vector.load %arg1[%c3, %c0_34, %c0_35] : memref<4x128x4xf32, #tpu.memory_space<vmem>>, vector<1x128x4xf32>
    %72 = vector.shape_cast %71 : vector<1x128x4xf32> to vector<128x4xf32>
    %cst_36 = arith.constant dense<0.000000e+00> : vector<128xf32>
    %73 = vector.multi_reduction <add>, %72, %cst_36 [1] : vector<128x4xf32> to vector<128xf32>
    %74 = vector.shape_cast %73 : vector<128xf32> to vector<128x1xf32>
    %cst_37 = arith.constant 2.500000e-01 : f32
    %75 = vector.broadcast %cst_37 : f32 to vector<128x1xf32>
    %76 = arith.mulf %74, %75 : vector<128x1xf32>
    %77 = vector.broadcast %76 : vector<128x1xf32> to vector<128x4xf32>
    %78 = arith.subf %72, %77 : vector<128x4xf32>
    %79 = arith.mulf %78, %78 : vector<128x4xf32>
    %cst_38 = arith.constant dense<0.000000e+00> : vector<128xf32>
    %80 = vector.multi_reduction <add>, %79, %cst_38 [1] : vector<128x4xf32> to vector<128xf32>
    %81 = vector.shape_cast %80 : vector<128xf32> to vector<128x1xf32>
    %cst_39 = arith.constant 2.500000e-01 : f32
    %82 = vector.broadcast %cst_39 : f32 to vector<128x1xf32>
    %83 = arith.mulf %81, %82 : vector<128x1xf32>
    %cst_40 = arith.constant 9.99999997E-7 : f32
    %84 = vector.broadcast %cst_40 : f32 to vector<128x1xf32>
    %85 = arith.addf %83, %84 : vector<128x1xf32>
    %86 = math.rsqrt %85 : vector<128x1xf32>
    %87 = vector.broadcast %86 : vector<128x1xf32> to vector<128x4xf32>
    %88 = arith.mulf %78, %87 : vector<128x4xf32>
    %89 = arith.truncf %88 : vector<128x4xf32> to vector<128x4xbf16>
    %c3_41 = arith.constant 3 : index
    %c0_42 = arith.constant 0 : index
    %c0_43 = arith.constant 0 : index
    %90 = vector.load %arg2[%c3_41, %c0_42, %c0_43] : memref<4x4x128xbf16, #tpu.memory_space<vmem>>, vector<1x4x128xbf16>
    %91 = vector.shape_cast %90 : vector<1x4x128xbf16> to vector<4x128xbf16>
    %cst_44 = arith.constant dense<0.000000e+00> : vector<128x128xf32>
    %92 = tpu.matmul %89, %91, %cst_44 {dimension_numbers = #tpu.dot_dimension_numbers<[1], [0], [0], [1], [0, 0, 1, 1], [], []>} : vector<128x4xbf16>, vector<4x128xbf16>, vector<128x128xf32> -> vector<128x128xf32>
    %93 = arith.addf %70, %92 : vector<128x128xf32>
    %cst_45 = arith.constant 5.000000e-01 : f32
    %94 = vector.broadcast %cst_45 : f32 to vector<128x128xf32>
    %95 = arith.mulf %94, %93 : vector<128x128xf32>
    %cst_46 = arith.constant 0.707106769 : f32
    %96 = vector.broadcast %cst_46 : f32 to vector<128x128xf32>
    %97 = arith.mulf %93, %96 : vector<128x128xf32>
    %98 = math.erf %97 : vector<128x128xf32>
    %cst_47 = arith.constant 1.000000e+00 : f32
    %99 = vector.broadcast %cst_47 : f32 to vector<128x128xf32>
    %100 = arith.addf %99, %98 : vector<128x128xf32>
    %101 = arith.mulf %95, %100 : vector<128x128xf32>
    %c0_48 = arith.constant 0 : index
    %c0_49 = arith.constant 0 : index
    %102 = vector.load %arg4[%c0_48, %c0_49] : memref<128x128xf32, #tpu.memory_space<vmem>>, vector<128x128xf32>
    tpu.vector_store %arg4[%c0_48, %c0_49], %101 {strides = array<i32>} : memref<128x128xf32, #tpu.memory_space<vmem>>, vector<128x128xf32>,
    return
  }
  func.func @transform_0(%arg0: i32) -> (i32, i32, i32) {
    %c0_i32 = arith.constant 0 : i32
    %c0_i32_0 = arith.constant 0 : i32
    %c0_i32_1 = arith.constant 0 : i32
    return %c0_i32, %arg0, %c0_i32_0 : i32, i32, i32
  }
  func.func @transform_1(%arg0: i32) -> (i32, i32, i32) {
    %c0_i32 = arith.constant 0 : i32
    %c0_i32_0 = arith.constant 0 : i32
    %c0_i32_1 = arith.constant 0 : i32
    %c0_i32_2 = arith.constant 0 : i32
    return %c0_i32, %c0_i32_0, %c0_i32_1 : i32, i32, i32
  }
  func.func @transform_2(%arg0: i32) -> (i32, i32) {
    %c0_i32 = arith.constant 0 : i32
    %c0_i32_0 = arith.constant 0 : i32
    %c0_i32_1 = arith.constant 0 : i32
    return %c0_i32, %c0_i32_0 : i32, i32
  }
  func.func @transform_3(%arg0: i32) -> (i32, i32) {
    %c0_i32 = arith.constant 0 : i32
    %c0_i32_0 = arith.constant 0 : i32
    return %arg0, %c0_i32 : i32, i32
  }
}

</mosaic_0001>

<bundles_post_ra>
// kernel: tpu_custom_call.1
= control target key start
LH: loop header
LB: loop body
LE: loop exit
PB: predicated region body
PF: predicated region fallthrough
CT: control target
= control target key end

     0   :  { %vm33_vm0 = vcmask 31744   ;;  %s3094_s0 = inlined_call_operand.vmem [shape: f32[4,128,4], index: 0, kind: input, shape index: {}]   ;;  %s3095_s1 = inlined_call_operand.vmem [shape: bf16[4,4,128], index: 1, kind: input, shape index: {}]   ;;  %s3096_s2 = inlined_call_operand.vmem [shape: f32[1,128], index: 2, kind: input, shape index: {}]   ;;  %s3097_s3 = inlined_call_operand.hbm [shape: f32[128,128], index: 3, kind: output, shape index: {}]  }
   0x1   :  { %v2108_v0 = vld [vmem:[%s3094_s0] sm:$0xff]  ;;  %v2113_v1 = vld [vmem:[%s3094_s0 + $0x10] sm:$0xff]  ;;  %v2118_v2 = vld [vmem:[%s3094_s0 + $0x8] sm:$0xff] }
   0x2   :  { %v34_v3 = vsel %vm33_vm0, %v2108_v0, 0.0  ;;  %v40_v4 = vsel %vm33_vm0, %v2113_v1, 0.0  ;;  %v2127_v5 = vld [vmem:[%s3094_s0 + $0x18] sm:$0xff]  ;;  %v37_v6 = vsel %vm33_vm0, %v2118_v2, 0.0  ;;  %v2136_v8 = vld [vmem:[%s3094_s0 + $0x100] sm:$0xff]  ;;  %v2141_v9 = vld [vmem:[%s3094_s0 + $0x108] sm:$0xff] }
   0x3   :  { %35 = vadd.xlane.f32.xlu0 %v34_v3  ;;  %41 = vadd.xlane.f32.xlu1 %v40_v4  ;;  %v43_v7 = vsel %vm33_vm0, %v2127_v5, 0.0  ;;  %v790_v10 = vsel %vm33_vm0, %v2136_v8, 0.0  ;;  %v793_v11 = vsel %vm33_vm0, %v2141_v9, 0.0  ;;  %v2150_v12 = vld [vmem:[%s3094_s0 + $0x110] sm:$0xff]  ;;  %v2155_v13 = vld [vmem:[%s3094_s0 + $0x118] sm:$0xff]  ;;  %v2164_v16 = vld [vmem:[%s3094_s0 + $0x20] sm:$0xff] }
   0x4   :  { %v796_v14 = vsel %vm33_vm0, %v2150_v12, 0.0  ;;  %v799_v15 = vsel %vm33_vm0, %v2155_v13, 0.0  ;;  %v2169_v17 = vld [vmem:[%s3094_s0 + $0x28] sm:$0xff]  ;;  %v46_v18 = vsel %vm33_vm0, %v2164_v16, 0.0  ;;  %v2178_v20 = vld [vmem:[%s3094_s0 + $0x30] sm:$0xff]  ;;  %v2183_v21 = vld [vmem:[%s3094_s0 + $0x38] sm:$0xff] }
   0x5   :  { %v49_v19 = vsel %vm33_vm0, %v2169_v17, 0.0  ;;  %v52_v22 = vsel %vm33_vm0, %v2178_v20, 0.0  ;;  %v55_v23 = vsel %vm33_vm0, %v2183_v21, 0.0  ;;  %v2192_v24 = vld [vmem:[%s3094_s0 + $0x120] sm:$0xff]  ;;  %v2197_v25 = vld [vmem:[%s3094_s0 + $0x128] sm:$0xff] }
   0x7   :  { %38 = vadd.xlane.f32.xlu0 %v37_v6  ;;  %44 = vadd.xlane.f32.xlu1 %v43_v7 }
   0xb   :  { %791 = vadd.xlane.f32.xlu0 %v790_v10  ;;  %794 = vadd.xlane.f32.xlu1 %v793_v11 }
   0xf   :  { %797 = vadd.xlane.f32.xlu0 %v796_v14  ;;  %800 = vadd.xlane.f32.xlu1 %v799_v15 }
  0x13   :  { %47 = vadd.xlane.f32.xlu0 %v46_v18  ;;  %50 = vadd.xlane.f32.xlu1 %v49_v19 }
  0x14   :  { %8 = vsyncpa [#allocation3], 0  ;;  %v802_v26 = vsel %vm33_vm0, %v2192_v24, 0.0  ;;  %v805_v27 = vsel %vm33_vm0, %v2197_v25, 0.0  ;;  %v2206_v28 = vld [vmem:[%s3094_s0 + $0x130] sm:$0xff]  ;;  %v2211_v29 = vld [vmem:[%s3094_s0 + $0x138] sm:$0xff] }
  0x15   :  { %v808_v30 = vsel %vm33_vm0, %v2206_v28, 0.0  ;;  %v811_v31 = vsel %vm33_vm0, %v2211_v29, 0.0  ;;  %v2220_v32 = vld [vmem:[%s3094_s0 + $0x40] sm:$0xff]  ;;  %v2225_v33 = vld [vmem:[%s3094_s0 + $0x48] sm:$0xff]  ;;  %v2234_v36 = vld [vmem:[%s3094_s0 + $0x50] sm:$0xff]  ;;  %vm275_vm1 = vcmask 1041408  }
  0x16   :  { %v58_v34 = vsel %vm33_vm0, %v2220_v32, 0.0  ;;  %v61_v35 = vsel %vm33_vm0, %v2225_v33, 0.0  ;;  %v2239_v37 = vld [vmem:[%s3094_s0 + $0x58] sm:$0xff]  ;;  %v64_v38 = vsel %vm33_vm0, %v2234_v36, 0.0  ;;  %v2248_v40 = vld [vmem:[%s3094_s0 + $0x140] sm:$0xff]  ;;  %v2253_v41 = vld [vmem:[%s3094_s0 + $0x148] sm:$0xff] }
  0x17   :  { %53 = vadd.xlane.f32.xlu0 %v52_v22  ;;  %56 = vadd.xlane.f32.xlu1 %v55_v23  ;;  %v67_v39 = vsel %vm33_vm0, %v2239_v37, 0.0  ;;  %v814_v42 = vsel %vm33_vm0, %v2248_v40, 0.0  ;;  %v817_v43 = vsel %vm33_vm0, %v2253_v41, 0.0  ;;  %v2262_v44 = vld [vmem:[%s3094_s0 + $0x150] sm:$0xff]  ;;  %v2267_v45 = vld [vmem:[%s3094_s0 + $0x158] sm:$0xff]  ;;  %v2276_v48 = vld [vmem:[%s3094_s0 + $0x60] sm:$0xff] }
  0x18   :  { %v820_v46 = vsel %vm33_vm0, %v2262_v44, 0.0  ;;  %v823_v47 = vsel %vm33_vm0, %v2267_v45, 0.0  ;;  %v2281_v49 = vld [vmem:[%s3094_s0 + $0x68] sm:$0xff]  ;;  %v70_v50 = vsel %vm33_vm0, %v2276_v48, 0.0  ;;  %v2290_v52 = vld [vmem:[%s3094_s0 + $0x70] sm:$0xff]  ;;  %v2295_v53 = vld [vmem:[%s3094_s0 + $0x78] sm:$0xff] }
  0x19   :  { %v73_v51 = vsel %vm33_vm0, %v2281_v49, 0.0  ;;  %v76_v54 = vsel %vm33_vm0, %v2290_v52, 0.0  ;;  %v79_v55 = vsel %vm33_vm0, %v2295_v53, 0.0  ;;  %v2304_v56 = vld [vmem:[%s3094_s0 + $0x160] sm:$0xff]  ;;  %v2309_v57 = vld [vmem:[%s3094_s0 + $0x168] sm:$0xff]  ;;  %v2318_v60 = vld [vmem:[%s3094_s0 + $0x170] sm:$0xff] }
  0x1a   :  { %v826_v58 = vsel %vm33_vm0, %v2304_v56, 0.0  ;;  %v829_v59 = vsel %vm33_vm0, %v2309_v57, 0.0  ;;  %v2323_v61 = vld [vmem:[%s3094_s0 + $0x178] sm:$0xff]  ;;  %v832_v62 = vsel %vm33_vm0, %v2318_v60, 0.0  ;;  %v2332_v3 = vld [vmem:[%s3094_s0 + $0x80] sm:$0xff]  ;;  %v2337_v4 = vld [vmem:[%s3094_s0 + $0x88] sm:$0xff] }
  0x1b   :  { %803 = vadd.xlane.f32.xlu0 %v802_v26  ;;  %806 = vadd.xlane.f32.xlu1 %v805_v27  ;;  %v835_v63 = vsel %vm33_vm0, %v2323_v61, 0.0  ;;  %v415_v6 = vsel %vm33_vm0, %v2332_v3, 0.0  ;;  %v418_v7 = vsel %vm33_vm0, %v2337_v4, 0.0  ;;  %v2346_v10 = vld [vmem:[%s3094_s0 + $0x90] sm:$0xff]  ;;  %v2351_v11 = vld [vmem:[%s3094_s0 + $0x98] sm:$0xff]  ;;  %v2360_v18 = vld [vmem:[%s3094_s0 + $0x180] sm:$0xff] }
  0x1c   :  { %v421_v14 = vsel %vm33_vm0, %v2346_v10, 0.0  ;;  %v424_v15 = vsel %vm33_vm0, %v2351_v11, 0.0  ;;  %v2365_v19 = vld [vmem:[%s3094_s0 + $0x188] sm:$0xff]  ;;  %v1165_v22 = vsel %vm33_vm0, %v2360_v18, 0.0  ;;  %v2374_v26 = vld [vmem:[%s3094_s0 + $0x190] sm:$0xff]  ;;  %v2379_v27 = vld [vmem:[%s3094_s0 + $0x198] sm:$0xff] }
  0x1d   :  { %v1168_v23 = vsel %vm33_vm0, %v2365_v19, 0.0 }
  0x1f   :  { %809 = vadd.xlane.f32.xlu0 %v808_v30  ;;  %812 = vadd.xlane.f32.xlu1 %v811_v31  ;;  %v1171_v30 = vsel %vm33_vm0, %v2374_v26, 0.0  ;;  %v1174_v31 = vsel %vm33_vm0, %v2379_v27, 0.0 }
  0x23   :  { %59 = vadd.xlane.f32.xlu0 %v58_v34  ;;  %62 = vadd.xlane.f32.xlu1 %v61_v35  ;;  %v2388_v34 = vld [vmem:[%s3094_s0 + $0xa0] sm:$0xff]  ;;  %v2393_v35 = vld [vmem:[%s3094_s0 + $0xa8] sm:$0xff] }
  0x27   :  { %65 = vadd.xlane.f32.xlu0 %v64_v38  ;;  %68 = vadd.xlane.f32.xlu1 %v67_v39  ;;  %v427_v38 = vsel %vm33_vm0, %v2388_v34, 0.0  ;;  %v430_v39 = vsel %vm33_vm0, %v2393_v35, 0.0 }
  0x2b   :  { %815 = vadd.xlane.f32.xlu0 %v814_v42  ;;  %818 = vadd.xlane.f32.xlu1 %v817_v43  ;;  %v2402_v42 = vld [vmem:[%s3094_s0 + $0xb0] sm:$0xff]  ;;  %v2407_v43 = vld [vmem:[%s3094_s0 + $0xb8] sm:$0xff] }
  0x2f   :  { %821 = vadd.xlane.f32.xlu0 %v820_v46  ;;  %824 = vadd.xlane.f32.xlu1 %v823_v47  ;;  %v433_v46 = vsel %vm33_vm0, %v2402_v42, 0.0  ;;  %v436_v47 = vsel %vm33_vm0, %v2407_v43, 0.0 }
  0x33   :  { %71 = vadd.xlane.f32.xlu0 %v70_v50  ;;  %74 = vadd.xlane.f32.xlu1 %v73_v51  ;;  %v2416_v50 = vld [vmem:[%s3094_s0 + $0x1a0] sm:$0xff]  ;;  %v2421_v51 = vld [vmem:[%s3094_s0 + $0x1a8] sm:$0xff] }
  0x37   :  { %77 = vadd.xlane.f32.xlu0 %v76_v54  ;;  %80 = vadd.xlane.f32.xlu1 %v79_v55  ;;  %v1177_v54 = vsel %vm33_vm0, %v2416_v50, 0.0  ;;  %v1180_v55 = vsel %vm33_vm0, %v2421_v51, 0.0 }
  0x3b   :  { %827 = vadd.xlane.f32.xlu0 %v826_v58  ;;  %830 = vadd.xlane.f32.xlu1 %v829_v59  ;;  %v2430_v58 = vld [vmem:[%s3094_s0 + $0x1b0] sm:$0xff]  ;;  %v2435_v59 = vld [vmem:[%s3094_s0 + $0x1b8] sm:$0xff] }
  0x3f   :  { %833 = vadd.xlane.f32.xlu0 %v832_v62  ;;  %836 = vadd.xlane.f32.xlu1 %v835_v63  ;;  %v1183_v62 = vsel %vm33_vm0, %v2430_v58, 0.0  ;;  %v1186_v63 = vsel %vm33_vm0, %v2435_v59, 0.0 }
  0x43   :  { %416 = vadd.xlane.f32.xlu0 %v415_v6  ;;  %419 = vadd.xlane.f32.xlu1 %v418_v7  ;;  %v2444_v6 = vld [vmem:[%s3094_s0 + $0xc0] sm:$0xff]  ;;  %v2449_v7 = vld [vmem:[%s3094_s0 + $0xc8] sm:$0xff] }
  0x47   :  { %422 = vadd.xlane.f32.xlu0 %v421_v14  ;;  %425 = vadd.xlane.f32.xlu1 %v424_v15  ;;  %v439_v14 = vsel %vm33_vm0, %v2444_v6, 0.0  ;;  %v442_v15 = vsel %vm33_vm0, %v2449_v7, 0.0 }
  0x4b   :  { %1166 = vadd.xlane.f32.xlu0 %v1165_v22  ;;  %1169 = vadd.xlane.f32.xlu1 %v1168_v23  ;;  %v2458_v22 = vld [vmem:[%s3094_s0 + $0xd0] sm:$0xff]  ;;  %v2463_v23 = vld [vmem:[%s3094_s0 + $0xd8] sm:$0xff] }
  0x4c   :  { %3133 = vst [vmem:[#allocation5_spill] sm:$0xff] %v2458_v22  ;;  %3134 = vst [vmem:[#allocation6_spill] sm:$0xff] %v2463_v23 }
  0x4f   :  { %1172 = vadd.xlane.f32.xlu0 %v1171_v30  ;;  %1175 = vadd.xlane.f32.xlu1 %v1174_v31  ;;  %v445_v30 = vsel %vm33_vm0, %v2458_v22, 0.0  ;;  %v448_v31 = vsel %vm33_vm0, %v2463_v23, 0.0 }
  0x53   :  { %428 = vadd.xlane.f32.xlu0 %v427_v38  ;;  %431 = vadd.xlane.f32.xlu1 %v430_v39  ;;  %v2472_v38 = vld [vmem:[%s3094_s0 + $0x1c0] sm:$0xff]  ;;  %v2477_v39 = vld [vmem:[%s3094_s0 + $0x1c8] sm:$0xff] }
  0x54   :  { %3135 = vst [vmem:[#allocation7_spill] sm:$0xff] %v2472_v38  ;;  %3136 = vst [vmem:[#allocation8_spill] sm:$0xff] %v2477_v39 }
  0x57   :  { %434 = vadd.xlane.f32.xlu0 %v433_v46  ;;  %437 = vadd.xlane.f32.xlu1 %v436_v47  ;;  %v1189_v46 = vsel %vm33_vm0, %v2472_v38, 0.0  ;;  %v1192_v47 = vsel %vm33_vm0, %v2477_v39, 0.0 }
  0x5b   :  { %1178 = vadd.xlane.f32.xlu0 %v1177_v54  ;;  %1181 = vadd.xlane.f32.xlu1 %v1180_v55  ;;  %v2486_v54 = vld [vmem:[%s3094_s0 + $0x1d0] sm:$0xff]  ;;  %v2491_v55 = vld [vmem:[%s3094_s0 + $0x1d8] sm:$0xff] }
  0x5c   :  { %3137 = vst [vmem:[#allocation9_spill] sm:$0xff] %v2486_v54  ;;  %3138 = vst [vmem:[#allocation10_spill] sm:$0xff] %v2491_v55 }
  0x5f   :  { %1184 = vadd.xlane.f32.xlu0 %v1183_v62  ;;  %1187 = vadd.xlane.f32.xlu1 %v1186_v63  ;;  %v1195_v62 = vsel %vm33_vm0, %v2486_v54, 0.0  ;;  %v1198_v63 = vsel %vm33_vm0, %v2491_v55, 0.0 }
  0x63   :  { %440 = vadd.xlane.f32.xlu0 %v439_v14  ;;  %443 = vadd.xlane.f32.xlu1 %v442_v15  ;;  %v2500_v14 = vld [vmem:[%s3094_s0 + $0xe0] sm:$0xff]  ;;  %v2505_v15 = vld [vmem:[%s3094_s0 + $0xe8] sm:$0xff] }
  0x64   :  { %3139 = vst [vmem:[#allocation11_spill] sm:$0xff] %v2500_v14  ;;  %3140 = vst [vmem:[#allocation12_spill] sm:$0xff] %v2505_v15 }
  0x67   :  { %446 = vadd.xlane.f32.xlu0 %v445_v30  ;;  %449 = vadd.xlane.f32.xlu1 %v448_v31  ;;  %v451_v30 = vsel %vm33_vm0, %v2500_v14, 0.0  ;;  %v454_v31 = vsel %vm33_vm0, %v2505_v15, 0.0  ;;  %v2528_v15 = vld [vmem:[%s3094_s0 + $0x1e0] sm:$0xff]  ;;  %v2533_v14 = vld [vmem:[%s3094_s0 + $0x1e8] sm:$0xff] }
  0x68   :  { %3143 = vst [vmem:[#allocation15_spill] sm:$0xff] %v2528_v15  ;;  %3144 = vst [vmem:[#allocation16_spill] sm:$0xff] %v2533_v14 }
  0x6b   :  { %1190 = vadd.xlane.f32.xlu0 %v1189_v46  ;;  %1193 = vadd.xlane.f32.xlu1 %v1192_v47  ;;  %v2514_v46 = vld [vmem:[%s3094_s0 + $0xf0] sm:$0xff]  ;;  %v2519_v47 = vld [vmem:[%s3094_s0 + $0xf8] sm:$0xff] }
  0x6c   :  { %3141 = vst [vmem:[#allocation13_spill] sm:$0xff] %v2514_v46  ;;  %3142 = vst [vmem:[#allocation14_spill] sm:$0xff] %v2519_v47 }
  0x6f   :  { %1196 = vadd.xlane.f32.xlu0 %v1195_v62  ;;  %1199 = vadd.xlane.f32.xlu1 %v1198_v63  ;;  %v457_v62 = vsel %vm33_vm0, %v2514_v46, 0.0  ;;  %v460_v63 = vsel %vm33_vm0, %v2519_v47, 0.0  ;;  %v2542_v47 = vld [vmem:[%s3094_s0 + $0x1f0] sm:$0xff]  ;;  %v2547_v46 = vld [vmem:[%s3094_s0 + $0x1f8] sm:$0xff] }
  0x70   :  { %3145 = vst [vmem:[#allocation17_spill] sm:$0xff] %v2542_v47 }
  0x73   :  { %452 = vadd.xlane.f32.xlu0 %v451_v30  ;;  %455 = vadd.xlane.f32.xlu1 %v454_v31  ;;  %v1201_v30 = vsel %vm33_vm0, %v2528_v15, 0.0  ;;  %v1204_v31 = vsel %vm33_vm0, %v2533_v14, 0.0 }
  0x77   :  { %458 = vadd.xlane.f32.xlu0 %v457_v62  ;;  %461 = vadd.xlane.f32.xlu1 %v460_v63  ;;  %v1207_v62 = vsel %vm33_vm0, %v2542_v47, 0.0  ;;  %v1210_v63 = vsel %vm33_vm0, %v2547_v46, 0.0 }
  0x7b   :  { %1202 = vadd.xlane.f32.xlu0 %v1201_v30  ;;  %1205 = vadd.xlane.f32.xlu1 %v1204_v31 }
  0x7f   :  { %1208 = vadd.xlane.f32.xlu0 %v1207_v62  ;;  %1211 = vadd.xlane.f32.xlu1 %v1210_v63 }
  0x90   :  { %v36_v14 = vpop.xlane.xlu0 %35  ;;  %v42_v15 = vpop.xlane.xlu1 %41 }
  0x91   :  { %v82_v55 = vmul.f32 0.25, %v36_v14  ;;  %v84_v54 = vmul.f32 0.25, %v42_v15 }
  0x93   :  { %v2554_v39 = vsub.f32 %v2108_v0, %v82_v55  ;;  %v2557_v38 = vsub.f32 %v2113_v1, %v84_v54 }
  0x94   :  { %v39_v30 = vpop.xlane.xlu0 %38  ;;  %v45_v31 = vpop.xlane.xlu1 %44 }
  0x95   :  { %3146 = vst [vmem:[#allocation18_spill] sm:$0xff] %v2557_v38  ;;  %v83_v23 = vmul.f32 0.25, %v39_v30  ;;  %v85_v22 = vmul.f32 0.25, %v45_v31  ;;  %v114_v47 = vmul.f32 %v2554_v39, %v2554_v39  ;;  %v116_v62 = vmul.f32 %v2557_v38, %v2557_v38 }
  0x97   :  { %v2564_v63 = vsub.f32 %v2118_v2, %v83_v23  ;;  %v2567_v14 = vsub.f32 %v2127_v5, %v85_v22  ;;  %v130_v0 = vsel %vm33_vm0, %v114_v47, 0.0  ;;  %v136_v55 = vsel %vm33_vm0, %v116_v62, 0.0 }
  0x98   :  { %131 = vadd.xlane.f32.xlu0 %v130_v0  ;;  %v792_v1 = vpop.xlane.xlu0 %791  ;;  %v795_v54 = vpop.xlane.xlu1 %794 }
  0x99   :  { %v838_v15 = vmul.f32 0.25, %v792_v1  ;;  %v839_v30 = vmul.f32 0.25, %v795_v54  ;;  %v115_v31 = vmul.f32 %v2564_v63, %v2564_v63  ;;  %v117_v38 = vmul.f32 %v2567_v14, %v2567_v14 }
  0x9b   :  { %v2576_v2 = vsub.f32 %v2136_v8, %v838_v15  ;;  %v2579_v5 = vsub.f32 %v2141_v9, %v839_v30  ;;  %v133_v22 = vsel %vm33_vm0, %v115_v31, 0.0  ;;  %v139_v62 = vsel %vm33_vm0, %v117_v38, 0.0 }
  0x9c   :  { %137 = vadd.xlane.f32.xlu0 %v136_v55  ;;  %134 = vadd.xlane.f32.xlu1 %v133_v22  ;;  %v798_v23 = vpop.xlane.xlu0 %797  ;;  %v801_v47 = vpop.xlane.xlu1 %800 }
  0x9d   :  { %v840_v0 = vmul.f32 0.25, %v798_v23  ;;  %v841_v1 = vmul.f32 0.25, %v801_v47  ;;  %v870_v54 = vmul.f32 %v2576_v2, %v2576_v2  ;;  %v871_v8 = vmul.f32 %v2579_v5, %v2579_v5 }
  0x9f   :  { %v2588_v15 = vsub.f32 %v2150_v12, %v840_v0  ;;  %v2591_v9 = vsub.f32 %v2155_v13, %v841_v1  ;;  %v886_v55 = vsel %vm33_vm0, %v870_v54, 0.0  ;;  %v889_v31 = vsel %vm33_vm0, %v871_v8, 0.0 }
  0xa0   :  { %140 = vadd.xlane.f32.xlu1 %v139_v62  ;;  %887 = vadd.xlane.f32.xlu0 %v886_v55  ;;  %v48_v30 = vpop.xlane.xlu0 %47  ;;  %v51_v38 = vpop.xlane.xlu1 %50 }
  0xa1   :  { %v86_v22 = vmul.f32 0.25, %v48_v30  ;;  %v87_v23 = vmul.f32 0.25, %v51_v38  ;;  %v872_v47 = vmul.f32 %v2588_v15, %v2588_v15  ;;  %v873_v12 = vmul.f32 %v2591_v9, %v2591_v9 }
  0xa3   :  { %v2600_v0 = vsub.f32 %v2164_v16, %v86_v22  ;;  %v2603_v13 = vsub.f32 %v2169_v17, %v87_v23  ;;  %v892_v62 = vsel %vm33_vm0, %v872_v47, 0.0  ;;  %v895_v8 = vsel %vm33_vm0, %v873_v12, 0.0 }
  0xa4   :  { %890 = vadd.xlane.f32.xlu1 %v889_v31  ;;  %893 = vadd.xlane.f32.xlu0 %v892_v62  ;;  %v54_v1 = vpop.xlane.xlu0 %53  ;;  %v57_v54 = vpop.xlane.xlu1 %56 }
  0xa5   :  { %v88_v55 = vmul.f32 0.25, %v54_v1  ;;  %v89_v30 = vmul.f32 0.25, %v57_v54  ;;  %v118_v38 = vmul.f32 %v2600_v0, %v2600_v0  ;;  %v119_v16 = vmul.f32 %v2603_v13, %v2603_v13 }
  0xa7   :  { %v2612_v22 = vsub.f32 %v2178_v20, %v88_v55  ;;  %v2615_v17 = vsub.f32 %v2183_v21, %v89_v30  ;;  %v142_v31 = vsel %vm33_vm0, %v118_v38, 0.0  ;;  %v145_v12 = vsel %vm33_vm0, %v119_v16, 0.0 }
  0xa8   :  { %896 = vadd.xlane.f32.xlu1 %v895_v8  ;;  %143 = vadd.xlane.f32.xlu0 %v142_v31  ;;  %v804_v23 = vpop.xlane.xlu0 %803  ;;  %v807_v47 = vpop.xlane.xlu1 %806 }
  0xa9   :  { %v842_v62 = vmul.f32 0.25, %v804_v23  ;;  %v843_v1 = vmul.f32 0.25, %v807_v47  ;;  %v120_v54 = vmul.f32 %v2612_v22, %v2612_v22  ;;  %v121_v20 = vmul.f32 %v2615_v17, %v2615_v17 }
  0xab   :  { %v2624_v55 = vsub.f32 %v2192_v24, %v842_v62  ;;  %v2627_v21 = vsub.f32 %v2197_v25, %v843_v1  ;;  %v148_v8 = vsel %vm33_vm0, %v120_v54, 0.0  ;;  %v151_v16 = vsel %vm33_vm0, %v121_v20, 0.0 }
  0xac   :  { %146 = vadd.xlane.f32.xlu1 %v145_v12  ;;  %149 = vadd.xlane.f32.xlu0 %v148_v8  ;;  %v810_v30 = vpop.xlane.xlu0 %809  ;;  %v813_v38 = vpop.xlane.xlu1 %812 }
  0xad   :  { %v844_v31 = vmul.f32 0.25, %v810_v30  ;;  %v845_v23 = vmul.f32 0.25, %v813_v38  ;;  %v874_v47 = vmul.f32 %v2624_v55, %v2624_v55  ;;  %v875_v24 = vmul.f32 %v2627_v21, %v2627_v21 }
  0xaf   :  { %v2636_v62 = vsub.f32 %v2206_v28, %v844_v31  ;;  %v2639_v25 = vsub.f32 %v2211_v29, %v845_v23  ;;  %v898_v12 = vsel %vm33_vm0, %v874_v47, 0.0  ;;  %v901_v20 = vsel %vm33_vm0, %v875_v24, 0.0 }
  0xb0   :  { %152 = vadd.xlane.f32.xlu1 %v151_v16  ;;  %899 = vadd.xlane.f32.xlu0 %v898_v12  ;;  %v60_v1 = vpop.xlane.xlu0 %59  ;;  %v63_v54 = vpop.xlane.xlu1 %62 }
  0xb1   :  { %v90_v8 = vmul.f32 0.25, %v60_v1  ;;  %v91_v30 = vmul.f32 0.25, %v63_v54  ;;  %v876_v38 = vmul.f32 %v2636_v62, %v2636_v62  ;;  %v877_v28 = vmul.f32 %v2639_v25, %v2639_v25 }
  0xb3   :  { %v2648_v31 = vsub.f32 %v2220_v32, %v90_v8  ;;  %v2651_v29 = vsub.f32 %v2225_v33, %v91_v30  ;;  %v904_v16 = vsel %vm33_vm0, %v876_v38, 0.0  ;;  %v907_v24 = vsel %vm33_vm0, %v877_v28, 0.0 }
  0xb4   :  { %902 = vadd.xlane.f32.xlu1 %v901_v20  ;;  %905 = vadd.xlane.f32.xlu0 %v904_v16  ;;  %v66_v23 = vpop.xlane.xlu0 %65  ;;  %v69_v47 = vpop.xlane.xlu1 %68 }
  0xb5   :  { %v92_v12 = vmul.f32 0.25, %v66_v23  ;;  %v93_v1 = vmul.f32 0.25, %v69_v47  ;;  %v122_v54 = vmul.f32 %v2648_v31, %v2648_v31  ;;  %v123_v32 = vmul.f32 %v2651_v29, %v2651_v29 }
  0xb7   :  { %v2660_v8 = vsub.f32 %v2234_v36, %v92_v12  ;;  %v2663_v33 = vsub.f32 %v2239_v37, %v93_v1  ;;  %v154_v20 = vsel %vm33_vm0, %v122_v54, 0.0  ;;  %v157_v28 = vsel %vm33_vm0, %v123_v32, 0.0 }
  0xb8   :  { %908 = vadd.xlane.f32.xlu1 %v907_v24  ;;  %155 = vadd.xlane.f32.xlu0 %v154_v20  ;;  %v816_v30 = vpop.xlane.xlu0 %815  ;;  %v819_v38 = vpop.xlane.xlu1 %818 }
  0xb9   :  { %v846_v16 = vmul.f32 0.25, %v816_v30  ;;  %v847_v23 = vmul.f32 0.25, %v819_v38  ;;  %v124_v47 = vmul.f32 %v2660_v8, %v2660_v8  ;;  %v125_v36 = vmul.f32 %v2663_v33, %v2663_v33 }
  0xbb   :  { %v2672_v12 = vsub.f32 %v2248_v40, %v846_v16  ;;  %v2675_v37 = vsub.f32 %v2253_v41, %v847_v23  ;;  %v160_v24 = vsel %vm33_vm0, %v124_v47, 0.0  ;;  %v163_v32 = vsel %vm33_vm0, %v125_v36, 0.0  ;;  %v250_v41 = vld [vmem:[%s3095_s1] sm:$0x3] }
  0xbc   :  { %158 = vadd.xlane.f32.xlu1 %v157_v28  ;;  %161 = vadd.xlane.f32.xlu0 %v160_v24  ;;  %v822_v1 = vpop.xlane.xlu0 %821  ;;  %v825_v54 = vpop.xlane.xlu1 %824 }
  0xbd   :  { %3147 = vst [vmem:[#allocation19_spill] sm:$0xff] %v2675_v37  ;;  %v848_v20 = vmul.f32 0.25, %v822_v1  ;;  %v849_v30 = vmul.f32 0.25, %v825_v54  ;;  %v878_v38 = vmul.f32 %v2672_v12, %v2672_v12  ;;  %v879_v40 = vmul.f32 %v2675_v37, %v2675_v37  ;;  %1891 = vmatprep.subr.msk.bf16.mxu1 %vm275_vm1, %v250_v41 }
  0xbe   :  { %v277_v1 = vsel %vm275_vm1, %v250_v41, 0 }
  0xbf   :  { %v2687_v28 = vsub.f32 %v2262_v44, %v848_v20  ;;  %v2690_v16 = vsub.f32 %v2267_v45, %v849_v30  ;;  %v910_v23 = vsel %vm33_vm0, %v878_v38, 0.0  ;;  %v913_v24 = vsel %vm33_vm0, %v879_v40, 0.0  ;;  %1756 = vmatpush3.bf16.msra.mxu1 %v277_v1 }
  0xc0   :  { %164 = vadd.xlane.f32.xlu1 %v163_v32  ;;  %911 = vadd.xlane.f32.xlu0 %v910_v23  ;;  %v72_v47 = vpop.xlane.xlu0 %71  ;;  %v75_v36 = vpop.xlane.xlu1 %74 }
  0xc1   :  { %v94_v54 = vmul.f32 0.25, %v72_v47  ;;  %v95_v37 = vmul.f32 0.25, %v75_v36  ;;  %v880_v44 = vmul.f32 %v2687_v28, %v2687_v28  ;;  %v881_v45 = vmul.f32 %v2690_v16, %v2690_v16 }
  0xc3   :  { %v2701_v20 = vsub.f32 %v2276_v48, %v94_v54  ;;  %v2704_v32 = vsub.f32 %v2281_v49, %v95_v37  ;;  %v916_v30 = vsel %vm33_vm0, %v880_v44, 0.0  ;;  %v919_v41 = vsel %vm33_vm0, %v881_v45, 0.0  ;;  %v1685_v49 = vld [vmem:[%s3095_s1 + $0x4] sm:$0x3] }
  0xc4   :  { %914 = vadd.xlane.f32.xlu1 %v913_v24  ;;  %917 = vadd.xlane.f32.xlu0 %v916_v30  ;;  %v78_v38 = vpop.xlane.xlu0 %77  ;;  %v81_v40 = vpop.xlane.xlu1 %80  ;;  %v1033_v37 = vsel %vm275_vm1, %v1685_v49, 0 }
  0xc5   :  { %v96_v23 = vmul.f32 0.25, %v78_v38  ;;  %v97_v47 = vmul.f32 0.25, %v81_v40  ;;  %v126_v36 = vmul.f32 %v2701_v20, %v2701_v20  ;;  %v127_v48 = vmul.f32 %v2704_v32, %v2704_v32  ;;  %1893 = vmatprep.subr.msk.bf16.mxu0 %vm275_vm1, %v1685_v49 }
  0xc6   :  { %1792 = vmatpush3.bf16.msra.mxu0 %v1033_v37 }
  0xc7   :  { %v2718_v24 = vsub.f32 %v2290_v52, %v96_v23  ;;  %v2721_v1 = vsub.f32 %v2295_v53, %v97_v47  ;;  %v166_v54 = vsel %vm33_vm0, %v126_v36, 0.0  ;;  %v169_v30 = vsel %vm33_vm0, %v127_v48, 0.0 }
  0xc8   :  { %920 = vadd.xlane.f32.xlu1 %v919_v41  ;;  %167 = vadd.xlane.f32.xlu0 %v166_v54  ;;  %v828_v44 = vpop.xlane.xlu0 %827  ;;  %v831_v45 = vpop.xlane.xlu1 %830 }
  0xc9   :  { %v850_v38 = vmul.f32 0.25, %v828_v44  ;;  %v851_v40 = vmul.f32 0.25, %v831_v45  ;;  %v128_v49 = vmul.f32 %v2718_v24, %v2718_v24  ;;  %v129_v52 = vmul.f32 %v2721_v1, %v2721_v1 }
  0xcb   :  { %v2730_v53 = vsub.f32 %v2304_v56, %v850_v38  ;;  %v2733_v23 = vsub.f32 %v2309_v57, %v851_v40  ;;  %v172_v41 = vsel %vm33_vm0, %v128_v49, 0.0  ;;  %v175_v48 = vsel %vm33_vm0, %v129_v52, 0.0 }
  0xcc   :  { %170 = vadd.xlane.f32.xlu1 %v169_v30  ;;  %173 = vadd.xlane.f32.xlu0 %v172_v41  ;;  %v834_v47 = vpop.xlane.xlu0 %833  ;;  %v837_v36 = vpop.xlane.xlu1 %836 }
  0xcd   :  { %v852_v37 = vmul.f32 0.25, %v834_v47  ;;  %v853_v54 = vmul.f32 0.25, %v837_v36  ;;  %v882_v44 = vmul.f32 %v2730_v53, %v2730_v53  ;;  %v883_v56 = vmul.f32 %v2733_v23, %v2733_v23 }
  0xcf   :  { %v2742_v45 = vsub.f32 %v2318_v60, %v852_v37  ;;  %v2745_v57 = vsub.f32 %v2323_v61, %v853_v54  ;;  %v922_v30 = vsel %vm33_vm0, %v882_v44, 0.0  ;;  %v925_v49 = vsel %vm33_vm0, %v883_v56, 0.0 }
  0xd0   :  { %176 = vadd.xlane.f32.xlu1 %v175_v48  ;;  %923 = vadd.xlane.f32.xlu0 %v922_v30  ;;  %v417_v38 = vpop.xlane.xlu0 %416  ;;  %v420_v40 = vpop.xlane.xlu1 %419 }
  0xd1   :  { %v463_v52 = vmul.f32 0.25, %v417_v38  ;;  %v464_v41 = vmul.f32 0.25, %v420_v40  ;;  %v884_v47 = vmul.f32 %v2742_v45, %v2742_v45  ;;  %v885_v60 = vmul.f32 %v2745_v57, %v2745_v57 }
  0xd3   :  { %v2754_v36 = vsub.f32 %v2332_v3, %v463_v52  ;;  %v2757_v61 = vsub.f32 %v2337_v4, %v464_v41  ;;  %v928_v48 = vsel %vm33_vm0, %v884_v47, 0.0  ;;  %v931_v44 = vsel %vm33_vm0, %v885_v60, 0.0 }
  0xd4   :  { %926 = vadd.xlane.f32.xlu1 %v925_v49  ;;  %929 = vadd.xlane.f32.xlu0 %v928_v48  ;;  %v423_v37 = vpop.xlane.xlu0 %422  ;;  %v426_v54 = vpop.xlane.xlu1 %425 }
  0xd5   :  { %v465_v56 = vmul.f32 0.25, %v423_v37  ;;  %v466_v30 = vmul.f32 0.25, %v426_v54  ;;  %v495_v38 = vmul.f32 %v2754_v36, %v2754_v36  ;;  %v496_v3 = vmul.f32 %v2757_v61, %v2757_v61 }
  0xd7   :  { %v2766_v40 = vsub.f32 %v2346_v10, %v465_v56  ;;  %v2769_v4 = vsub.f32 %v2351_v11, %v466_v30  ;;  %v511_v49 = vsel %vm33_vm0, %v495_v38, 0.0  ;;  %v514_v47 = vsel %vm33_vm0, %v496_v3, 0.0 }
  0xd8   :  { %932 = vadd.xlane.f32.xlu1 %v931_v44  ;;  %512 = vadd.xlane.f32.xlu0 %v511_v49  ;;  %v1167_v52 = vpop.xlane.xlu0 %1166  ;;  %v1170_v41 = vpop.xlane.xlu1 %1169 }
  0xd9   :  { %v1213_v60 = vmul.f32 0.25, %v1167_v52  ;;  %v1214_v48 = vmul.f32 0.25, %v1170_v41  ;;  %v497_v37 = vmul.f32 %v2766_v40, %v2766_v40  ;;  %v498_v10 = vmul.f32 %v2769_v4, %v2769_v4 }
  0xdb   :  { %v2778_v54 = vsub.f32 %v2360_v18, %v1213_v60  ;;  %v2781_v11 = vsub.f32 %v2365_v19, %v1214_v48  ;;  %v517_v44 = vsel %vm33_vm0, %v497_v37, 0.0  ;;  %v520_v38 = vsel %vm33_vm0, %v498_v10, 0.0 }
  0xdc   :  { %515 = vadd.xlane.f32.xlu1 %v514_v47  ;;  %518 = vadd.xlane.f32.xlu0 %v517_v44  ;;  %v1173_v56 = vpop.xlane.xlu0 %1172  ;;  %v1176_v30 = vpop.xlane.xlu1 %1175 }
  0xdd   :  { %v1215_v3 = vmul.f32 0.25, %v1173_v56  ;;  %v1216_v49 = vmul.f32 0.25, %v1176_v30  ;;  %v1245_v52 = vmul.f32 %v2778_v54, %v2778_v54  ;;  %v1246_v18 = vmul.f32 %v2781_v11, %v2781_v11 }
  0xdf   :  { %v2790_v41 = vsub.f32 %v2374_v26, %v1215_v3  ;;  %v2793_v19 = vsub.f32 %v2379_v27, %v1216_v49  ;;  %v1261_v47 = vsel %vm33_vm0, %v1245_v52, 0.0  ;;  %v1264_v37 = vsel %vm33_vm0, %v1246_v18, 0.0 }
  0xe0   :  { %521 = vadd.xlane.f32.xlu1 %v520_v38  ;;  %1262 = vadd.xlane.f32.xlu0 %v1261_v47  ;;  %v429_v60 = vpop.xlane.xlu0 %428  ;;  %v432_v48 = vpop.xlane.xlu1 %431 }
  0xe1   :  { %v467_v10 = vmul.f32 0.25, %v429_v60  ;;  %v468_v44 = vmul.f32 0.25, %v432_v48  ;;  %v1247_v56 = vmul.f32 %v2790_v41, %v2790_v41  ;;  %v1248_v26 = vmul.f32 %v2793_v19, %v2793_v19 }
  0xe3   :  { %v2802_v30 = vsub.f32 %v2388_v34, %v467_v10  ;;  %v2805_v27 = vsub.f32 %v2393_v35, %v468_v44  ;;  %v1267_v38 = vsel %vm33_vm0, %v1247_v56, 0.0  ;;  %v1270_v52 = vsel %vm33_vm0, %v1248_v26, 0.0 }
  0xe4   :  { %1265 = vadd.xlane.f32.xlu1 %v1264_v37  ;;  %1268 = vadd.xlane.f32.xlu0 %v1267_v38  ;;  %v435_v3 = vpop.xlane.xlu0 %434  ;;  %v438_v49 = vpop.xlane.xlu1 %437 }
  0xe5   :  { %v469_v18 = vmul.f32 0.25, %v435_v3  ;;  %v470_v47 = vmul.f32 0.25, %v438_v49  ;;  %v499_v60 = vmul.f32 %v2802_v30, %v2802_v30  ;;  %v500_v34 = vmul.f32 %v2805_v27, %v2805_v27 }
  0xe7   :  { %v2814_v48 = vsub.f32 %v2402_v42, %v469_v18  ;;  %v2817_v35 = vsub.f32 %v2407_v43, %v470_v47  ;;  %v523_v37 = vsel %vm33_vm0, %v499_v60, 0.0  ;;  %v526_v56 = vsel %vm33_vm0, %v500_v34, 0.0 }
  0xe8   :  { %1271 = vadd.xlane.f32.xlu1 %v1270_v52  ;;  %524 = vadd.xlane.f32.xlu0 %v523_v37  ;;  %v1179_v10 = vpop.xlane.xlu0 %1178  ;;  %v1182_v44 = vpop.xlane.xlu1 %1181 }
  0xe9   :  { %v1217_v26 = vmul.f32 0.25, %v1179_v10  ;;  %v1218_v38 = vmul.f32 0.25, %v1182_v44  ;;  %v501_v3 = vmul.f32 %v2814_v48, %v2814_v48  ;;  %v502_v42 = vmul.f32 %v2817_v35, %v2817_v35 }
  0xeb   :  { %v2826_v49 = vsub.f32 %v2416_v50, %v1217_v26  ;;  %v2829_v43 = vsub.f32 %v2421_v51, %v1218_v38  ;;  %v529_v52 = vsel %vm33_vm0, %v501_v3, 0.0  ;;  %v532_v60 = vsel %vm33_vm0, %v502_v42, 0.0 }
  0xec   :  { %527 = vadd.xlane.f32.xlu1 %v526_v56  ;;  %530 = vadd.xlane.f32.xlu0 %v529_v52  ;;  %v1185_v18 = vpop.xlane.xlu0 %1184  ;;  %v1188_v47 = vpop.xlane.xlu1 %1187 }
  0xed   :  { %3148 = vst [vmem:[#allocation20_spill] sm:$0xff] %v2826_v49  ;;  %3149 = vst [vmem:[#allocation21_spill] sm:$0xff] %v2829_v43  ;;  %v1219_v34 = vmul.f32 0.25, %v1185_v18  ;;  %v1220_v37 = vmul.f32 0.25, %v1188_v47  ;;  %v1249_v10 = vmul.f32 %v2826_v49, %v2826_v49  ;;  %v1250_v50 = vmul.f32 %v2829_v43, %v2829_v43 }
  0xef   :  { %v2838_v44 = vsub.f32 %v2430_v58, %v1219_v34  ;;  %v2841_v51 = vsub.f32 %v2435_v59, %v1220_v37  ;;  %v1273_v56 = vsel %vm33_vm0, %v1249_v10, 0.0  ;;  %v1276_v3 = vsel %vm33_vm0, %v1250_v50, 0.0 }
  0xf0   :  { %533 = vadd.xlane.f32.xlu1 %v532_v60  ;;  %1274 = vadd.xlane.f32.xlu0 %v1273_v56  ;;  %v441_v26 = vpop.xlane.xlu0 %440  ;;  %v444_v38 = vpop.xlane.xlu1 %443 }
  0xf1   :  { %3150 = vst [vmem:[#allocation22_spill] sm:$0xff] %v2838_v44  ;;  %3151 = vst [vmem:[#allocation23_spill] sm:$0xff] %v2841_v51  ;;  %v471_v42 = vmul.f32 0.25, %v441_v26  ;;  %v472_v52 = vmul.f32 0.25, %v444_v38  ;;  %v1251_v18 = vmul.f32 %v2838_v44, %v2838_v44  ;;  %v1252_v58 = vmul.f32 %v2841_v51, %v2841_v51  ;;  %v3154_v38 = vld [vmem:[#allocation5_spill] sm:$0xff] }
  0xf3   :  { %v2850_v47 = vsub.f32 %v2444_v6, %v471_v42  ;;  %v2853_v59 = vsub.f32 %v2449_v7, %v472_v52  ;;  %v1279_v60 = vsel %vm33_vm0, %v1251_v18, 0.0  ;;  %v1282_v10 = vsel %vm33_vm0, %v1252_v58, 0.0  ;;  %v3156_v7 = vld [vmem:[#allocation6_spill] sm:$0xff] }
  0xf4   :  { %1277 = vadd.xlane.f32.xlu1 %v1276_v3  ;;  %1280 = vadd.xlane.f32.xlu0 %v1279_v60  ;;  %v447_v34 = vpop.xlane.xlu0 %446  ;;  %v450_v37 = vpop.xlane.xlu1 %449 }
  0xf5   :  { %3152 = vst [vmem:[#allocation24_spill] sm:$0xff] %v2850_v47  ;;  %3153 = vst [vmem:[#allocation25_spill] sm:$0xff] %v2853_v59  ;;  %v473_v50 = vmul.f32 0.25, %v447_v34  ;;  %v474_v56 = vmul.f32 0.25, %v450_v37  ;;  %v503_v26 = vmul.f32 %v2850_v47, %v2850_v47  ;;  %v504_v6 = vmul.f32 %v2853_v59, %v2853_v59 }
  0xf7   :  { %v2862_v42 = vsub.f32 %v3154_v38, %v473_v50  ;;  %v2865_v52 = vsub.f32 %v3156_v7, %v474_v56  ;;  %v535_v3 = vsel %vm33_vm0, %v503_v26, 0.0  ;;  %v538_v60 = vsel %vm33_vm0, %v504_v6, 0.0  ;;  %v3158_v38 = vld [vmem:[#allocation7_spill] sm:$0xff]  ;;  %v3160_v56 = vld [vmem:[#allocation8_spill] sm:$0xff] }
  0xf8   :  { %1283 = vadd.xlane.f32.xlu1 %v1282_v10  ;;  %536 = vadd.xlane.f32.xlu0 %v535_v3  ;;  %v1191_v18 = vpop.xlane.xlu0 %1190  ;;  %v1194_v58 = vpop.xlane.xlu1 %1193 }
  0xf9   :  { %3155 = vst [vmem:[#allocation5_spill] sm:$0xff] %v2862_v42  ;;  %3157 = vst [vmem:[#allocation6_spill] sm:$0xff] %v2865_v52  ;;  %v1221_v34 = vmul.f32 0.25, %v1191_v18  ;;  %v1222_v37 = vmul.f32 0.25, %v1194_v58  ;;  %v505_v47 = vmul.f32 %v2862_v42, %v2862_v42  ;;  %v506_v50 = vmul.f32 %v2865_v52, %v2865_v52 }
  0xfb   :  { %v2874_v59 = vsub.f32 %v3158_v38, %v1221_v34  ;;  %v2877_v7 = vsub.f32 %v3160_v56, %v1222_v37  ;;  %v541_v10 = vsel %vm33_vm0, %v505_v47, 0.0  ;;  %v544_v3 = vsel %vm33_vm0, %v506_v50, 0.0  ;;  %v2888_v37 = vld [vmem:[%s3095_s1 + $0x2] sm:$0x3]  ;;  %v3164_v50 = vld [vmem:[#allocation10_spill] sm:$0xff] }
  0xfc   :  { %539 = vadd.xlane.f32.xlu1 %v538_v60  ;;  %542 = vadd.xlane.f32.xlu0 %v541_v10  ;;  %v1197_v26 = vpop.xlane.xlu0 %1196  ;;  %v1200_v6 = vpop.xlane.xlu1 %1199  ;;  %v3162_v47 = vld [vmem:[#allocation9_spill] sm:$0xff] }
  0xfd   :  { %3159 = vst [vmem:[#allocation7_spill] sm:$0xff] %v2874_v59  ;;  %3161 = vst [vmem:[#allocation8_spill] sm:$0xff] %v2877_v7  ;;  %v1223_v18 = vmul.f32 0.25, %v1197_v26  ;;  %v1224_v58 = vmul.f32 0.25, %v1200_v6  ;;  %v1253_v42 = vmul.f32 %v2874_v59, %v2874_v59  ;;  %v1254_v34 = vmul.f32 %v2877_v7, %v2877_v7  ;;  %1892 = vmatprep.subr.msk.bf16.mxu1 %vm275_vm1, %v2888_v37 }
  0xff   :  { %v2893_v60 = vsub.f32 %v3162_v47, %v1223_v18  ;;  %v2896_v38 = vsub.f32 %v3164_v50, %v1224_v58  ;;  %v1285_v56 = vsel %vm33_vm0, %v1253_v42, 0.0  ;;  %v1288_v6 = vsel %vm33_vm0, %v1254_v34, 0.0  ;;  %v3166_v47 = vld [vmem:[#allocation11_spill] sm:$0xff]  ;;  %v3168_v58 = vld [vmem:[#allocation12_spill] sm:$0xff] }
 0x100   :  { %545 = vadd.xlane.f32.xlu1 %v544_v3  ;;  %1286 = vadd.xlane.f32.xlu0 %v1285_v56  ;;  %v453_v10 = vpop.xlane.xlu0 %452  ;;  %v456_v26 = vpop.xlane.xlu1 %455 }
 0x101   :  { %3163 = vst [vmem:[#allocation9_spill] sm:$0xff] %v2893_v60  ;;  %3165 = vst [vmem:[#allocation10_spill] sm:$0xff] %v2896_v38  ;;  %v475_v7 = vmul.f32 0.25, %v453_v10  ;;  %v476_v59 = vmul.f32 0.25, %v456_v26  ;;  %v1255_v52 = vmul.f32 %v2893_v60, %v2893_v60  ;;  %v1256_v18 = vmul.f32 %v2896_v38, %v2896_v38 }
 0x103   :  { %v2905_v51 = vsub.f32 %v3166_v47, %v475_v7  ;;  %v2908_v50 = vsub.f32 %v3168_v58, %v476_v59  ;;  %v1291_v42 = vsel %vm33_vm0, %v1255_v52, 0.0  ;;  %v1294_v56 = vsel %vm33_vm0, %v1256_v18, 0.0  ;;  %v2919_v59 = vld [vmem:[%s3095_s1 + $0x6] sm:$0x3]  ;;  %v3172_v18 = vld [vmem:[#allocation14_spill] sm:$0xff] }
 0x104   :  { %1289 = vadd.xlane.f32.xlu1 %v1288_v6  ;;  %1292 = vadd.xlane.f32.xlu0 %v1291_v42  ;;  %v459_v3 = vpop.xlane.xlu0 %458  ;;  %v462_v34 = vpop.xlane.xlu1 %461  ;;  %v3170_v52 = vld [vmem:[#allocation13_spill] sm:$0xff] }
 0x105   :  { %3167 = vst [vmem:[#allocation11_spill] sm:$0xff] %v2905_v51  ;;  %3169 = vst [vmem:[#allocation12_spill] sm:$0xff] %v2908_v50  ;;  %v477_v10 = vmul.f32 0.25, %v459_v3  ;;  %v478_v26 = vmul.f32 0.25, %v462_v34  ;;  %v507_v60 = vmul.f32 %v2905_v51, %v2905_v51  ;;  %v508_v7 = vmul.f32 %v2908_v50, %v2908_v50  ;;  %1894 = vmatprep.subr.msk.bf16.mxu0 %vm275_vm1, %v2919_v59 }
 0x107   :  { %v2924_v6 = vsub.f32 %v3170_v52, %v477_v10  ;;  %v2927_v47 = vsub.f32 %v3172_v18, %v478_v26  ;;  %v547_v58 = vsel %vm33_vm0, %v507_v60, 0.0  ;;  %v550_v34 = vsel %vm33_vm0, %v508_v7, 0.0  ;;  %v3174_v52 = vld [vmem:[#allocation15_spill] sm:$0xff]  ;;  %v3176_v26 = vld [vmem:[#allocation16_spill] sm:$0xff] }
 0x108   :  { %1295 = vadd.xlane.f32.xlu1 %v1294_v56  ;;  %548 = vadd.xlane.f32.xlu0 %v547_v58  ;;  %v1203_v42 = vpop.xlane.xlu0 %1202  ;;  %v1206_v3 = vpop.xlane.xlu1 %1205 }
 0x109   :  { %3171 = vst [vmem:[#allocation13_spill] sm:$0xff] %v2924_v6  ;;  %3173 = vst [vmem:[#allocation14_spill] sm:$0xff] %v2927_v47  ;;  %v1225_v50 = vmul.f32 0.25, %v1203_v42  ;;  %v1226_v51 = vmul.f32 0.25, %v1206_v3  ;;  %v509_v38 = vmul.f32 %v2924_v6, %v2924_v6  ;;  %v510_v10 = vmul.f32 %v2927_v47, %v2927_v47 }
 0x10b   :  { %v2936_v44 = vsub.f32 %v3174_v52, %v1225_v50  ;;  %v2939_v18 = vsub.f32 %v3176_v26, %v1226_v51  ;;  %v553_v60 = vsel %vm33_vm0, %v509_v38, 0.0  ;;  %v556_v58 = vsel %vm33_vm0, %v510_v10, 0.0  ;;  %v3178_v52 = vld [vmem:[#allocation17_spill] sm:$0xff] }
 0x10c   :  { %551 = vadd.xlane.f32.xlu1 %v550_v34  ;;  %554 = vadd.xlane.f32.xlu0 %v553_v60  ;;  %v1209_v56 = vpop.xlane.xlu0 %1208  ;;  %v1212_v7 = vpop.xlane.xlu1 %1211 }
 0x10d   :  { %3175 = vst [vmem:[#allocation15_spill] sm:$0xff] %v2936_v44  ;;  %3177 = vst [vmem:[#allocation16_spill] sm:$0xff] %v2939_v18  ;;  %v1227_v42 = vmul.f32 0.25, %v1209_v56  ;;  %v1228_v3 = vmul.f32 0.25, %v1212_v7  ;;  %v1257_v6 = vmul.f32 %v2936_v44, %v2936_v44  ;;  %v1258_v50 = vmul.f32 %v2939_v18, %v2939_v18 }
 0x10f   :  { %v2948_v47 = vsub.f32 %v3178_v52, %v1227_v42  ;;  %v2951_v51 = vsub.f32 %v2547_v46, %v1228_v3  ;;  %v1297_v38 = vsel %vm33_vm0, %v1257_v6, 0.0  ;;  %v1300_v34 = vsel %vm33_vm0, %v1258_v50, 0.0 }
 0x110   :  { %557 = vadd.xlane.f32.xlu1 %v556_v58  ;;  %1298 = vadd.xlane.f32.xlu0 %v1297_v38 }
 0x111   :  { %3179 = vst [vmem:[#allocation17_spill] sm:$0xff] %v2948_v47  ;;  %3180 = vst [vmem:[#allocation26_spill] sm:$0xff] %v2951_v51  ;;  %v1259_v10 = vmul.f32 %v2948_v47, %v2948_v47  ;;  %v1260_v26 = vmul.f32 %v2951_v51, %v2951_v51 }
 0x113   :  { %v1303_v60 = vsel %vm33_vm0, %v1259_v10, 0.0  ;;  %v1306_v56 = vsel %vm33_vm0, %v1260_v26, 0.0 }
 0x114   :  { %1301 = vadd.xlane.f32.xlu1 %v1300_v34  ;;  %1304 = vadd.xlane.f32.xlu0 %v1303_v60 }
 0x118   :  { %1307 = vadd.xlane.f32.xlu1 %v1306_v56 }
 0x125   :  { %v132_v46 = vpop.xlane.xlu0 %131 }
 0x126   :  { %v178_v7 = vmul.f32 0.25, %v132_v46 }
 0x128   :  { %v194_v6 = vadd.f32 1e-06, %v178_v7 }
 0x129   :  { %v135_v58 = vpop.xlane.xlu1 %134  ;;  %v138_v42 = vpop.xlane.xlu0 %137 }
 0x12a   :  { %v179_v3 = vmul.f32 0.25, %v135_v58  ;;  %v180_v50 = vmul.f32 0.25, %v138_v42  ;;  %1898 = vrsqrt.f32 %v194_v6 }
 0x12c   :  { %v195_v52 = vadd.f32 1e-06, %v179_v3  ;;  %v196_v38 = vadd.f32 1e-06, %v180_v50 }
 0x12d   :  { %v141_v47 = vpop.xlane.xlu1 %140  ;;  %v888_v18 = vpop.xlane.xlu0 %887 }
 0x12e   :  { %1900 = vrsqrt.f32 %v195_v52  ;;  %v181_v51 = vmul.f32 0.25, %v141_v47  ;;  %v934_v10 = vmul.f32 0.25, %v888_v18 }
 0x12f   :  { %1902 = vrsqrt.f32 %v196_v38 }
 0x130   :  { %v197_v34 = vadd.f32 1e-06, %v181_v51  ;;  %v950_v60 = vadd.f32 1e-06, %v934_v10 }
 0x131   :  { %v891_v26 = vpop.xlane.xlu1 %890  ;;  %v894_v56 = vpop.xlane.xlu0 %893 }
 0x132   :  { %1904 = vrsqrt.f32 %v197_v34  ;;  %v935_v46 = vmul.f32 0.25, %v891_v26  ;;  %v936_v7 = vmul.f32 0.25, %v894_v56 }
 0x133   :  { %1906 = vrsqrt.f32 %v950_v60 }
 0x134   :  { %v951_v44 = vadd.f32 1e-06, %v935_v46  ;;  %v952_v58 = vadd.f32 1e-06, %v936_v7  ;;  %v1899_v3 = vpop.eup %1898 }
 0x135   :  { %v897_v42 = vpop.xlane.xlu1 %896  ;;  %v144_v6 = vpop.xlane.xlu0 %143  ;;  %v226_v10 = vmul.f32 %v1899_v3, %v2554_v39 }
 0x136   :  { %1908 = vrsqrt.f32 %v951_v44  ;;  %v937_v50 = vmul.f32 0.25, %v897_v42  ;;  %v182_v43 = vmul.f32 0.25, %v144_v6 }
 0x137   :  { %1910 = vrsqrt.f32 %v952_v58 }
 0x138   :  { %v1901_v52 = vpop.eup %1900  ;;  %v953_v47 = vadd.f32 1e-06, %v937_v50  ;;  %v198_v18 = vadd.f32 1e-06, %v182_v43  ;;  %v3181_v43 = vld [vmem:[#allocation18_spill] sm:$0xff] }
 0x139   :  { %v147_v51 = vpop.xlane.xlu1 %146  ;;  %v150_v38 = vpop.xlane.xlu0 %149  ;;  %v227_v34 = vmul.f32 %v1901_v52, %v2564_v63 }
 0x13a   :  { %v1903_v26 = vpop.eup %1902  ;;  %1912 = vrsqrt.f32 %v953_v47  ;;  %v183_v60 = vmul.f32 0.25, %v147_v51  ;;  %v184_v56 = vmul.f32 0.25, %v150_v38  ;;  %v658_v47 = vsel %vm275_vm1, %v2888_v37, 0 }
 0x13b   :  { %v242_v46 = vpack.c.bf16 %v227_v34, %v226_v10  ;;  %1914 = vrsqrt.f32 %v198_v18  ;;  %v228_v50 = vmul.f32 %v1903_v26, %v3181_v43 }
 0x13c   :  { %v1905_v7 = vpop.eup %1904  ;;  %v199_v44 = vadd.f32 1e-06, %v183_v60  ;;  %v200_v42 = vadd.f32 1e-06, %v184_v56 }
 0x13d   :  { %v153_v6 = vpop.xlane.xlu1 %152  ;;  %1757 = vmatprep.mubr.msk.bf16.mxu1 %vm33_vm0, %v242_v46  ;;  %v900_v58 = vpop.xlane.xlu0 %899  ;;  %v229_v49 = vmul.f32 %v1905_v7, %v2567_v14 }
 0x13e   :  { %v1907_v39 = vpop.eup %1906  ;;  %1916 = vrsqrt.f32 %v199_v44  ;;  %v185_v63 = vmul.f32 0.25, %v153_v6  ;;  %v938_v3 = vmul.f32 0.25, %v900_v58 }
 0x13f   :  { %v243_v52 = vpack.c.bf16 %v229_v49, %v228_v50  ;;  %1918 = vrsqrt.f32 %v200_v42  ;;  %v982_v26 = vmul.f32 %v1907_v39, %v2576_v2 }
 0x140   :  { %v1909_v51 = vpop.eup %1908  ;;  %v201_v18 = vadd.f32 1e-06, %v185_v63  ;;  %v954_v38 = vadd.f32 1e-06, %v938_v3  ;;  %v1408_v63 = vsel %vm275_vm1, %v2919_v59, 0 }
 0x141   :  { %v903_v10 = vpop.xlane.xlu1 %902  ;;  %1758 = vmatmul.mubr.msk.bf16.vlgmr.msra.gmra.mrb[0].mxu1 %vm33_vm0, %v243_v52  ;;  %v906_v34 = vpop.xlane.xlu0 %905  ;;  %v983_v14 = vmul.f32 %v1909_v51, %v2579_v5 }
 0x142   :  { %v1911_v60 = vpop.eup %1910  ;;  %1920 = vrsqrt.f32 %v201_v18  ;;  %v939_v56 = vmul.f32 0.25, %v903_v10  ;;  %v940_v46 = vmul.f32 0.25, %v906_v34  ;;  %1774 = vmatpush3.bf16.msra.mxu1 %v658_v47 }
 0x143   :  { %v998_v49 = vpack.c.bf16 %v983_v14, %v982_v26  ;;  %1922 = vrsqrt.f32 %v954_v38  ;;  %v984_v58 = vmul.f32 %v1911_v60, %v2588_v15 }
 0x144   :  { %v1913_v7 = vpop.eup %1912  ;;  %v955_v37 = vadd.f32 1e-06, %v939_v56  ;;  %v956_v44 = vadd.f32 1e-06, %v940_v46 }
 0x145   :  { %v909_v42 = vpop.xlane.xlu1 %908  ;;  %1793 = vmatprep.mubr.msk.bf16.mxu0 %vm33_vm0, %v998_v49  ;;  %v156_v6 = vpop.xlane.xlu0 %155  ;;  %v985_v2 = vmul.f32 %v1913_v7, %v2591_v9 }
 0x146   :  { %v1915_v43 = vpop.eup %1914  ;;  %1924 = vrsqrt.f32 %v955_v37  ;;  %v941_v5 = vmul.f32 0.25, %v909_v42  ;;  %v186_v50 = vmul.f32 0.25, %v156_v6 }
 0x147   :  { %v999_v39 = vpack.c.bf16 %v985_v2, %v984_v58  ;;  %1926 = vrsqrt.f32 %v956_v44  ;;  %v230_v15 = vmul.f32 %v1915_v43, %v2600_v0 }
 0x148   :  { %v1917_v3 = vpop.eup %1916  ;;  %v957_v52 = vadd.f32 1e-06, %v941_v5  ;;  %v202_v47 = vadd.f32 1e-06, %v186_v50 }
 0x149   :  { %v159_v51 = vpop.xlane.xlu1 %158  ;;  %1794 = vmatmul.mubr.msk.bf16.vlgmr.msra.gmra.mrb[0].mxu0 %vm33_vm0, %v999_v39  ;;  %v162_v18 = vpop.xlane.xlu0 %161  ;;  %v231_v9 = vmul.f32 %v1917_v3, %v2603_v13 }
 0x14a   :  { %v1919_v38 = vpop.eup %1918  ;;  %1928 = vrsqrt.f32 %v957_v52  ;;  %v187_v10 = vmul.f32 0.25, %v159_v51  ;;  %v188_v34 = vmul.f32 0.25, %v162_v18  ;;  %1810 = vmatpush3.bf16.msra.mxu0 %v1408_v63 }
 0x14b   :  { %v244_v26 = vpack.c.bf16 %v231_v9, %v230_v15  ;;  %1930 = vrsqrt.f32 %v202_v47  ;;  %v232_v49 = vmul.f32 %v1919_v38, %v2612_v22 }
 0x14c   :  { %v1921_v14 = vpop.eup %1920  ;;  %v203_v59 = vadd.f32 1e-06, %v187_v10  ;;  %v204_v60 = vadd.f32 1e-06, %v188_v34 }
 0x14d   :  { %v165_v56 = vpop.xlane.xlu1 %164  ;;  %1761 = vmatprep.mubr.msk.bf16.mxu1 %vm33_vm0, %v244_v26  ;;  %v912_v46 = vpop.xlane.xlu0 %911  ;;  %v233_v0 = vmul.f32 %v1921_v14, %v2615_v17 }
 0x14e   :  { %v1923_v7 = vpop.eup %1922  ;;  %1932 = vrsqrt.f32 %v203_v59  ;;  %v189_v13 = vmul.f32 0.25, %v165_v56  ;;  %v942_v37 = vmul.f32 0.25, %v912_v46 }
 0x14f   :  { %v245_v44 = vpack.c.bf16 %v233_v0, %v232_v49  ;;  %1934 = vrsqrt.f32 %v204_v60  ;;  %v986_v5 = vmul.f32 %v1923_v7, %v2624_v55 }
 0x150   :  { %v1925_v42 = vpop.eup %1924  ;;  %v205_v6 = vadd.f32 1e-06, %v189_v13  ;;  %v958_v58 = vadd.f32 1e-06, %v942_v37 }
 0x151   :  { %v915_v2 = vpop.xlane.xlu1 %914  ;;  %1762 = vmatmul.mubr.msk.bf16.gmra.mrb[4].mxu1 %vm33_vm0, %v245_v44  ;;  %v918_v43 = vpop.xlane.xlu0 %917  ;;  %v987_v50 = vmul.f32 %v1925_v42, %v2627_v21 }
 0x152   :  { %v1927_v22 = vpop.eup %1926  ;;  %1936 = vrsqrt.f32 %v205_v6  ;;  %v943_v17 = vmul.f32 0.25, %v915_v2  ;;  %v944_v39 = vmul.f32 0.25, %v918_v43 }
 0x153   :  { %v1000_v63 = vpack.c.bf16 %v987_v50, %v986_v5  ;;  %1938 = vrsqrt.f32 %v958_v58  ;;  %v988_v15 = vmul.f32 %v1927_v22, %v2636_v62 }
 0x154   :  { %v1929_v3 = vpop.eup %1928  ;;  %v959_v52 = vadd.f32 1e-06, %v943_v17  ;;  %v960_v47 = vadd.f32 1e-06, %v944_v39 }
 0x155   :  { %v921_v51 = vpop.xlane.xlu1 %920  ;;  %1797 = vmatprep.mubr.msk.bf16.mxu0 %vm33_vm0, %v1000_v63  ;;  %v168_v18 = vpop.xlane.xlu0 %167  ;;  %v989_v9 = vmul.f32 %v1929_v3, %v2639_v25  ;;  %v3182_v3 = vld [vmem:[#allocation19_spill] sm:$0xff] }
 0x156   :  { %v1931_v55 = vpop.eup %1930  ;;  %1940 = vrsqrt.f32 %v959_v52  ;;  %v945_v21 = vmul.f32 0.25, %v921_v51  ;;  %v190_v38 = vmul.f32 0.25, %v168_v18 }
 0x157   :  { %v1001_v10 = vpack.c.bf16 %v989_v9, %v988_v15  ;;  %1942 = vrsqrt.f32 %v960_v47  ;;  %v234_v56 = vmul.f32 %v1931_v55, %v2648_v31 }
 0x158   :  { %v1933_v34 = vpop.eup %1932  ;;  %v961_v26 = vadd.f32 1e-06, %v945_v21  ;;  %v206_v14 = vadd.f32 1e-06, %v190_v38 }
 0x159   :  { %v171_v59 = vpop.xlane.xlu1 %170  ;;  %1798 = vmatmul.mubr.msk.bf16.gmra.mrb[4].mxu0 %vm33_vm0, %v1001_v10  ;;  %v174_v60 = vpop.xlane.xlu0 %173  ;;  %v235_v46 = vmul.f32 %v1933_v34, %v2651_v29 }
 0x15a   :  { %v1935_v62 = vpop.eup %1934  ;;  %1944 = vrsqrt.f32 %v961_v26  ;;  %v191_v25 = vmul.f32 0.25, %v171_v59  ;;  %v192_v49 = vmul.f32 0.25, %v174_v60 }
 0x15b   :  { %v246_v0 = vpack.c.bf16 %v235_v46, %v234_v56  ;;  %1946 = vrsqrt.f32 %v206_v14  ;;  %v236_v6 = vmul.f32 %v1935_v62, %v2660_v8 }
 0x15c   :  { %v1937_v7 = vpop.eup %1936  ;;  %v207_v13 = vadd.f32 1e-06, %v191_v25  ;;  %v208_v37 = vadd.f32 1e-06, %v192_v49 }
 0x15d   :  { %v177_v44 = vpop.xlane.xlu1 %176  ;;  %1765 = vmatprep.mubr.msk.bf16.mxu1 %vm33_vm0, %v246_v0  ;;  %v924_v42 = vpop.xlane.xlu0 %923  ;;  %v237_v58 = vmul.f32 %v1937_v7, %v2663_v33 }
 0x15e   :  { %v1939_v31 = vpop.eup %1938  ;;  %1948 = vrsqrt.f32 %v207_v13  ;;  %v193_v29 = vmul.f32 0.25, %v177_v44  ;;  %v946_v2 = vmul.f32 0.25, %v924_v42 }
 0x15f   :  { %v247_v43 = vpack.c.bf16 %v237_v58, %v236_v6  ;;  %1950 = vrsqrt.f32 %v208_v37  ;;  %v990_v63 = vmul.f32 %v1939_v31, %v2672_v12 }
 0x160   :  { %v1941_v5 = vpop.eup %1940  ;;  %v209_v50 = vadd.f32 1e-06, %v193_v29  ;;  %v962_v22 = vadd.f32 1e-06, %v946_v2 }
 0x161   :  { %v927_v17 = vpop.xlane.xlu1 %926  ;;  %1766 = vmatmul.mubr.msk.bf16.gmra.mrb[8].mxu1 %vm33_vm0, %v247_v43  ;;  %v930_v39 = vpop.xlane.xlu0 %929  ;;  %v991_v52 = vmul.f32 %v1941_v5, %v3182_v3 }
 0x162   :  { %v1943_v8 = vpop.eup %1942  ;;  %1952 = vrsqrt.f32 %v209_v50  ;;  %v947_v33 = vmul.f32 0.25, %v927_v17  ;;  %v948_v47 = vmul.f32 0.25, %v930_v39 }
 0x163   :  { %v1002_v51 = vpack.c.bf16 %v991_v52, %v990_v63  ;;  %1954 = vrsqrt.f32 %v962_v22  ;;  %v992_v38 = vmul.f32 %v1943_v8, %v2687_v28 }
 0x164   :  { %v1945_v18 = vpop.eup %1944  ;;  %v963_v15 = vadd.f32 1e-06, %v947_v33  ;;  %v964_v9 = vadd.f32 1e-06, %v948_v47 }
 0x165   :  { %v933_v55 = vpop.xlane.xlu1 %932  ;;  %1801 = vmatprep.mubr.msk.bf16.mxu0 %vm33_vm0, %v1002_v51  ;;  %v513_v21 = vpop.xlane.xlu0 %512  ;;  %v993_v10 = vmul.f32 %v1945_v18, %v2690_v16 }
 0x166   :  { %v1947_v12 = vpop.eup %1946  ;;  %1956 = vrsqrt.f32 %v963_v15  ;;  %v949_v34 = vmul.f32 0.25, %v933_v55  ;;  %v559_v26 = vmul.f32 0.25, %v513_v21 }
 0x167   :  { %v1003_v14 = vpack.c.bf16 %v993_v10, %v992_v38  ;;  %1958 = vrsqrt.f32 %v964_v9  ;;  %v238_v25 = vmul.f32 %v1947_v12, %v2701_v20 }
 0x168   :  { %v1949_v59 = vpop.eup %1948  ;;  %v965_v60 = vadd.f32 1e-06, %v949_v34  ;;  %v575_v56 = vadd.f32 1e-06, %v559_v26 }
 0x169   :  { %v516_v46 = vpop.xlane.xlu1 %515  ;;  %1802 = vmatmul.mubr.msk.bf16.gmra.mrb[8].mxu0 %vm33_vm0, %v1003_v14  ;;  %v519_v62 = vpop.xlane.xlu0 %518  ;;  %v239_v49 = vmul.f32 %v1949_v59, %v2704_v32 }
 0x16a   :  { %v1951_v28 = vpop.eup %1950  ;;  %1960 = vrsqrt.f32 %v965_v60  ;;  %v560_v16 = vmul.f32 0.25, %v516_v46  ;;  %v561_v0 = vmul.f32 0.25, %v519_v62 }
 0x16b   :  { %v248_v7 = vpack.c.bf16 %v239_v49, %v238_v25  ;;  %1962 = vrsqrt.f32 %v575_v56  ;;  %v240_v58 = vmul.f32 %v1951_v28, %v2718_v24 }
 0x16c   :  { %v1953_v13 = vpop.eup %1952  ;;  %v576_v37 = vadd.f32 1e-06, %v560_v16  ;;  %v577_v44 = vadd.f32 1e-06, %v561_v0 }
 0x16d   :  { %v522_v42 = vpop.xlane.xlu1 %521  ;;  %1769 = vmatprep.mubr.msk.bf16.mxu1 %vm33_vm0, %v248_v7  ;;  %v1263_v6 = vpop.xlane.xlu0 %1262  ;;  %v241_v31 = vmul.f32 %v1953_v13, %v2721_v1 }
 0x16e   :  { %v1955_v20 = vpop.eup %1954  ;;  %1964 = vrsqrt.f32 %v576_v37  ;;  %v562_v32 = vmul.f32 0.25, %v522_v42  ;;  %v1309_v29 = vmul.f32 0.25, %v1263_v6 }
 0x16f   :  { %v249_v2 = vpack.c.bf16 %v241_v31, %v240_v58  ;;  %1966 = vrsqrt.f32 %v577_v44  ;;  %v994_v39 = vmul.f32 %v1955_v20, %v2730_v53 }
 0x170   :  { %v1957_v43 = vpop.eup %1956  ;;  %v578_v5 = vadd.f32 1e-06, %v562_v32  ;;  %v1325_v50 = vadd.f32 1e-06, %v1309_v29 }
 0x171   :  { %v1266_v22 = vpop.xlane.xlu1 %1265  ;;  %1770 = vmatmul.mubr.msk.bf16.gmra.mrb[12].mxu1 %vm33_vm0, %v249_v2  ;;  %v1269_v17 = vpop.xlane.xlu0 %1268  ;;  %v995_v63 = vmul.f32 %v1957_v43, %v2733_v23 }
 0x172   :  { %v1959_v24 = vpop.eup %1958  ;;  %1968 = vrsqrt.f32 %v578_v5  ;;  %v1310_v1 = vmul.f32 0.25, %v1266_v22  ;;  %v1311_v3 = vmul.f32 0.25, %v1269_v17 }
 0x173   :  { %v1004_v52 = vpack.c.bf16 %v995_v63, %v994_v39  ;;  %1970 = vrsqrt.f32 %v1325_v50  ;;  %v996_v15 = vmul.f32 %v1959_v24, %v2742_v45 }
 0x174   :  { %v1961_v8 = vpop.eup %1960  ;;  %v1326_v33 = vadd.f32 1e-06, %v1310_v1  ;;  %v1327_v47 = vadd.f32 1e-06, %v1311_v3 }
 0x175   :  { %v1272_v51 = vpop.xlane.xlu1 %1271  ;;  %1805 = vmatprep.mubr.msk.bf16.mxu0 %vm33_vm0, %v1004_v52  ;;  %v525_v18 = vpop.xlane.xlu0 %524  ;;  %v997_v9 = vmul.f32 %v1961_v8, %v2745_v57 }
 0x176   :  { %v1963_v53 = vpop.eup %1962  ;;  %1972 = vrsqrt.f32 %v1326_v33  ;;  %v1312_v23 = vmul.f32 0.25, %v1272_v51  ;;  %v563_v55 = vmul.f32 0.25, %v525_v18 }
 0x177   :  { %v1005_v21 = vpack.c.bf16 %v997_v9, %v996_v15  ;;  %1974 = vrsqrt.f32 %v1327_v47  ;;  %v607_v14 = vmul.f32 %v1963_v53, %v2754_v36 }
 0x178   :  { %v1965_v38 = vpop.eup %1964  ;;  %v1328_v10 = vadd.f32 1e-06, %v1312_v23  ;;  %v579_v12 = vadd.f32 1e-06, %v563_v55 }
 0x179   :  { %v528_v34 = vpop.xlane.xlu1 %527  ;;  %1806 = vmatmul.mubr.msk.bf16.gmra.mrb[12].mxu0 %vm33_vm0, %v1005_v21  ;;  %v531_v26 = vpop.xlane.xlu0 %530  ;;  %v608_v59 = vmul.f32 %v1965_v38, %v2757_v61 }
 0x17a   :  { %v1967_v45 = vpop.eup %1966  ;;  %1976 = vrsqrt.f32 %v1328_v10  ;;  %v564_v57 = vmul.f32 0.25, %v528_v34  ;;  %v565_v60 = vmul.f32 0.25, %v531_v26 }
 0x17b   :  { %v623_v56 = vpack.c.bf16 %v608_v59, %v607_v14  ;;  %1978 = vrsqrt.f32 %v579_v12  ;;  %v609_v49 = vmul.f32 %v1967_v45, %v2766_v40 }
 0x17c   :  { %v1969_v46 = vpop.eup %1968  ;;  %v580_v62 = vadd.f32 1e-06, %v564_v57  ;;  %v581_v25 = vadd.f32 1e-06, %v565_v60  ;;  %v3183_v60 = vld [vmem:[#allocation20_spill] sm:$0xff] }
 0x17d   :  { %v610_v28 = vmul.f32 %v1969_v46, %v2769_v4  ;;  %v534_v16 = vpop.xlane.xlu1 %533  ;;  %1775 = vmatprep.mubr.msk.bf16.mxu1 %vm33_vm0, %v623_v56  ;;  %v1275_v0 = vpop.xlane.xlu0 %1274  ;;  %v3184_v46 = vld [vmem:[#allocation21_spill] sm:$0xff] }
 0x17e   :  { %v1971_v36 = vpop.eup %1970  ;;  %1980 = vrsqrt.f32 %v580_v62  ;;  %v566_v61 = vmul.f32 0.25, %v534_v16  ;;  %v1313_v7 = vmul.f32 0.25, %v1275_v0 }
 0x17f   :  { %v624_v13 = vpack.c.bf16 %v610_v28, %v609_v49  ;;  %1982 = vrsqrt.f32 %v581_v25  ;;  %v1357_v40 = vmul.f32 %v1971_v36, %v2778_v54 }
 0x180   :  { %v1973_v37 = vpop.eup %1972  ;;  %v582_v44 = vadd.f32 1e-06, %v566_v61  ;;  %v1329_v42 = vadd.f32 1e-06, %v1313_v7  ;;  %v3185_v7 = vld [vmem:[#allocation22_spill] sm:$0xff] }
 0x181   :  { %v1278_v6 = vpop.xlane.xlu1 %1277  ;;  %1776 = vmatmul.mubr.msk.bf16.vlgmr.msra.gmra.mrb[0].mxu1 %vm33_vm0, %v624_v13  ;;  %v1281_v58 = vpop.xlane.xlu0 %1280  ;;  %v1358_v4 = vmul.f32 %v1973_v37, %v2781_v11  ;;  %v3186_v37 = vld [vmem:[#allocation23_spill] sm:$0xff] }
 0x182   :  { %v1975_v31 = vpop.eup %1974  ;;  %1984 = vrsqrt.f32 %v582_v44  ;;  %v1314_v20 = vmul.f32 0.25, %v1278_v6  ;;  %v1315_v32 = vmul.f32 0.25, %v1281_v58 }
 0x183   :  { %v1373_v29 = vpack.c.bf16 %v1358_v4, %v1357_v40  ;;  %1986 = vrsqrt.f32 %v1329_v42  ;;  %v1359_v50 = vmul.f32 %v1975_v31, %v2790_v41 }
 0x184   :  { %v1977_v2 = vpop.eup %1976  ;;  %v1330_v43 = vadd.f32 1e-06, %v1314_v20  ;;  %v1331_v5 = vadd.f32 1e-06, %v1315_v32 }
 0x185   :  { %v1360_v22 = vmul.f32 %v1977_v2, %v2793_v19  ;;  %v1284_v17 = vpop.xlane.xlu1 %1283  ;;  %1811 = vmatprep.mubr.msk.bf16.mxu0 %vm33_vm0, %v1373_v29  ;;  %v537_v39 = vpop.xlane.xlu0 %536  ;;  %v3187_v2 = vld [vmem:[#allocation24_spill] sm:$0xff] }
 0x186   :  { %v1979_v54 = vpop.eup %1978  ;;  %1988 = vrsqrt.f32 %v1330_v43  ;;  %v1316_v11 = vmul.f32 0.25, %v1284_v17  ;;  %v567_v63 = vmul.f32 0.25, %v537_v39 }
 0x187   :  { %v1374_v24 = vpack.c.bf16 %v1360_v22, %v1359_v50  ;;  %1990 = vrsqrt.f32 %v1331_v5  ;;  %v611_v41 = vmul.f32 %v1979_v54, %v2802_v30  ;;  %v3188_v5 = vld [vmem:[#allocation25_spill] sm:$0xff] }
 0x188   :  { %v1981_v1 = vpop.eup %1980  ;;  %v1332_v3 = vadd.f32 1e-06, %v1316_v11  ;;  %v583_v52 = vadd.f32 1e-06, %v567_v63 }
 0x189   :  { %v540_v8 = vpop.xlane.xlu1 %539  ;;  %1812 = vmatmul.mubr.msk.bf16.vlgmr.msra.gmra.mrb[0].mxu0 %vm33_vm0, %v1374_v24  ;;  %v543_v33 = vpop.xlane.xlu0 %542  ;;  %v612_v19 = vmul.f32 %v1981_v1, %v2805_v27 }
 0x18a   :  { %v1983_v47 = vpop.eup %1982  ;;  %1992 = vrsqrt.f32 %v1332_v3  ;;  %v568_v51 = vmul.f32 0.25, %v540_v8  ;;  %v569_v18 = vmul.f32 0.25, %v543_v33  ;;  %v3190_v33 = vld [vmem:[#allocation6_spill] sm:$0xff] }
 0x18b   :  { %v625_v15 = vpack.c.bf16 %v612_v19, %v611_v41  ;;  %1994 = vrsqrt.f32 %v583_v52  ;;  %v613_v38 = vmul.f32 %v1983_v47, %v2814_v48  ;;  %v3189_v52 = vld [vmem:[#allocation5_spill] sm:$0xff] }
 0x18c   :  { %v1985_v9 = vpop.eup %1984  ;;  %v584_v53 = vadd.f32 1e-06, %v568_v51  ;;  %v585_v23 = vadd.f32 1e-06, %v569_v18 }
 0x18d   :  { %v546_v55 = vpop.xlane.xlu1 %545  ;;  %1779 = vmatprep.mubr.msk.bf16.mxu1 %vm33_vm0, %v625_v15  ;;  %v1287_v21 = vpop.xlane.xlu0 %1286  ;;  %v614_v10 = vmul.f32 %v1985_v9, %v2817_v35 }
 0x18e   :  { %v1987_v30 = vpop.eup %1986  ;;  %1996 = vrsqrt.f32 %v584_v53  ;;  %v570_v27 = vmul.f32 0.25, %v546_v55  ;;  %v1317_v12 = vmul.f32 0.25, %v1287_v21  ;;  %v3191_v21 = vld [vmem:[#allocation7_spill] sm:$0xff] }
 0x18f   :  { %v626_v34 = vpack.c.bf16 %v614_v10, %v613_v38  ;;  %1998 = vrsqrt.f32 %v585_v23  ;;  %v1361_v56 = vmul.f32 %v1987_v30, %v3183_v60  ;;  %v3192_v10 = vld [vmem:[#allocation8_spill] sm:$0xff]  ;;  %v3193_v60 = vld [vmem:[#allocation9_spill] sm:$0xff] }
 0x190   :  { %v1989_v26 = vpop.eup %1988  ;;  %v586_v14 = vadd.f32 1e-06, %v570_v27  ;;  %v1333_v59 = vadd.f32 1e-06, %v1317_v12 }
 0x191   :  { %v1290_v45 = vpop.xlane.xlu1 %1289  ;;  %1780 = vmatmul.mubr.msk.bf16.gmra.mrb[4].mxu1 %vm33_vm0, %v626_v34  ;;  %v1293_v57 = vpop.xlane.xlu0 %1292  ;;  %v1362_v62 = vmul.f32 %v1989_v26, %v3184_v46  ;;  %v3194_v46 = vld [vmem:[#allocation10_spill] sm:$0xff] }
 0x192   :  { %v1991_v48 = vpop.eup %1990  ;;  %2000 = vrsqrt.f32 %v586_v14  ;;  %v1318_v35 = vmul.f32 0.25, %v1290_v45  ;;  %v1319_v25 = vmul.f32 0.25, %v1293_v57 }
 0x193   :  { %v1375_v49 = vpack.c.bf16 %v1362_v62, %v1361_v56  ;;  %2002 = vrsqrt.f32 %v1333_v59  ;;  %v1363_v13 = vmul.f32 %v1991_v48, %v3185_v7 }
 0x194   :  { %v1993_v28 = vpop.eup %1992  ;;  %v1334_v16 = vadd.f32 1e-06, %v1318_v35  ;;  %v1335_v0 = vadd.f32 1e-06, %v1319_v25 }
 0x195   :  { %v1296_v36 = vpop.xlane.xlu1 %1295  ;;  %1815 = vmatprep.mubr.msk.bf16.mxu0 %vm33_vm0, %v1375_v49  ;;  %v549_v61 = vpop.xlane.xlu0 %548  ;;  %v1364_v44 = vmul.f32 %v1993_v28, %v3186_v37 }
 0x196   :  { %v1995_v42 = vpop.eup %1994  ;;  %2004 = vrsqrt.f32 %v1334_v16  ;;  %v1320_v6 = vmul.f32 0.25, %v1296_v36  ;;  %v571_v58 = vmul.f32 0.25, %v549_v61  ;;  %v3195_v16 = vld [vmem:[#allocation11_spill] sm:$0xff]  ;;  %v3196_v36 = vld [vmem:[#allocation12_spill] sm:$0xff] }
 0x197   :  { %v1376_v40 = vpack.c.bf16 %v1364_v44, %v1363_v13  ;;  %2006 = vrsqrt.f32 %v1335_v0  ;;  %v615_v43 = vmul.f32 %v1995_v42, %v3187_v2  ;;  %v3197_v44 = vld [vmem:[#allocation13_spill] sm:$0xff] }
 0x198   :  { %v1997_v4 = vpop.eup %1996  ;;  %v1336_v31 = vadd.f32 1e-06, %v1320_v6  ;;  %v587_v20 = vadd.f32 1e-06, %v571_v58  ;;  %v3198_v6 = vld [vmem:[#allocation14_spill] sm:$0xff] }
 0x199   :  { %v552_v32 = vpop.xlane.xlu1 %551  ;;  %1816 = vmatmul.mubr.msk.bf16.gmra.mrb[4].mxu0 %vm33_vm0, %v1376_v40  ;;  %v555_v29 = vpop.xlane.xlu0 %554  ;;  %v616_v50 = vmul.f32 %v1997_v4, %v3188_v5 }
 0x19a   :  { %v1999_v22 = vpop.eup %1998  ;;  %2008 = vrsqrt.f32 %v1336_v31  ;;  %v572_v17 = vmul.f32 0.25, %v552_v32  ;;  %v573_v39 = vmul.f32 0.25, %v555_v29  ;;  %v3200_v29 = vld [vmem:[#allocation16_spill] sm:$0xff] }
 0x19b   :  { %v627_v54 = vpack.c.bf16 %v616_v50, %v615_v43  ;;  %2010 = vrsqrt.f32 %v587_v20  ;;  %v617_v8 = vmul.f32 %v1999_v22, %v3189_v52  ;;  %v3199_v20 = vld [vmem:[#allocation15_spill] sm:$0xff]  ;;  %v3201_v22 = vld [vmem:[#allocation17_spill] sm:$0xff] }
 0x19c   :  { %v2001_v11 = vpop.eup %2000  ;;  %v588_v63 = vadd.f32 1e-06, %v572_v17  ;;  %v589_v24 = vadd.f32 1e-06, %v573_v39  ;;  %v3202_v39 = vld [vmem:[#allocation26_spill] sm:$0xff] }
 0x19d   :  { %v558_v1 = vpop.xlane.xlu1 %557  ;;  %1783 = vmatprep.mubr.msk.bf16.mxu1 %vm33_vm0, %v627_v54  ;;  %v1299_v3 = vpop.xlane.xlu0 %1298  ;;  %v618_v41 = vmul.f32 %v2001_v11, %v3190_v33  ;;  %v3064_v52 = vld [vmem:[%s3096_s2] ss:$0 sm:$0xff]  ;;  %s2082_s2 = smov [#allocation2]  }
 0x19e   :  { %v2003_v19 = vpop.eup %2002  ;;  %2012 = vrsqrt.f32 %v588_v63  ;;  %v574_v47 = vmul.f32 0.25, %v558_v1  ;;  %v1321_v51 = vmul.f32 0.25, %v1299_v3  ;;  %s1624_s13 = sshll.u32 %s2082_s2, 4  ;;  %s1625_s13 = int_to_ptr.vmem [resolvable:$true] %s1624_s13 }
 0x19f   :  { %v628_v18 = vpack.c.bf16 %v618_v41, %v617_v8  ;;  %2014 = vrsqrt.f32 %v589_v24  ;;  %v1365_v38 = vmul.f32 %v2003_v19, %v3191_v21  ;;  %s2058_s14 = scalar_lea.vmem %s1625_s13, 2048  ;;  %p2063_p1 = scmp.lt.s32.totalorder %s1625_s13, %s1625_s13 }
 0x1a0   :  { %v2005_v15 = vpop.eup %2004  ;;  %v590_v9 = vadd.f32 1e-06, %v574_v47  ;;  %v1337_v53 = vadd.f32 1e-06, %v1321_v51  ;;  %p2059_p0 = scmp.ne.s32.totalorder %s1625_s13, %s2058_s14  ;;  %p2064_p2 = scmp.lt.s32.totalorder %s2058_s14, %s2058_s14 }
 0x1a1   :  { %v1302_v23 = vpop.xlane.xlu1 %1301  ;;  %1784 = vmatmul.mubr.msk.bf16.gmra.mrb[8].mxu1 %vm33_vm0, %v628_v18  ;;  %v1305_v55 = vpop.xlane.xlu0 %1304  ;;  %v1366_v30 = vmul.f32 %v2005_v15, %v3192_v10 }
 0x1a2   :  { %v2007_v27 = vpop.eup %2006  ;;  %2016 = vrsqrt.f32 %v590_v9  ;;  %v1322_v12 = vmul.f32 0.25, %v1302_v23  ;;  %v1323_v34 = vmul.f32 0.25, %v1305_v55  ;;  %p2065_p3 = por %p2064_p2, %p2063_p1 }
 0x1a3   :  { %v1377_v26 = vpack.c.bf16 %v1366_v30, %v1365_v38  ;;  %2018 = vrsqrt.f32 %v1337_v53  ;;  %v1367_v56 = vmul.f32 %v2007_v27, %v3193_v60 }
 0x1a4   :  { %v2009_v14 = vpop.eup %2008  ;;  %v1338_v59 = vadd.f32 1e-06, %v1322_v12  ;;  %v1339_v45 = vadd.f32 1e-06, %v1323_v34  ;;  %p2066_p4 = pnand %p2065_p3, %p2059_p0 }
 0x1a5   :  { %v1308_v57 = vpop.xlane.xlu1 %1307  ;;  %1819 = vmatprep.mubr.msk.bf16.mxu0 %vm33_vm0, %v1377_v26  ;;  %v1368_v62 = vmul.f32 %v2009_v14, %v3194_v46  ;;  %v2011_v48 = vpop.eup %2010 }
 0x1a6   :  { %2020 = vrsqrt.f32 %v1338_v59  ;;  %v1324_v35 = vmul.f32 0.25, %v1308_v57  ;;  %v619_v0 = vmul.f32 %v2011_v48, %v3195_v16 }
 0x1a7   :  { %v1378_v25 = vpack.c.bf16 %v1368_v62, %v1367_v56  ;;  %2022 = vrsqrt.f32 %v1339_v45 }
 0x1a8   :  { %v2013_v49 = vpop.eup %2012  ;;  %v1340_v28 = vadd.f32 1e-06, %v1324_v35 }
 0x1a9   :  { %1820 = vmatmul.mubr.msk.bf16.gmra.mrb[8].mxu0 %vm33_vm0, %v1378_v25  ;;  %v620_v61 = vmul.f32 %v2013_v49, %v3196_v36  ;;  %v2015_v7 = vpop.eup %2014 }
 0x1aa   :  { %2024 = vrsqrt.f32 %v1340_v28  ;;  %v621_v42 = vmul.f32 %v2015_v7, %v3197_v44 }
 0x1ab   :  { %v629_v13 = vpack.c.bf16 %v620_v61, %v619_v0 }
 0x1ac   :  { %v2017_v37 = vpop.eup %2016 }
 0x1ad   :  { %1787 = vmatprep.mubr.msk.bf16.mxu1 %vm33_vm0, %v629_v13  ;;  %v622_v58 = vmul.f32 %v2017_v37, %v3198_v6  ;;  %v2019_v40 = vpop.eup %2018 }
 0x1ae   :  { %v1369_v32 = vmul.f32 %v2019_v40, %v3199_v20 }
 0x1af   :  { %v630_v4 = vpack.c.bf16 %v622_v58, %v621_v42 }
 0x1b0   :  { %v2021_v31 = vpop.eup %2020 }
 0x1b1   :  { %1788 = vmatmul.mubr.msk.bf16.gmra.mrb[12].mxu1 %vm33_vm0, %v630_v4  ;;  %v1370_v2 = vmul.f32 %v2021_v31, %v3200_v29  ;;  %v2023_v43 = vpop.eup %2022 }
 0x1b2   :  { %v1371_v17 = vmul.f32 %v2023_v43, %v3201_v22 }
 0x1b3   :  { %v1379_v5 = vpack.c.bf16 %v1370_v2, %v1369_v32 }
 0x1b4   :  { %v2025_v50 = vpop.eup %2024 }
 0x1b5   :  { %1823 = vmatprep.mubr.msk.bf16.mxu0 %vm33_vm0, %v1379_v5  ;;  %v1372_v54 = vmul.f32 %v2025_v50, %v3202_v39 }
 0x1b7   :  { %v1380_v11 = vpack.c.bf16 %v1372_v54, %v1371_v17 }
 0x1b9   :  { %1824 = vmatmul.mubr.msk.bf16.gmra.mrb[12].mxu0 %vm33_vm0, %v1380_v11 }
 0x254   :  { %v1777_v63 = vpop.f32.mrb[0].mxu1 }
 0x255   :  { %v694_v24 = vpop.f32.mrb[1].mxu1  ;;  %v1827_v8 = vadd.f32 %v1777_v63, %v3064_v52 }
 0x256   :  { %v1778_v1 = vpop.f32.mrb[2].mxu1  ;;  %v1829_v33 = vadd.f32 %v3064_v52, %v694_v24 }
 0x257   :  { %v697_v3 = vpop.f32.mrb[3].mxu1  ;;  %v1831_v19 = vadd.f32 %v1778_v1, %v3064_v52 }
 0x258   :  { %v1833_v18 = vadd.f32 %v3064_v52, %v697_v3 }
 0x25c   :  { %v1813_v41 = vpop.f32.mrb[0].mxu0 }
 0x25d   :  { %v1828_v47 = vadd.f32 %v1827_v8, %v1813_v41  ;;  %v1444_v51 = vpop.f32.mrb[1].mxu0 }
 0x25e   :  { %v1830_v15 = vadd.f32 %v1829_v33, %v1444_v51  ;;  %v1814_v9 = vpop.f32.mrb[2].mxu0 }
 0x25f   :  { %v1541_v53 = vmul.f32 0.70710677, %v1828_v47  ;;  %v1832_v23 = vadd.f32 %v1831_v19, %v1814_v9  ;;  %v1447_v55 = vpop.f32.mrb[3].mxu0  ;;  %v1525_v57 = vmul.f32 0.5, %v1828_v47 }
 0x260   :  { %v1539_v21 = vmul.f32 0.70710677, %v1830_v15  ;;  %v1834_v38 = vadd.f32 %v1833_v18, %v1447_v55  ;;  %v1523_v56 = vmul.f32 0.5, %v1830_v15 }
 0x261   :  { %2026 = verf.f32 %v1541_v53  ;;  %v1542_v10 = vmul.f32 0.70710677, %v1832_v23  ;;  %v1526_v25 = vmul.f32 0.5, %v1832_v23 }
 0x262   :  { %2028 = verf.f32 %v1539_v21  ;;  %v1540_v30 = vmul.f32 0.70710677, %v1834_v38  ;;  %v1524_v49 = vmul.f32 0.5, %v1834_v38 }
 0x263   :  { %2030 = verf.f32 %v1542_v10 }
 0x264   :  { %2032 = verf.f32 %v1540_v30  ;;  %v1781_v27 = vpop.f32.mrb[4].mxu1 }
 0x265   :  { %v710_v12 = vpop.f32.mrb[5].mxu1  ;;  %v1835_v59 = vadd.f32 %v1781_v27, %v3064_v52 }
 0x266   :  { %v1782_v34 = vpop.f32.mrb[6].mxu1  ;;  %v1837_v46 = vadd.f32 %v3064_v52, %v710_v12 }
 0x267   :  { %v713_v26 = vpop.f32.mrb[7].mxu1  ;;  %v1839_v7 = vadd.f32 %v1782_v34, %v3064_v52 }
 0x268   :  { %v1841_v6 = vadd.f32 %v3064_v52, %v713_v26 }
 0x26b   :  { %v2027_v14 = vpop.eup %2026 }
 0x26c   :  { %v2029_v45 = vpop.eup %2028  ;;  %v1573_v60 = vadd.f32 1.0, %v2027_v14  ;;  %v1817_v62 = vpop.f32.mrb[4].mxu0 }
 0x26d   :  { %v2031_v48 = vpop.eup %2030  ;;  %v1571_v35 = vadd.f32 1.0, %v2029_v45  ;;  %v1836_v28 = vadd.f32 %v1835_v59, %v1817_v62  ;;  %v1460_v16 = vpop.f32.mrb[5].mxu0 }
 0x26e   :  { %v2033_v0 = vpop.eup %2032  ;;  %v1589_v36 = vmul.f32 %v1573_v60, %v1525_v57  ;;  %v1574_v61 = vadd.f32 1.0, %v2031_v48  ;;  %v1838_v13 = vadd.f32 %v1837_v46, %v1460_v16  ;;  %v1818_v37 = vpop.f32.mrb[6].mxu0 }
 0x26f   :  { %v1587_v44 = vmul.f32 %v1571_v35, %v1523_v56  ;;  %v1572_v42 = vadd.f32 1.0, %v2033_v0  ;;  %v1545_v58 = vmul.f32 0.70710677, %v1836_v28  ;;  %v1463_v40 = vpop.f32.mrb[7].mxu0  ;;  %v1840_v20 = vadd.f32 %v1839_v7, %v1818_v37 }
 0x270   :  { %1605 = vst [vmem:[#allocation2 + $0x10] sm:$0xff] %v1589_v36  ;;  %v1590_v4 = vmul.f32 %v1574_v61, %v1526_v25  ;;  %v1543_v31 = vmul.f32 0.70710677, %v1838_v13  ;;  %v1842_v29 = vadd.f32 %v1841_v6, %v1463_v40  ;;  %v1529_v63 = vmul.f32 0.5, %v1836_v28 }
 0x271   :  { %1603 = vst [vmem:[#allocation2] sm:$0xff] %v1587_v44  ;;  %v1588_v32 = vmul.f32 %v1572_v42, %v1524_v49  ;;  %2034 = verf.f32 %v1545_v58  ;;  %v1546_v2 = vmul.f32 0.70710677, %v1840_v20  ;;  %v1527_v8 = vmul.f32 0.5, %v1838_v13 }
 0x272   :  { %1606 = vst [vmem:[#allocation2 + $0x18] sm:$0xff] %v1590_v4  ;;  %2036 = verf.f32 %v1543_v31  ;;  %v1544_v43 = vmul.f32 0.70710677, %v1842_v29  ;;  %v1530_v18 = vmul.f32 0.5, %v1840_v20  ;;  %v1528_v27 = vmul.f32 0.5, %v1842_v29 }
 0x273   :  { %1604 = vst [vmem:[#allocation2 + $0x8] sm:$0xff] %v1588_v32  ;;  %2038 = verf.f32 %v1546_v2 }
 0x274   :  { %v1785_v5 = vpop.f32.mrb[8].mxu1  ;;  %2040 = verf.f32 %v1544_v43 }
 0x275   :  { %v726_v50 = vpop.f32.mrb[9].mxu1  ;;  %v1843_v54 = vadd.f32 %v1785_v5, %v3064_v52 }
 0x276   :  { %v1786_v22 = vpop.f32.mrb[10].mxu1  ;;  %v1845_v1 = vadd.f32 %v3064_v52, %v726_v50 }
 0x277   :  { %v729_v17 = vpop.f32.mrb[11].mxu1  ;;  %v1847_v15 = vadd.f32 %v1786_v22, %v3064_v52 }
 0x278   :  { %v1849_v38 = vadd.f32 %v3064_v52, %v729_v17 }
 0x27b   :  { %v2035_v39 = vpop.eup %2034 }
 0x27c   :  { %v2037_v11 = vpop.eup %2036  ;;  %v1577_v24 = vadd.f32 1.0, %v2035_v39  ;;  %v1821_v3 = vpop.f32.mrb[8].mxu0 }
 0x27d   :  { %v1575_v33 = vadd.f32 1.0, %v2037_v11  ;;  %v1844_v41 = vadd.f32 %v1843_v54, %v1821_v3  ;;  %v1476_v19 = vpop.f32.mrb[9].mxu0  ;;  %v2039_v47 = vpop.eup %2038 }
 0x27e   :  { %v1593_v51 = vmul.f32 %v1577_v24, %v1529_v63  ;;  %v1846_v9 = vadd.f32 %v1845_v1, %v1476_v19  ;;  %v1822_v53 = vpop.f32.mrb[10].mxu0  ;;  %v2041_v23 = vpop.eup %2040  ;;  %v1578_v21 = vadd.f32 1.0, %v2039_v47 }
 0x27f   :  { %v1591_v55 = vmul.f32 %v1575_v33, %v1527_v8  ;;  %v1549_v10 = vmul.f32 0.70710677, %v1844_v41  ;;  %v1479_v30 = vpop.f32.mrb[11].mxu0  ;;  %v1576_v12 = vadd.f32 1.0, %v2041_v23  ;;  %v1848_v26 = vadd.f32 %v1847_v15, %v1822_v53 }
 0x280   :  { %1609 = vst [vmem:[#allocation2 + $0x30] sm:$0xff] %v1593_v51  ;;  %v1547_v34 = vmul.f32 0.70710677, %v1846_v9  ;;  %v1594_v14 = vmul.f32 %v1578_v21, %v1530_v18  ;;  %v1850_v59 = vadd.f32 %v1849_v38, %v1479_v30  ;;  %v1533_v28 = vmul.f32 0.5, %v1844_v41 }
 0x281   :  { %1607 = vst [vmem:[#allocation2 + $0x20] sm:$0xff] %v1591_v55  ;;  %2042 = verf.f32 %v1549_v10  ;;  %v1592_v45 = vmul.f32 %v1576_v12, %v1528_v27  ;;  %v1550_v57 = vmul.f32 0.70710677, %v1848_v26  ;;  %v1531_v61 = vmul.f32 0.5, %v1846_v9 }
 0x282   :  { %2044 = verf.f32 %v1547_v34  ;;  %1610 = vst [vmem:[#allocation2 + $0x38] sm:$0xff] %v1594_v14  ;;  %v1548_v60 = vmul.f32 0.70710677, %v1850_v59  ;;  %v1534_v6 = vmul.f32 0.5, %v1848_v26  ;;  %v1532_v5 = vmul.f32 0.5, %v1850_v59 }
 0x283   :  { %1608 = vst [vmem:[#allocation2 + $0x28] sm:$0xff] %v1592_v45  ;;  %2046 = verf.f32 %v1550_v57 }
 0x284   :  { %v1789_v56 = vpop.f32.mrb[12].mxu1  ;;  %2048 = verf.f32 %v1548_v60 }
 0x285   :  { %v742_v46 = vpop.f32.mrb[13].mxu1  ;;  %v1851_v25 = vadd.f32 %v1789_v56, %v3064_v52 }
 0x286   :  { %v1790_v62 = vpop.f32.mrb[14].mxu1  ;;  %v1853_v0 = vadd.f32 %v3064_v52, %v742_v46 }
 0x287   :  { %v745_v48 = vpop.f32.mrb[15].mxu1  ;;  %v1855_v58 = vadd.f32 %v1790_v62, %v3064_v52 }
 0x288   :  { %v1857_v29 = vadd.f32 %v3064_v52, %v745_v48 }
 0x28b   :  { %v2043_v35 = vpop.eup %2042 }
 0x28c   :  { %v2045_v49 = vpop.eup %2044  ;;  %v1581_v16 = vadd.f32 1.0, %v2043_v35  ;;  %v1825_v36 = vpop.f32.mrb[12].mxu0 }
 0x28d   :  { %v1579_v7 = vadd.f32 1.0, %v2045_v49  ;;  %v1852_v13 = vadd.f32 %v1851_v25, %v1825_v36  ;;  %v1492_v37 = vpop.f32.mrb[13].mxu0  ;;  %v2047_v44 = vpop.eup %2046 }
 0x28e   :  { %v1597_v42 = vmul.f32 %v1581_v16, %v1533_v28  ;;  %v1854_v40 = vadd.f32 %v1853_v0, %v1492_v37  ;;  %v1826_v4 = vpop.f32.mrb[14].mxu0  ;;  %v2049_v31 = vpop.eup %2048  ;;  %v1582_v32 = vadd.f32 1.0, %v2047_v44 }
 0x28f   :  { %v1595_v20 = vmul.f32 %v1579_v7, %v1531_v61  ;;  %v1553_v2 = vmul.f32 0.70710677, %v1852_v13  ;;  %v1495_v43 = vpop.f32.mrb[15].mxu0  ;;  %v1580_v50 = vadd.f32 1.0, %v2049_v31  ;;  %v1856_v17 = vadd.f32 %v1855_v58, %v1826_v4 }
 0x290   :  { %1613 = vst [vmem:[#allocation2 + $0x50] sm:$0xff] %v1597_v42  ;;  %v1551_v22 = vmul.f32 0.70710677, %v1854_v40  ;;  %v1598_v39 = vmul.f32 %v1582_v32, %v1534_v6  ;;  %v1858_v54 = vadd.f32 %v1857_v29, %v1495_v43  ;;  %v1537_v3 = vmul.f32 0.5, %v1852_v13 }
 0x291   :  { %1611 = vst [vmem:[#allocation2 + $0x40] sm:$0xff] %v1595_v20  ;;  %2050 = verf.f32 %v1553_v2  ;;  %v1596_v11 = vmul.f32 %v1580_v50, %v1532_v5  ;;  %v1554_v63 = vmul.f32 0.70710677, %v1856_v17  ;;  %v1535_v33 = vmul.f32 0.5, %v1854_v40 }
 0x292   :  { %2052 = verf.f32 %v1551_v22  ;;  %1614 = vst [vmem:[#allocation2 + $0x58] sm:$0xff] %v1598_v39  ;;  %v1552_v24 = vmul.f32 0.70710677, %v1858_v54  ;;  %v1538_v15 = vmul.f32 0.5, %v1856_v17  ;;  %v1536_v53 = vmul.f32 0.5, %v1858_v54 }
 0x293   :  { %1612 = vst [vmem:[#allocation2 + $0x48] sm:$0xff] %v1596_v11  ;;  %2054 = verf.f32 %v1554_v63 }
 0x294   :  { %2056 = verf.f32 %v1552_v24 }
 0x29b   :  { %v2051_v52 = vpop.eup %2050 }
 0x29c   :  { %v2053_v1 = vpop.eup %2052  ;;  %v1585_v8 = vadd.f32 1.0, %v2051_v52 }
 0x29d   :  { %v1583_v41 = vadd.f32 1.0, %v2053_v1  ;;  %v2055_v19 = vpop.eup %2054 }
 0x29e   :  { %v1601_v47 = vmul.f32 %v1585_v8, %v1537_v3  ;;  %v2057_v51 = vpop.eup %2056  ;;  %v1586_v9 = vadd.f32 1.0, %v2055_v19 }
 0x29f   :  { %v1599_v18 = vmul.f32 %v1583_v41, %v1535_v33  ;;  %v1584_v23 = vadd.f32 1.0, %v2057_v51 }
 0x2a0   :  { %1617 = vst [vmem:[#allocation2 + $0x70] sm:$0xff] %v1601_v47  ;;  %v1602_v55 = vmul.f32 %v1586_v9, %v1538_v15 }
 0x2a1   :  { %1615 = vst [vmem:[#allocation2 + $0x60] sm:$0xff] %v1599_v18  ;;  %v1600_v21 = vmul.f32 %v1584_v23, %v1536_v53 }
 0x2a2   :  { %1618 = vst [vmem:[#allocation2 + $0x78] sm:$0xff] %v1602_v55 }
 0x2a3   :  { %1616 = vst [vmem:[#allocation2 + $0x68] sm:$0xff] %v1600_v21 }
 0x2a4   :  { %2069 = shalt.err (!%p2066_p4)
}
 0x2a5   :  { %s2070_s17 = scalar_lea.hbm %s3097_s3, 2048 }
 0x2a6   :  { %p2071_p5 = scmp.ne.s32.totalorder %s3097_s3, %s2070_s17  ;;  %p2074_p6 = scmp.lt.u32.totalorder %s2070_s17, %s3097_s3 }
 0x2a8   :  { %p2076_p7 = pnand %p2074_p6, %p2071_p5 }
 0x2aa   :  { %2079 = shalt.err (!%p2076_p7)
}
 0x2ab   :  { %s2083_s22 = smov 128   ;;  %s2084_s23 = smov 8  }
 0x2ac   :  { %1630 = dma.vmem_to_hbm [thread:$0]  %s1625_s13, 2048, %s3097_s3, [#allocation3], %s2083_s22, %s2083_s22, %s2084_s23  }
 0x2ad   :  { %2080 = dma.done.wait [#allocation3], 2048  }
 0x2ae   :  { %2081 = vsyncadd [#allocation3], 4294965248 }
 0x2af   :  { %1634 = vsyncpa [#allocation3], 1 }

// kernel: tpu_custom_call.1
= control target key start
LH: loop header
LB: loop body
LE: loop exit
PB: predicated region body
PF: predicated region fallthrough
CT: control target
= control target key end

     0   :  { %vm33_vm0 = vcmask 31744   ;;  %s3094_s0 = inlined_call_operand.vmem [shape: f32[4,128,4], index: 0, kind: input, shape index: {}]   ;;  %s3095_s1 = inlined_call_operand.vmem [shape: bf16[4,4,128], index: 1, kind: input, shape index: {}]   ;;  %s3096_s2 = inlined_call_operand.vmem [shape: f32[1,128], index: 2, kind: input, shape index: {}]   ;;  %s3097_s3 = inlined_call_operand.hbm [shape: f32[128,128], index: 3, kind: output, shape index: {}]  }
   0x1   :  { %v2108_v0 = vld [vmem:[%s3094_s0] sm:$0xff]  ;;  %v2113_v1 = vld [vmem:[%s3094_s0 + $0x10] sm:$0xff]  ;;  %v2118_v2 = vld [vmem:[%s3094_s0 + $0x8] sm:$0xff] }
   0x2   :  { %v34_v3 = vsel %vm33_vm0, %v2108_v0, 0.0  ;;  %v40_v4 = vsel %vm33_vm0, %v2113_v1, 0.0  ;;  %v2127_v5 = vld [vmem:[%s3094_s0 + $0x18] sm:$0xff]  ;;  %v37_v6 = vsel %vm33_vm0, %v2118_v2, 0.0  ;;  %v2136_v8 = vld [vmem:[%s3094_s0 + $0x100] sm:$0xff]  ;;  %v2141_v9 = vld [vmem:[%s3094_s0 + $0x108] sm:$0xff] }
   0x3   :  { %35 = vadd.xlane.f32.xlu0 %v34_v3  ;;  %41 = vadd.xlane.f32.xlu1 %v40_v4  ;;  %v43_v7 = vsel %vm33_vm0, %v2127_v5, 0.0  ;;  %v790_v10 = vsel %vm33_vm0, %v2136_v8, 0.0  ;;  %v793_v11 = vsel %vm33_vm0, %v2141_v9, 0.0  ;;  %v2150_v12 = vld [vmem:[%s3094_s0 + $0x110] sm:$0xff]  ;;  %v2155_v13 = vld [vmem:[%s3094_s0 + $0x118] sm:$0xff]  ;;  %v2164_v16 = vld [vmem:[%s3094_s0 + $0x20] sm:$0xff] }
   0x4   :  { %v796_v14 = vsel %vm33_vm0, %v2150_v12, 0.0  ;;  %v799_v15 = vsel %vm33_vm0, %v2155_v13, 0.0  ;;  %v2169_v17 = vld [vmem:[%s3094_s0 + $0x28] sm:$0xff]  ;;  %v46_v18 = vsel %vm33_vm0, %v2164_v16, 0.0  ;;  %v2178_v20 = vld [vmem:[%s3094_s0 + $0x30] sm:$0xff]  ;;  %v2183_v21 = vld [vmem:[%s3094_s0 + $0x38] sm:$0xff] }
   0x5   :  { %v49_v19 = vsel %vm33_vm0, %v2169_v17, 0.0  ;;  %v52_v22 = vsel %vm33_vm0, %v2178_v20, 0.0  ;;  %v55_v23 = vsel %vm33_vm0, %v2183_v21, 0.0  ;;  %v2192_v24 = vld [vmem:[%s3094_s0 + $0x120] sm:$0xff]  ;;  %v2197_v25 = vld [vmem:[%s3094_s0 + $0x128] sm:$0xff] }
   0x7   :  { %38 = vadd.xlane.f32.xlu0 %v37_v6  ;;  %44 = vadd.xlane.f32.xlu1 %v43_v7 }
   0xb   :  { %791 = vadd.xlane.f32.xlu0 %v790_v10  ;;  %794 = vadd.xlane.f32.xlu1 %v793_v11 }
   0xf   :  { %797 = vadd.xlane.f32.xlu0 %v796_v14  ;;  %800 = vadd.xlane.f32.xlu1 %v799_v15 }
  0x13   :  { %47 = vadd.xlane.f32.xlu0 %v46_v18  ;;  %50 = vadd.xlane.f32.xlu1 %v49_v19 }
  0x14   :  { %8 = vsyncpa [#allocation3], 0  ;;  %v802_v26 = vsel %vm33_vm0, %v2192_v24, 0.0  ;;  %v805_v27 = vsel %vm33_vm0, %v2197_v25, 0.0  ;;  %v2206_v28 = vld [vmem:[%s3094_s0 + $0x130] sm:$0xff]  ;;  %v2211_v29 = vld [vmem:[%s3094_s0 + $0x138] sm:$0xff] }
  0x15   :  { %v808_v30 = vsel %vm33_vm0, %v2206_v28, 0.0  ;;  %v811_v31 = vsel %vm33_vm0, %v2211_v29, 0.0  ;;  %v2220_v32 = vld [vmem:[%s3094_s0 + $0x40] sm:$0xff]  ;;  %v2225_v33 = vld [vmem:[%s3094_s0 + $0x48] sm:$0xff]  ;;  %v2234_v36 = vld [vmem:[%s3094_s0 + $0x50] sm:$0xff]  ;;  %vm275_vm1 = vcmask 1041408  }
  0x16   :  { %v58_v34 = vsel %vm33_vm0, %v2220_v32, 0.0  ;;  %v61_v35 = vsel %vm33_vm0, %v2225_v33, 0.0  ;;  %v2239_v37 = vld [vmem:[%s3094_s0 + $0x58] sm:$0xff]  ;;  %v64_v38 = vsel %vm33_vm0, %v2234_v36, 0.0  ;;  %v2248_v40 = vld [vmem:[%s3094_s0 + $0x140] sm:$0xff]  ;;  %v2253_v41 = vld [vmem:[%s3094_s0 + $0x148] sm:$0xff] }
  0x17   :  { %53 = vadd.xlane.f32.xlu0 %v52_v22  ;;  %56 = vadd.xlane.f32.xlu1 %v55_v23  ;;  %v67_v39 = vsel %vm33_vm0, %v2239_v37, 0.0  ;;  %v814_v42 = vsel %vm33_vm0, %v2248_v40, 0.0  ;;  %v817_v43 = vsel %vm33_vm0, %v2253_v41, 0.0  ;;  %v2262_v44 = vld [vmem:[%s3094_s0 + $0x150] sm:$0xff]  ;;  %v2267_v45 = vld [vmem:[%s3094_s0 + $0x158] sm:$0xff]  ;;  %v2276_v48 = vld [vmem:[%s3094_s0 + $0x60] sm:$0xff] }
  0x18   :  { %v820_v46 = vsel %vm33_vm0, %v2262_v44, 0.0  ;;  %v823_v47 = vsel %vm33_vm0, %v2267_v45, 0.0  ;;  %v2281_v49 = vld [vmem:[%s3094_s0 + $0x68] sm:$0xff]  ;;  %v70_v50 = vsel %vm33_vm0, %v2276_v48, 0.0  ;;  %v2290_v52 = vld [vmem:[%s3094_s0 + $0x70] sm:$0xff]  ;;  %v2295_v53 = vld [vmem:[%s3094_s0 + $0x78] sm:$0xff] }
  0x19   :  { %v73_v51 = vsel %vm33_vm0, %v2281_v49, 0.0  ;;  %v76_v54 = vsel %vm33_vm0, %v2290_v52, 0.0  ;;  %v79_v55 = vsel %vm33_vm0, %v2295_v53, 0.0  ;;  %v2304_v56 = vld [vmem:[%s3094_s0 + $0x160] sm:$0xff]  ;;  %v2309_v57 = vld [vmem:[%s3094_s0 + $0x168] sm:$0xff]  ;;  %v2318_v60 = vld [vmem:[%s3094_s0 + $0x170] sm:$0xff] }
  0x1a   :  { %v826_v58 = vsel %vm33_vm0, %v2304_v56, 0.0  ;;  %v829_v59 = vsel %vm33_vm0, %v2309_v57, 0.0  ;;  %v2323_v61 = vld [vmem:[%s3094_s0 + $0x178] sm:$0xff]  ;;  %v832_v62 = vsel %vm33_vm0, %v2318_v60, 0.0  ;;  %v2332_v3 = vld [vmem:[%s3094_s0 + $0x80] sm:$0xff]  ;;  %v2337_v4 = vld [vmem:[%s3094_s0 + $0x88] sm:$0xff] }
  0x1b   :  { %803 = vadd.xlane.f32.xlu0 %v802_v26  ;;  %806 = vadd.xlane.f32.xlu1 %v805_v27  ;;  %v835_v63 = vsel %vm33_vm0, %v2323_v61, 0.0  ;;  %v415_v6 = vsel %vm33_vm0, %v2332_v3, 0.0  ;;  %v418_v7 = vsel %vm33_vm0, %v2337_v4, 0.0  ;;  %v2346_v10 = vld [vmem:[%s3094_s0 + $0x90] sm:$0xff]  ;;  %v2351_v11 = vld [vmem:[%s3094_s0 + $0x98] sm:$0xff]  ;;  %v2360_v18 = vld [vmem:[%s3094_s0 + $0x180] sm:$0xff] }
  0x1c   :  { %v421_v14 = vsel %vm33_vm0, %v2346_v10, 0.0  ;;  %v424_v15 = vsel %vm33_vm0, %v2351_v11, 0.0  ;;  %v2365_v19 = vld [vmem:[%s3094_s0 + $0x188] sm:$0xff]  ;;  %v1165_v22 = vsel %vm33_vm0, %v2360_v18, 0.0  ;;  %v2374_v26 = vld [vmem:[%s3094_s0 + $0x190] sm:$0xff]  ;;  %v2379_v27 = vld [vmem:[%s3094_s0 + $0x198] sm:$0xff] }
  0x1d   :  { %v1168_v23 = vsel %vm33_vm0, %v2365_v19, 0.0 }
  0x1f   :  { %809 = vadd.xlane.f32.xlu0 %v808_v30  ;;  %812 = vadd.xlane.f32.xlu1 %v811_v31  ;;  %v1171_v30 = vsel %vm33_vm0, %v2374_v26, 0.0  ;;  %v1174_v31 = vsel %vm33_vm0, %v2379_v27, 0.0 }
  0x23   :  { %59 = vadd.xlane.f32.xlu0 %v58_v34  ;;  %62 = vadd.xlane.f32.xlu1 %v61_v35  ;;  %v2388_v34 = vld [vmem:[%s3094_s0 + $0xa0] sm:$0xff]  ;;  %v2393_v35 = vld [vmem:[%s3094_s0 + $0xa8] sm:$0xff] }
  0x27   :  { %65 = vadd.xlane.f32.xlu0 %v64_v38  ;;  %68 = vadd.xlane.f32.xlu1 %v67_v39  ;;  %v427_v38 = vsel %vm33_vm0, %v2388_v34, 0.0  ;;  %v430_v39 = vsel %vm33_vm0, %v2393_v35, 0.0 }
  0x2b   :  { %815 = vadd.xlane.f32.xlu0 %v814_v42  ;;  %818 = vadd.xlane.f32.xlu1 %v817_v43  ;;  %v2402_v42 = vld [vmem:[%s3094_s0 + $0xb0] sm:$0xff]  ;;  %v2407_v43 = vld [vmem:[%s3094_s0 + $0xb8] sm:$0xff] }
  0x2f   :  { %821 = vadd.xlane.f32.xlu0 %v820_v46  ;;  %824 = vadd.xlane.f32.xlu1 %v823_v47  ;;  %v433_v46 = vsel %vm33_vm0, %v2402_v42, 0.0  ;;  %v436_v47 = vsel %vm33_vm0, %v2407_v43, 0.0 }
  0x33   :  { %71 = vadd.xlane.f32.xlu0 %v70_v50  ;;  %74 = vadd.xlane.f32.xlu1 %v73_v51  ;;  %v2416_v50 = vld [vmem:[%s3094_s0 + $0x1a0] sm:$0xff]  ;;  %v2421_v51 = vld [vmem:[%s3094_s0 + $0x1a8] sm:$0xff] }
  0x37   :  { %77 = vadd.xlane.f32.xlu0 %v76_v54  ;;  %80 = vadd.xlane.f32.xlu1 %v79_v55  ;;  %v1177_v54 = vsel %vm33_vm0, %v2416_v50, 0.0  ;;  %v1180_v55 = vsel %vm33_vm0, %v2421_v51, 0.0 }
  0x3b   :  { %827 = vadd.xlane.f32.xlu0 %v826_v58  ;;  %830 = vadd.xlane.f32.xlu1 %v829_v59  ;;  %v2430_v58 = vld [vmem:[%s3094_s0 + $0x1b0] sm:$0xff]  ;;  %v2435_v59 = vld [vmem:[%s3094_s0 + $0x1b8] sm:$0xff] }
  0x3f   :  { %833 = vadd.xlane.f32.xlu0 %v832_v62  ;;  %836 = vadd.xlane.f32.xlu1 %v835_v63  ;;  %v1183_v62 = vsel %vm33_vm0, %v2430_v58, 0.0  ;;  %v1186_v63 = vsel %vm33_vm0, %v2435_v59, 0.0 }
  0x43   :  { %416 = vadd.xlane.f32.xlu0 %v415_v6  ;;  %419 = vadd.xlane.f32.xlu1 %v418_v7  ;;  %v2444_v6 = vld [vmem:[%s3094_s0 + $0xc0] sm:$0xff]  ;;  %v2449_v7 = vld [vmem:[%s3094_s0 + $0xc8] sm:$0xff] }
  0x47   :  { %422 = vadd.xlane.f32.xlu0 %v421_v14  ;;  %425 = vadd.xlane.f32.xlu1 %v424_v15  ;;  %v439_v14 = vsel %vm33_vm0, %v2444_v6, 0.0  ;;  %v442_v15 = vsel %vm33_vm0, %v2449_v7, 0.0 }
  0x4b   :  { %1166 = vadd.xlane.f32.xlu0 %v1165_v22  ;;  %1169 = vadd.xlane.f32.xlu1 %v1168_v23  ;;  %v2458_v22 = vld [vmem:[%s3094_s0 + $0xd0] sm:$0xff]  ;;  %v2463_v23 = vld [vmem:[%s3094_s0 + $0xd8] sm:$0xff] }
  0x4c   :  { %3133 = vst [vmem:[#allocation5_spill] sm:$0xff] %v2458_v22  ;;  %3134 = vst [vmem:[#allocation6_spill] sm:$0xff] %v2463_v23 }
  0x4f   :  { %1172 = vadd.xlane.f32.xlu0 %v1171_v30  ;;  %1175 = vadd.xlane.f32.xlu1 %v1174_v31  ;;  %v445_v30 = vsel %vm33_vm0, %v2458_v22, 0.0  ;;  %v448_v31 = vsel %vm33_vm0, %v2463_v23, 0.0 }
  0x53   :  { %428 = vadd.xlane.f32.xlu0 %v427_v38  ;;  %431 = vadd.xlane.f32.xlu1 %v430_v39  ;;  %v2472_v38 = vld [vmem:[%s3094_s0 + $0x1c0] sm:$0xff]  ;;  %v2477_v39 = vld [vmem:[%s3094_s0 + $0x1c8] sm:$0xff] }
  0x54   :  { %3135 = vst [vmem:[#allocation7_spill] sm:$0xff] %v2472_v38  ;;  %3136 = vst [vmem:[#allocation8_spill] sm:$0xff] %v2477_v39 }
  0x57   :  { %434 = vadd.xlane.f32.xlu0 %v433_v46  ;;  %437 = vadd.xlane.f32.xlu1 %v436_v47  ;;  %v1189_v46 = vsel %vm33_vm0, %v2472_v38, 0.0  ;;  %v1192_v47 = vsel %vm33_vm0, %v2477_v39, 0.0 }
  0x5b   :  { %1178 = vadd.xlane.f32.xlu0 %v1177_v54  ;;  %1181 = vadd.xlane.f32.xlu1 %v1180_v55  ;;  %v2486_v54 = vld [vmem:[%s3094_s0 + $0x1d0] sm:$0xff]  ;;  %v2491_v55 = vld [vmem:[%s3094_s0 + $0x1d8] sm:$0xff] }
  0x5c   :  { %3137 = vst [vmem:[#allocation9_spill] sm:$0xff] %v2486_v54  ;;  %3138 = vst [vmem:[#allocation10_spill] sm:$0xff] %v2491_v55 }
  0x5f   :  { %1184 = vadd.xlane.f32.xlu0 %v1183_v62  ;;  %1187 = vadd.xlane.f32.xlu1 %v1186_v63  ;;  %v1195_v62 = vsel %vm33_vm0, %v2486_v54, 0.0  ;;  %v1198_v63 = vsel %vm33_vm0, %v2491_v55, 0.0 }
  0x63   :  { %440 = vadd.xlane.f32.xlu0 %v439_v14  ;;  %443 = vadd.xlane.f32.xlu1 %v442_v15  ;;  %v2500_v14 = vld [vmem:[%s3094_s0 + $0xe0] sm:$0xff]  ;;  %v2505_v15 = vld [vmem:[%s3094_s0 + $0xe8] sm:$0xff] }
  0x64   :  { %3139 = vst [vmem:[#allocation11_spill] sm:$0xff] %v2500_v14  ;;  %3140 = vst [vmem:[#allocation12_spill] sm:$0xff] %v2505_v15 }
  0x67   :  { %446 = vadd.xlane.f32.xlu0 %v445_v30  ;;  %449 = vadd.xlane.f32.xlu1 %v448_v31  ;;  %v451_v30 = vsel %vm33_vm0, %v2500_v14, 0.0  ;;  %v454_v31 = vsel %vm33_vm0, %v2505_v15, 0.0  ;;  %v2528_v15 = vld [vmem:[%s3094_s0 + $0x1e0] sm:$0xff]  ;;  %v2533_v14 = vld [vmem:[%s3094_s0 + $0x1e8] sm:$0xff] }
  0x68   :  { %3143 = vst [vmem:[#allocation15_spill] sm:$0xff] %v2528_v15  ;;  %3144 = vst [vmem:[#allocation16_spill] sm:$0xff] %v2533_v14 }
  0x6b   :  { %1190 = vadd.xlane.f32.xlu0 %v1189_v46  ;;  %1193 = vadd.xlane.f32.xlu1 %v1192_v47  ;;  %v2514_v46 = vld [vmem:[%s3094_s0 + $0xf0] sm:$0xff]  ;;  %v2519_v47 = vld [vmem:[%s3094_s0 + $0xf8] sm:$0xff] }
  0x6c   :  { %3141 = vst [vmem:[#allocation13_spill] sm:$0xff] %v2514_v46  ;;  %3142 = vst [vmem:[#allocation14_spill] sm:$0xff] %v2519_v47 }
  0x6f   :  { %1196 = vadd.xlane.f32.xlu0 %v1195_v62  ;;  %1199 = vadd.xlane.f32.xlu1 %v1198_v63  ;;  %v457_v62 = vsel %vm33_vm0, %v2514_v46, 0.0  ;;  %v460_v63 = vsel %vm33_vm0, %v2519_v47, 0.0  ;;  %v2542_v47 = vld [vmem:[%s3094_s0 + $0x1f0] sm:$0xff]  ;;  %v2547_v46 = vld [vmem:[%s3094_s0 + $0x1f8] sm:$0xff] }
  0x70   :  { %3145 = vst [vmem:[#allocation17_spill] sm:$0xff] %v2542_v47 }
  0x73   :  { %452 = vadd.xlane.f32.xlu0 %v451_v30  ;;  %455 = vadd.xlane.f32.xlu1 %v454_v31  ;;  %v1201_v30 = vsel %vm33_vm0, %v2528_v15, 0.0  ;;  %v1204_v31 = vsel %vm33_vm0, %v2533_v14, 0.0 }
  0x77   :  { %458 = vadd.xlane.f32.xlu0 %v457_v62  ;;  %461 = vadd.xlane.f32.xlu1 %v460_v63  ;;  %v1207_v62 = vsel %vm33_vm0, %v2542_v47, 0.0  ;;  %v1210_v63 = vsel %vm33_vm0, %v2547_v46, 0.0 }
  0x7b   :  { %1202 = vadd.xlane.f32.xlu0 %v1201_v30  ;;  %1205 = vadd.xlane.f32.xlu1 %v1204_v31 }
  0x7f   :  { %1208 = vadd.xlane.f32.xlu0 %v1207_v62  ;;  %1211 = vadd.xlane.f32.xlu1 %v1210_v63 }
  0x90   :  { %v36_v14 = vpop.xlane.xlu0 %35  ;;  %v42_v15 = vpop.xlane.xlu1 %41 }
  0x91   :  { %v82_v55 = vmul.f32 0.25, %v36_v14  ;;  %v84_v54 = vmul.f32 0.25, %v42_v15 }
  0x93   :  { %v2554_v39 = vsub.f32 %v2108_v0, %v82_v55  ;;  %v2557_v38 = vsub.f32 %v2113_v1, %v84_v54 }
  0x94   :  { %v39_v30 = vpop.xlane.xlu0 %38  ;;  %v45_v31 = vpop.xlane.xlu1 %44 }
  0x95   :  { %3146 = vst [vmem:[#allocation18_spill] sm:$0xff] %v2557_v38  ;;  %v83_v23 = vmul.f32 0.25, %v39_v30  ;;  %v85_v22 = vmul.f32 0.25, %v45_v31  ;;  %v114_v47 = vmul.f32 %v2554_v39, %v2554_v39  ;;  %v116_v62 = vmul.f32 %v2557_v38, %v2557_v38 }
  0x97   :  { %v2564_v63 = vsub.f32 %v2118_v2, %v83_v23  ;;  %v2567_v14 = vsub.f32 %v2127_v5, %v85_v22  ;;  %v130_v0 = vsel %vm33_vm0, %v114_v47, 0.0  ;;  %v136_v55 = vsel %vm33_vm0, %v116_v62, 0.0 }
  0x98   :  { %131 = vadd.xlane.f32.xlu0 %v130_v0  ;;  %v792_v1 = vpop.xlane.xlu0 %791  ;;  %v795_v54 = vpop.xlane.xlu1 %794 }
  0x99   :  { %v838_v15 = vmul.f32 0.25, %v792_v1  ;;  %v839_v30 = vmul.f32 0.25, %v795_v54  ;;  %v115_v31 = vmul.f32 %v2564_v63, %v2564_v63  ;;  %v117_v38 = vmul.f32 %v2567_v14, %v2567_v14 }
  0x9b   :  { %v2576_v2 = vsub.f32 %v2136_v8, %v838_v15  ;;  %v2579_v5 = vsub.f32 %v2141_v9, %v839_v30  ;;  %v133_v22 = vsel %vm33_vm0, %v115_v31, 0.0  ;;  %v139_v62 = vsel %vm33_vm0, %v117_v38, 0.0 }
  0x9c   :  { %137 = vadd.xlane.f32.xlu0 %v136_v55  ;;  %134 = vadd.xlane.f32.xlu1 %v133_v22  ;;  %v798_v23 = vpop.xlane.xlu0 %797  ;;  %v801_v47 = vpop.xlane.xlu1 %800 }
  0x9d   :  { %v840_v0 = vmul.f32 0.25, %v798_v23  ;;  %v841_v1 = vmul.f32 0.25, %v801_v47  ;;  %v870_v54 = vmul.f32 %v2576_v2, %v2576_v2  ;;  %v871_v8 = vmul.f32 %v2579_v5, %v2579_v5 }
  0x9f   :  { %v2588_v15 = vsub.f32 %v2150_v12, %v840_v0  ;;  %v2591_v9 = vsub.f32 %v2155_v13, %v841_v1  ;;  %v886_v55 = vsel %vm33_vm0, %v870_v54, 0.0  ;;  %v889_v31 = vsel %vm33_vm0, %v871_v8, 0.0 }
  0xa0   :  { %140 = vadd.xlane.f32.xlu1 %v139_v62  ;;  %887 = vadd.xlane.f32.xlu0 %v886_v55  ;;  %v48_v30 = vpop.xlane.xlu0 %47  ;;  %v51_v38 = vpop.xlane.xlu1 %50 }
  0xa1   :  { %v86_v22 = vmul.f32 0.25, %v48_v30  ;;  %v87_v23 = vmul.f32 0.25, %v51_v38  ;;  %v872_v47 = vmul.f32 %v2588_v15, %v2588_v15  ;;  %v873_v12 = vmul.f32 %v2591_v9, %v2591_v9 }
  0xa3   :  { %v2600_v0 = vsub.f32 %v2164_v16, %v86_v22  ;;  %v2603_v13 = vsub.f32 %v2169_v17, %v87_v23  ;;  %v892_v62 = vsel %vm33_vm0, %v872_v47, 0.0  ;;  %v895_v8 = vsel %vm33_vm0, %v873_v12, 0.0 }
  0xa4   :  { %890 = vadd.xlane.f32.xlu1 %v889_v31  ;;  %893 = vadd.xlane.f32.xlu0 %v892_v62  ;;  %v54_v1 = vpop.xlane.xlu0 %53  ;;  %v57_v54 = vpop.xlane.xlu1 %56 }
  0xa5   :  { %v88_v55 = vmul.f32 0.25, %v54_v1  ;;  %v89_v30 = vmul.f32 0.25, %v57_v54  ;;  %v118_v38 = vmul.f32 %v2600_v0, %v2600_v0  ;;  %v119_v16 = vmul.f32 %v2603_v13, %v2603_v13 }
  0xa7   :  { %v2612_v22 = vsub.f32 %v2178_v20, %v88_v55  ;;  %v2615_v17 = vsub.f32 %v2183_v21, %v89_v30  ;;  %v142_v31 = vsel %vm33_vm0, %v118_v38, 0.0  ;;  %v145_v12 = vsel %vm33_vm0, %v119_v16, 0.0 }
  0xa8   :  { %896 = vadd.xlane.f32.xlu1 %v895_v8  ;;  %143 = vadd.xlane.f32.xlu0 %v142_v31  ;;  %v804_v23 = vpop.xlane.xlu0 %803  ;;  %v807_v47 = vpop.xlane.xlu1 %806 }
  0xa9   :  { %v842_v62 = vmul.f32 0.25, %v804_v23  ;;  %v843_v1 = vmul.f32 0.25, %v807_v47  ;;  %v120_v54 = vmul.f32 %v2612_v22, %v2612_v22  ;;  %v121_v20 = vmul.f32 %v2615_v17, %v2615_v17 }
  0xab   :  { %v2624_v55 = vsub.f32 %v2192_v24, %v842_v62  ;;  %v2627_v21 = vsub.f32 %v2197_v25, %v843_v1  ;;  %v148_v8 = vsel %vm33_vm0, %v120_v54, 0.0  ;;  %v151_v16 = vsel %vm33_vm0, %v121_v20, 0.0 }
  0xac   :  { %146 = vadd.xlane.f32.xlu1 %v145_v12  ;;  %149 = vadd.xlane.f32.xlu0 %v148_v8  ;;  %v810_v30 = vpop.xlane.xlu0 %809  ;;  %v813_v38 = vpop.xlane.xlu1 %812 }
  0xad   :  { %v844_v31 = vmul.f32 0.25, %v810_v30  ;;  %v845_v23 = vmul.f32 0.25, %v813_v38  ;;  %v874_v47 = vmul.f32 %v2624_v55, %v2624_v55  ;;  %v875_v24 = vmul.f32 %v2627_v21, %v2627_v21 }
  0xaf   :  { %v2636_v62 = vsub.f32 %v2206_v28, %v844_v31  ;;  %v2639_v25 = vsub.f32 %v2211_v29, %v845_v23  ;;  %v898_v12 = vsel %vm33_vm0, %v874_v47, 0.0  ;;  %v901_v20 = vsel %vm33_vm0, %v875_v24, 0.0 }
  0xb0   :  { %152 = vadd.xlane.f32.xlu1 %v151_v16  ;;  %899 = vadd.xlane.f32.xlu0 %v898_v12  ;;  %v60_v1 = vpop.xlane.xlu0 %59  ;;  %v63_v54 = vpop.xlane.xlu1 %62 }
  0xb1   :  { %v90_v8 = vmul.f32 0.25, %v60_v1  ;;  %v91_v30 = vmul.f32 0.25, %v63_v54  ;;  %v876_v38 = vmul.f32 %v2636_v62, %v2636_v62  ;;  %v877_v28 = vmul.f32 %v2639_v25, %v2639_v25 }
  0xb3   :  { %v2648_v31 = vsub.f32 %v2220_v32, %v90_v8  ;;  %v2651_v29 = vsub.f32 %v2225_v33, %v91_v30  ;;  %v904_v16 = vsel %vm33_vm0, %v876_v38, 0.0  ;;  %v907_v24 = vsel %vm33_vm0, %v877_v28, 0.0 }
  0xb4   :  { %902 = vadd.xlane.f32.xlu1 %v901_v20  ;;  %905 = vadd.xlane.f32.xlu0 %v904_v16  ;;  %v66_v23 = vpop.xlane.xlu0 %65  ;;  %v69_v47 = vpop.xlane.xlu1 %68 }
  0xb5   :  { %v92_v12 = vmul.f32 0.25, %v66_v23  ;;  %v93_v1 = vmul.f32 0.25, %v69_v47  ;;  %v122_v54 = vmul.f32 %v2648_v31, %v2648_v31  ;;  %v123_v32 = vmul.f32 %v2651_v29, %v2651_v29 }
  0xb7   :  { %v2660_v8 = vsub.f32 %v2234_v36, %v92_v12  ;;  %v2663_v33 = vsub.f32 %v2239_v37, %v93_v1  ;;  %v154_v20 = vsel %vm33_vm0, %v122_v54, 0.0  ;;  %v157_v28 = vsel %vm33_vm0, %v123_v32, 0.0 }
  0xb8   :  { %908 = vadd.xlane.f32.xlu1 %v907_v24  ;;  %155 = vadd.xlane.f32.xlu0 %v154_v20  ;;  %v816_v30 = vpop.xlane.xlu0 %815  ;;  %v819_v38 = vpop.xlane.xlu1 %818 }
  0xb9   :  { %v846_v16 = vmul.f32 0.25, %v816_v30  ;;  %v847_v23 = vmul.f32 0.25, %v819_v38  ;;  %v124_v47 = vmul.f32 %v2660_v8, %v2660_v8  ;;  %v125_v36 = vmul.f32 %v2663_v33, %v2663_v33 }
  0xbb   :  { %v2672_v12 = vsub.f32 %v2248_v40, %v846_v16  ;;  %v2675_v37 = vsub.f32 %v2253_v41, %v847_v23  ;;  %v160_v24 = vsel %vm33_vm0, %v124_v47, 0.0  ;;  %v163_v32 = vsel %vm33_vm0, %v125_v36, 0.0  ;;  %v250_v41 = vld [vmem:[%s3095_s1] sm:$0x3] }
  0xbc   :  { %158 = vadd.xlane.f32.xlu1 %v157_v28  ;;  %161 = vadd.xlane.f32.xlu0 %v160_v24  ;;  %v822_v1 = vpop.xlane.xlu0 %821  ;;  %v825_v54 = vpop.xlane.xlu1 %824 }
  0xbd   :  { %3147 = vst [vmem:[#allocation19_spill] sm:$0xff] %v2675_v37  ;;  %v848_v20 = vmul.f32 0.25, %v822_v1  ;;  %v849_v30 = vmul.f32 0.25, %v825_v54  ;;  %v878_v38 = vmul.f32 %v2672_v12, %v2672_v12  ;;  %v879_v40 = vmul.f32 %v2675_v37, %v2675_v37  ;;  %1891 = vmatprep.subr.msk.bf16.mxu1 %vm275_vm1, %v250_v41 }
  0xbe   :  { %v277_v1 = vsel %vm275_vm1, %v250_v41, 0 }
  0xbf   :  { %v2687_v28 = vsub.f32 %v2262_v44, %v848_v20  ;;  %v2690_v16 = vsub.f32 %v2267_v45, %v849_v30  ;;  %v910_v23 = vsel %vm33_vm0, %v878_v38, 0.0  ;;  %v913_v24 = vsel %vm33_vm0, %v879_v40, 0.0  ;;  %1756 = vmatpush3.bf16.msra.mxu1 %v277_v1 }
  0xc0   :  { %164 = vadd.xlane.f32.xlu1 %v163_v32  ;;  %911 = vadd.xlane.f32.xlu0 %v910_v23  ;;  %v72_v47 = vpop.xlane.xlu0 %71  ;;  %v75_v36 = vpop.xlane.xlu1 %74 }
  0xc1   :  { %v94_v54 = vmul.f32 0.25, %v72_v47  ;;  %v95_v37 = vmul.f32 0.25, %v75_v36  ;;  %v880_v44 = vmul.f32 %v2687_v28, %v2687_v28  ;;  %v881_v45 = vmul.f32 %v2690_v16, %v2690_v16 }
  0xc3   :  { %v2701_v20 = vsub.f32 %v2276_v48, %v94_v54  ;;  %v2704_v32 = vsub.f32 %v2281_v49, %v95_v37  ;;  %v916_v30 = vsel %vm33_vm0, %v880_v44, 0.0  ;;  %v919_v41 = vsel %vm33_vm0, %v881_v45, 0.0  ;;  %v1685_v49 = vld [vmem:[%s3095_s1 + $0x4] sm:$0x3] }
  0xc4   :  { %914 = vadd.xlane.f32.xlu1 %v913_v24  ;;  %917 = vadd.xlane.f32.xlu0 %v916_v30  ;;  %v78_v38 = vpop.xlane.xlu0 %77  ;;  %v81_v40 = vpop.xlane.xlu1 %80  ;;  %v1033_v37 = vsel %vm275_vm1, %v1685_v49, 0 }
  0xc5   :  { %v96_v23 = vmul.f32 0.25, %v78_v38  ;;  %v97_v47 = vmul.f32 0.25, %v81_v40  ;;  %v126_v36 = vmul.f32 %v2701_v20, %v2701_v20  ;;  %v127_v48 = vmul.f32 %v2704_v32, %v2704_v32  ;;  %1893 = vmatprep.subr.msk.bf16.mxu0 %vm275_vm1, %v1685_v49 }
  0xc6   :  { %1792 = vmatpush3.bf16.msra.mxu0 %v1033_v37 }
  0xc7   :  { %v2718_v24 = vsub.f32 %v2290_v52, %v96_v23  ;;  %v2721_v1 = vsub.f32 %v2295_v53, %v97_v47  ;;  %v166_v54 = vsel %vm33_vm0, %v126_v36, 0.0  ;;  %v169_v30 = vsel %vm33_vm0, %v127_v48, 0.0 }
  0xc8   :  { %920 = vadd.xlane.f32.xlu1 %v919_v41  ;;  %167 = vadd.xlane.f32.xlu0 %v166_v54  ;;  %v828_v44 = vpop.xlane.xlu0 %827  ;;  %v831_v45 = vpop.xlane.xlu1 %830 }
  0xc9   :  { %v850_v38 = vmul.f32 0.25, %v828_v44  ;;  %v851_v40 = vmul.f32 0.25, %v831_v45  ;;  %v128_v49 = vmul.f32 %v2718_v24, %v2718_v24  ;;  %v129_v52 = vmul.f32 %v2721_v1, %v2721_v1 }
  0xcb   :  { %v2730_v53 = vsub.f32 %v2304_v56, %v850_v38  ;;  %v2733_v23 = vsub.f32 %v2309_v57, %v851_v40  ;;  %v172_v41 = vsel %vm33_vm0, %v128_v49, 0.0  ;;  %v175_v48 = vsel %vm33_vm0, %v129_v52, 0.0 }
  0xcc   :  { %170 = vadd.xlane.f32.xlu1 %v169_v30  ;;  %173 = vadd.xlane.f32.xlu0 %v172_v41  ;;  %v834_v47 = vpop.xlane.xlu0 %833  ;;  %v837_v36 = vpop.xlane.xlu1 %836 }
  0xcd   :  { %v852_v37 = vmul.f32 0.25, %v834_v47  ;;  %v853_v54 = vmul.f32 0.25, %v837_v36  ;;  %v882_v44 = vmul.f32 %v2730_v53, %v2730_v53  ;;  %v883_v56 = vmul.f32 %v2733_v23, %v2733_v23 }
  0xcf   :  { %v2742_v45 = vsub.f32 %v2318_v60, %v852_v37  ;;  %v2745_v57 = vsub.f32 %v2323_v61, %v853_v54  ;;  %v922_v30 = vsel %vm33_vm0, %v882_v44, 0.0  ;;  %v925_v49 = vsel %vm33_vm0, %v883_v56, 0.0 }
  0xd0   :  { %176 = vadd.xlane.f32.xlu1 %v175_v48  ;;  %923 = vadd.xlane.f32.xlu0 %v922_v30  ;;  %v417_v38 = vpop.xlane.xlu0 %416  ;;  %v420_v40 = vpop.xlane.xlu1 %419 }
  0xd1   :  { %v463_v52 = vmul.f32 0.25, %v417_v38  ;;  %v464_v41 = vmul.f32 0.25, %v420_v40  ;;  %v884_v47 = vmul.f32 %v2742_v45, %v2742_v45  ;;  %v885_v60 = vmul.f32 %v2745_v57, %v2745_v57 }
  0xd3   :  { %v2754_v36 = vsub.f32 %v2332_v3, %v463_v52  ;;  %v2757_v61 = vsub.f32 %v2337_v4, %v464_v41  ;;  %v928_v48 = vsel %vm33_vm0, %v884_v47, 0.0  ;;  %v931_v44 = vsel %vm33_vm0, %v885_v60, 0.0 }
  0xd4   :  { %926 = vadd.xlane.f32.xlu1 %v925_v49  ;;  %929 = vadd.xlane.f32.xlu0 %v928_v48  ;;  %v423_v37 = vpop.xlane.xlu0 %422  ;;  %v426_v54 = vpop.xlane.xlu1 %425 }
  0xd5   :  { %v465_v56 = vmul.f32 0.25, %v423_v37  ;;  %v466_v30 = vmul.f32 0.25, %v426_v54  ;;  %v495_v38 = vmul.f32 %v2754_v36, %v2754_v36  ;;  %v496_v3 = vmul.f32 %v2757_v61, %v2757_v61 }
  0xd7   :  { %v2766_v40 = vsub.f32 %v2346_v10, %v465_v56  ;;  %v2769_v4 = vsub.f32 %v2351_v11, %v466_v30  ;;  %v511_v49 = vsel %vm33_vm0, %v495_v38, 0.0  ;;  %v514_v47 = vsel %vm33_vm0, %v496_v3, 0.0 }
  0xd8   :  { %932 = vadd.xlane.f32.xlu1 %v931_v44  ;;  %512 = vadd.xlane.f32.xlu0 %v511_v49  ;;  %v1167_v52 = vpop.xlane.xlu0 %1166  ;;  %v1170_v41 = vpop.xlane.xlu1 %1169 }
  0xd9   :  { %v1213_v60 = vmul.f32 0.25, %v1167_v52  ;;  %v1214_v48 = vmul.f32 0.25, %v1170_v41  ;;  %v497_v37 = vmul.f32 %v2766_v40, %v2766_v40  ;;  %v498_v10 = vmul.f32 %v2769_v4, %v2769_v4 }
  0xdb   :  { %v2778_v54 = vsub.f32 %v2360_v18, %v1213_v60  ;;  %v2781_v11 = vsub.f32 %v2365_v19, %v1214_v48  ;;  %v517_v44 = vsel %vm33_vm0, %v497_v37, 0.0  ;;  %v520_v38 = vsel %vm33_vm0, %v498_v10, 0.0 }
  0xdc   :  { %515 = vadd.xlane.f32.xlu1 %v514_v47  ;;  %518 = vadd.xlane.f32.xlu0 %v517_v44  ;;  %v1173_v56 = vpop.xlane.xlu0 %1172  ;;  %v1176_v30 = vpop.xlane.xlu1 %1175 }
  0xdd   :  { %v1215_v3 = vmul.f32 0.25, %v1173_v56  ;;  %v1216_v49 = vmul.f32 0.25, %v1176_v30  ;;  %v1245_v52 = vmul.f32 %v2778_v54, %v2778_v54  ;;  %v1246_v18 = vmul.f32 %v2781_v11, %v2781_v11 }
  0xdf   :  { %v2790_v41 = vsub.f32 %v2374_v26, %v1215_v3  ;;  %v2793_v19 = vsub.f32 %v2379_v27, %v1216_v49  ;;  %v1261_v47 = vsel %vm33_vm0, %v1245_v52, 0.0  ;;  %v1264_v37 = vsel %vm33_vm0, %v1246_v18, 0.0 }
  0xe0   :  { %521 = vadd.xlane.f32.xlu1 %v520_v38  ;;  %1262 = vadd.xlane.f32.xlu0 %v1261_v47  ;;  %v429_v60 = vpop.xlane.xlu0 %428  ;;  %v432_v48 = vpop.xlane.xlu1 %431 }
  0xe1   :  { %v467_v10 = vmul.f32 0.25, %v429_v60  ;;  %v468_v44 = vmul.f32 0.25, %v432_v48  ;;  %v1247_v56 = vmul.f32 %v2790_v41, %v2790_v41  ;;  %v1248_v26 = vmul.f32 %v2793_v19, %v2793_v19 }
  0xe3   :  { %v2802_v30 = vsub.f32 %v2388_v34, %v467_v10  ;;  %v2805_v27 = vsub.f32 %v2393_v35, %v468_v44  ;;  %v1267_v38 = vsel %vm33_vm0, %v1247_v56, 0.0  ;;  %v1270_v52 = vsel %vm33_vm0, %v1248_v26, 0.0 }
  0xe4   :  { %1265 = vadd.xlane.f32.xlu1 %v1264_v37  ;;  %1268 = vadd.xlane.f32.xlu0 %v1267_v38  ;;  %v435_v3 = vpop.xlane.xlu0 %434  ;;  %v438_v49 = vpop.xlane.xlu1 %437 }
  0xe5   :  { %v469_v18 = vmul.f32 0.25, %v435_v3  ;;  %v470_v47 = vmul.f32 0.25, %v438_v49  ;;  %v499_v60 = vmul.f32 %v2802_v30, %v2802_v30  ;;  %v500_v34 = vmul.f32 %v2805_v27, %v2805_v27 }
  0xe7   :  { %v2814_v48 = vsub.f32 %v2402_v42, %v469_v18  ;;  %v2817_v35 = vsub.f32 %v2407_v43, %v470_v47  ;;  %v523_v37 = vsel %vm33_vm0, %v499_v60, 0.0  ;;  %v526_v56 = vsel %vm33_vm0, %v500_v34, 0.0 }
  0xe8   :  { %1271 = vadd.xlane.f32.xlu1 %v1270_v52  ;;  %524 = vadd.xlane.f32.xlu0 %v523_v37  ;;  %v1179_v10 = vpop.xlane.xlu0 %1178  ;;  %v1182_v44 = vpop.xlane.xlu1 %1181 }
  0xe9   :  { %v1217_v26 = vmul.f32 0.25, %v1179_v10  ;;  %v1218_v38 = vmul.f32 0.25, %v1182_v44  ;;  %v501_v3 = vmul.f32 %v2814_v48, %v2814_v48  ;;  %v502_v42 = vmul.f32 %v2817_v35, %v2817_v35 }
  0xeb   :  { %v2826_v49 = vsub.f32 %v2416_v50, %v1217_v26  ;;  %v2829_v43 = vsub.f32 %v2421_v51, %v1218_v38  ;;  %v529_v52 = vsel %vm33_vm0, %v501_v3, 0.0  ;;  %v532_v60 = vsel %vm33_vm0, %v502_v42, 0.0 }
  0xec   :  { %527 = vadd.xlane.f32.xlu1 %v526_v56  ;;  %530 = vadd.xlane.f32.xlu0 %v529_v52  ;;  %v1185_v18 = vpop.xlane.xlu0 %1184  ;;  %v1188_v47 = vpop.xlane.xlu1 %1187 }
  0xed   :  { %3148 = vst [vmem:[#allocation20_spill] sm:$0xff] %v2826_v49  ;;  %3149 = vst [vmem:[#allocation21_spill] sm:$0xff] %v2829_v43  ;;  %v1219_v34 = vmul.f32 0.25, %v1185_v18  ;;  %v1220_v37 = vmul.f32 0.25, %v1188_v47  ;;  %v1249_v10 = vmul.f32 %v2826_v49, %v2826_v49  ;;  %v1250_v50 = vmul.f32 %v2829_v43, %v2829_v43 }
  0xef   :  { %v2838_v44 = vsub.f32 %v2430_v58, %v1219_v34  ;;  %v2841_v51 = vsub.f32 %v2435_v59, %v1220_v37  ;;  %v1273_v56 = vsel %vm33_vm0, %v1249_v10, 0.0  ;;  %v1276_v3 = vsel %vm33_vm0, %v1250_v50, 0.0 }
  0xf0   :  { %533 = vadd.xlane.f32.xlu1 %v532_v60  ;;  %1274 = vadd.xlane.f32.xlu0 %v1273_v56  ;;  %v441_v26 = vpop.xlane.xlu0 %440  ;;  %v444_v38 = vpop.xlane.xlu1 %443 }
  0xf1   :  { %3150 = vst [vmem:[#allocation22_spill] sm:$0xff] %v2838_v44  ;;  %3151 = vst [vmem:[#allocation23_spill] sm:$0xff] %v2841_v51  ;;  %v471_v42 = vmul.f32 0.25, %v441_v26  ;;  %v472_v52 = vmul.f32 0.25, %v444_v38  ;;  %v1251_v18 = vmul.f32 %v2838_v44, %v2838_v44  ;;  %v1252_v58 = vmul.f32 %v2841_v51, %v2841_v51  ;;  %v3154_v38 = vld [vmem:[#allocation5_spill] sm:$0xff] }
  0xf3   :  { %v2850_v47 = vsub.f32 %v2444_v6, %v471_v42  ;;  %v2853_v59 = vsub.f32 %v2449_v7, %v472_v52  ;;  %v1279_v60 = vsel %vm33_vm0, %v1251_v18, 0.0  ;;  %v1282_v10 = vsel %vm33_vm0, %v1252_v58, 0.0  ;;  %v3156_v7 = vld [vmem:[#allocation6_spill] sm:$0xff] }
  0xf4   :  { %1277 = vadd.xlane.f32.xlu1 %v1276_v3  ;;  %1280 = vadd.xlane.f32.xlu0 %v1279_v60  ;;  %v447_v34 = vpop.xlane.xlu0 %446  ;;  %v450_v37 = vpop.xlane.xlu1 %449 }
  0xf5   :  { %3152 = vst [vmem:[#allocation24_spill] sm:$0xff] %v2850_v47  ;;  %3153 = vst [vmem:[#allocation25_spill] sm:$0xff] %v2853_v59  ;;  %v473_v50 = vmul.f32 0.25, %v447_v34  ;;  %v474_v56 = vmul.f32 0.25, %v450_v37  ;;  %v503_v26 = vmul.f32 %v2850_v47, %v2850_v47  ;;  %v504_v6 = vmul.f32 %v2853_v59, %v2853_v59 }
  0xf7   :  { %v2862_v42 = vsub.f32 %v3154_v38, %v473_v50  ;;  %v2865_v52 = vsub.f32 %v3156_v7, %v474_v56  ;;  %v535_v3 = vsel %vm33_vm0, %v503_v26, 0.0  ;;  %v538_v60 = vsel %vm33_vm0, %v504_v6, 0.0  ;;  %v3158_v38 = vld [vmem:[#allocation7_spill] sm:$0xff]  ;;  %v3160_v56 = vld [vmem:[#allocation8_spill] sm:$0xff] }
  0xf8   :  { %1283 = vadd.xlane.f32.xlu1 %v1282_v10  ;;  %536 = vadd.xlane.f32.xlu0 %v535_v3  ;;  %v1191_v18 = vpop.xlane.xlu0 %1190  ;;  %v1194_v58 = vpop.xlane.xlu1 %1193 }
  0xf9   :  { %3155 = vst [vmem:[#allocation5_spill] sm:$0xff] %v2862_v42  ;;  %3157 = vst [vmem:[#allocation6_spill] sm:$0xff] %v2865_v52  ;;  %v1221_v34 = vmul.f32 0.25, %v1191_v18  ;;  %v1222_v37 = vmul.f32 0.25, %v1194_v58  ;;  %v505_v47 = vmul.f32 %v2862_v42, %v2862_v42  ;;  %v506_v50 = vmul.f32 %v2865_v52, %v2865_v52 }
  0xfb   :  { %v2874_v59 = vsub.f32 %v3158_v38, %v1221_v34  ;;  %v2877_v7 = vsub.f32 %v3160_v56, %v1222_v37  ;;  %v541_v10 = vsel %vm33_vm0, %v505_v47, 0.0  ;;  %v544_v3 = vsel %vm33_vm0, %v506_v50, 0.0  ;;  %v2888_v37 = vld [vmem:[%s3095_s1 + $0x2] sm:$0x3]  ;;  %v3164_v50 = vld [vmem:[#allocation10_spill] sm:$0xff] }
  0xfc   :  { %539 = vadd.xlane.f32.xlu1 %v538_v60  ;;  %542 = vadd.xlane.f32.xlu0 %v541_v10  ;;  %v1197_v26 = vpop.xlane.xlu0 %1196  ;;  %v1200_v6 = vpop.xlane.xlu1 %1199  ;;  %v3162_v47 = vld [vmem:[#allocation9_spill] sm:$0xff] }
  0xfd   :  { %3159 = vst [vmem:[#allocation7_spill] sm:$0xff] %v2874_v59  ;;  %3161 = vst [vmem:[#allocation8_spill] sm:$0xff] %v2877_v7  ;;  %v1223_v18 = vmul.f32 0.25, %v1197_v26  ;;  %v1224_v58 = vmul.f32 0.25, %v1200_v6  ;;  %v1253_v42 = vmul.f32 %v2874_v59, %v2874_v59  ;;  %v1254_v34 = vmul.f32 %v2877_v7, %v2877_v7  ;;  %1892 = vmatprep.subr.msk.bf16.mxu1 %vm275_vm1, %v2888_v37 }
  0xff   :  { %v2893_v60 = vsub.f32 %v3162_v47, %v1223_v18  ;;  %v2896_v38 = vsub.f32 %v3164_v50, %v1224_v58  ;;  %v1285_v56 = vsel %vm33_vm0, %v1253_v42, 0.0  ;;  %v1288_v6 = vsel %vm33_vm0, %v1254_v34, 0.0  ;;  %v3166_v47 = vld [vmem:[#allocation11_spill] sm:$0xff]  ;;  %v3168_v58 = vld [vmem:[#allocation12_spill] sm:$0xff] }
 0x100   :  { %545 = vadd.xlane.f32.xlu1 %v544_v3  ;;  %1286 = vadd.xlane.f32.xlu0 %v1285_v56  ;;  %v453_v10 = vpop.xlane.xlu0 %452  ;;  %v456_v26 = vpop.xlane.xlu1 %455 }
 0x101   :  { %3163 = vst [vmem:[#allocation9_spill] sm:$0xff] %v2893_v60  ;;  %3165 = vst [vmem:[#allocation10_spill] sm:$0xff] %v2896_v38  ;;  %v475_v7 = vmul.f32 0.25, %v453_v10  ;;  %v476_v59 = vmul.f32 0.25, %v456_v26  ;;  %v1255_v52 = vmul.f32 %v2893_v60, %v2893_v60  ;;  %v1256_v18 = vmul.f32 %v2896_v38, %v2896_v38 }
 0x103   :  { %v2905_v51 = vsub.f32 %v3166_v47, %v475_v7  ;;  %v2908_v50 = vsub.f32 %v3168_v58, %v476_v59  ;;  %v1291_v42 = vsel %vm33_vm0, %v1255_v52, 0.0  ;;  %v1294_v56 = vsel %vm33_vm0, %v1256_v18, 0.0  ;;  %v2919_v59 = vld [vmem:[%s3095_s1 + $0x6] sm:$0x3]  ;;  %v3172_v18 = vld [vmem:[#allocation14_spill] sm:$0xff] }
 0x104   :  { %1289 = vadd.xlane.f32.xlu1 %v1288_v6  ;;  %1292 = vadd.xlane.f32.xlu0 %v1291_v42  ;;  %v459_v3 = vpop.xlane.xlu0 %458  ;;  %v462_v34 = vpop.xlane.xlu1 %461  ;;  %v3170_v52 = vld [vmem:[#allocation13_spill] sm:$0xff] }
 0x105   :  { %3167 = vst [vmem:[#allocation11_spill] sm:$0xff] %v2905_v51  ;;  %3169 = vst [vmem:[#allocation12_spill] sm:$0xff] %v2908_v50  ;;  %v477_v10 = vmul.f32 0.25, %v459_v3  ;;  %v478_v26 = vmul.f32 0.25, %v462_v34  ;;  %v507_v60 = vmul.f32 %v2905_v51, %v2905_v51  ;;  %v508_v7 = vmul.f32 %v2908_v50, %v2908_v50  ;;  %1894 = vmatprep.subr.msk.bf16.mxu0 %vm275_vm1, %v2919_v59 }
 0x107   :  { %v2924_v6 = vsub.f32 %v3170_v52, %v477_v10  ;;  %v2927_v47 = vsub.f32 %v3172_v18, %v478_v26  ;;  %v547_v58 = vsel %vm33_vm0, %v507_v60, 0.0  ;;  %v550_v34 = vsel %vm33_vm0, %v508_v7, 0.0  ;;  %v3174_v52 = vld [vmem:[#allocation15_spill] sm:$0xff]  ;;  %v3176_v26 = vld [vmem:[#allocation16_spill] sm:$0xff] }
 0x108   :  { %1295 = vadd.xlane.f32.xlu1 %v1294_v56  ;;  %548 = vadd.xlane.f32.xlu0 %v547_v58  ;;  %v1203_v42 = vpop.xlane.xlu0 %1202  ;;  %v1206_v3 = vpop.xlane.xlu1 %1205 }
 0x109   :  { %3171 = vst [vmem:[#allocation13_spill] sm:$0xff] %v2924_v6  ;;  %3173 = vst [vmem:[#allocation14_spill] sm:$0xff] %v2927_v47  ;;  %v1225_v50 = vmul.f32 0.25, %v1203_v42  ;;  %v1226_v51 = vmul.f32 0.25, %v1206_v3  ;;  %v509_v38 = vmul.f32 %v2924_v6, %v2924_v6  ;;  %v510_v10 = vmul.f32 %v2927_v47, %v2927_v47 }
 0x10b   :  { %v2936_v44 = vsub.f32 %v3174_v52, %v1225_v50  ;;  %v2939_v18 = vsub.f32 %v3176_v26, %v1226_v51  ;;  %v553_v60 = vsel %vm33_vm0, %v509_v38, 0.0  ;;  %v556_v58 = vsel %vm33_vm0, %v510_v10, 0.0  ;;  %v3178_v52 = vld [vmem:[#allocation17_spill] sm:$0xff] }
 0x10c   :  { %551 = vadd.xlane.f32.xlu1 %v550_v34  ;;  %554 = vadd.xlane.f32.xlu0 %v553_v60  ;;  %v1209_v56 = vpop.xlane.xlu0 %1208  ;;  %v1212_v7 = vpop.xlane.xlu1 %1211 }
 0x10d   :  { %3175 = vst [vmem:[#allocation15_spill] sm:$0xff] %v2936_v44  ;;  %3177 = vst [vmem:[#allocation16_spill] sm:$0xff] %v2939_v18  ;;  %v1227_v42 = vmul.f32 0.25, %v1209_v56  ;;  %v1228_v3 = vmul.f32 0.25, %v1212_v7  ;;  %v1257_v6 = vmul.f32 %v2936_v44, %v2936_v44  ;;  %v1258_v50 = vmul.f32 %v2939_v18, %v2939_v18 }
 0x10f   :  { %v2948_v47 = vsub.f32 %v3178_v52, %v1227_v42  ;;  %v2951_v51 = vsub.f32 %v2547_v46, %v1228_v3  ;;  %v1297_v38 = vsel %vm33_vm0, %v1257_v6, 0.0  ;;  %v1300_v34 = vsel %vm33_vm0, %v1258_v50, 0.0 }
 0x110   :  { %557 = vadd.xlane.f32.xlu1 %v556_v58  ;;  %1298 = vadd.xlane.f32.xlu0 %v1297_v38 }
 0x111   :  { %3179 = vst [vmem:[#allocation17_spill] sm:$0xff] %v2948_v47  ;;  %3180 = vst [vmem:[#allocation26_spill] sm:$0xff] %v2951_v51  ;;  %v1259_v10 = vmul.f32 %v2948_v47, %v2948_v47  ;;  %v1260_v26 = vmul.f32 %v2951_v51, %v2951_v51 }
 0x113   :  { %v1303_v60 = vsel %vm33_vm0, %v1259_v10, 0.0  ;;  %v1306_v56 = vsel %vm33_vm0, %v1260_v26, 0.0 }
 0x114   :  { %1301 = vadd.xlane.f32.xlu1 %v1300_v34  ;;  %1304 = vadd.xlane.f32.xlu0 %v1303_v60 }
 0x118   :  { %1307 = vadd.xlane.f32.xlu1 %v1306_v56 }
 0x125   :  { %v132_v46 = vpop.xlane.xlu0 %131 }
 0x126   :  { %v178_v7 = vmul.f32 0.25, %v132_v46 }
 0x128   :  { %v194_v6 = vadd.f32 1e-06, %v178_v7 }
 0x129   :  { %v135_v58 = vpop.xlane.xlu1 %134  ;;  %v138_v42 = vpop.xlane.xlu0 %137 }
 0x12a   :  { %v179_v3 = vmul.f32 0.25, %v135_v58  ;;  %v180_v50 = vmul.f32 0.25, %v138_v42  ;;  %1898 = vrsqrt.f32 %v194_v6 }
 0x12c   :  { %v195_v52 = vadd.f32 1e-06, %v179_v3  ;;  %v196_v38 = vadd.f32 1e-06, %v180_v50 }
 0x12d   :  { %v141_v47 = vpop.xlane.xlu1 %140  ;;  %v888_v18 = vpop.xlane.xlu0 %887 }
 0x12e   :  { %1900 = vrsqrt.f32 %v195_v52  ;;  %v181_v51 = vmul.f32 0.25, %v141_v47  ;;  %v934_v10 = vmul.f32 0.25, %v888_v18 }
 0x12f   :  { %1902 = vrsqrt.f32 %v196_v38 }
 0x130   :  { %v197_v34 = vadd.f32 1e-06, %v181_v51  ;;  %v950_v60 = vadd.f32 1e-06, %v934_v10 }
 0x131   :  { %v891_v26 = vpop.xlane.xlu1 %890  ;;  %v894_v56 = vpop.xlane.xlu0 %893 }
 0x132   :  { %1904 = vrsqrt.f32 %v197_v34  ;;  %v935_v46 = vmul.f32 0.25, %v891_v26  ;;  %v936_v7 = vmul.f32 0.25, %v894_v56 }
 0x133   :  { %1906 = vrsqrt.f32 %v950_v60 }
 0x134   :  { %v951_v44 = vadd.f32 1e-06, %v935_v46  ;;  %v952_v58 = vadd.f32 1e-06, %v936_v7  ;;  %v1899_v3 = vpop.eup %1898 }
 0x135   :  { %v897_v42 = vpop.xlane.xlu1 %896  ;;  %v144_v6 = vpop.xlane.xlu0 %143  ;;  %v226_v10 = vmul.f32 %v1899_v3, %v2554_v39 }
 0x136   :  { %1908 = vrsqrt.f32 %v951_v44  ;;  %v937_v50 = vmul.f32 0.25, %v897_v42  ;;  %v182_v43 = vmul.f32 0.25, %v144_v6 }
 0x137   :  { %1910 = vrsqrt.f32 %v952_v58 }
 0x138   :  { %v1901_v52 = vpop.eup %1900  ;;  %v953_v47 = vadd.f32 1e-06, %v937_v50  ;;  %v198_v18 = vadd.f32 1e-06, %v182_v43  ;;  %v3181_v43 = vld [vmem:[#allocation18_spill] sm:$0xff] }
 0x139   :  { %v147_v51 = vpop.xlane.xlu1 %146  ;;  %v150_v38 = vpop.xlane.xlu0 %149  ;;  %v227_v34 = vmul.f32 %v1901_v52, %v2564_v63 }
 0x13a   :  { %v1903_v26 = vpop.eup %1902  ;;  %1912 = vrsqrt.f32 %v953_v47  ;;  %v183_v60 = vmul.f32 0.25, %v147_v51  ;;  %v184_v56 = vmul.f32 0.25, %v150_v38  ;;  %v658_v47 = vsel %vm275_vm1, %v2888_v37, 0 }
 0x13b   :  { %v242_v46 = vpack.c.bf16 %v227_v34, %v226_v10  ;;  %1914 = vrsqrt.f32 %v198_v18  ;;  %v228_v50 = vmul.f32 %v1903_v26, %v3181_v43 }
 0x13c   :  { %v1905_v7 = vpop.eup %1904  ;;  %v199_v44 = vadd.f32 1e-06, %v183_v60  ;;  %v200_v42 = vadd.f32 1e-06, %v184_v56 }
 0x13d   :  { %v153_v6 = vpop.xlane.xlu1 %152  ;;  %1757 = vmatprep.mubr.msk.bf16.mxu1 %vm33_vm0, %v242_v46  ;;  %v900_v58 = vpop.xlane.xlu0 %899  ;;  %v229_v49 = vmul.f32 %v1905_v7, %v2567_v14 }
 0x13e   :  { %v1907_v39 = vpop.eup %1906  ;;  %1916 = vrsqrt.f32 %v199_v44  ;;  %v185_v63 = vmul.f32 0.25, %v153_v6  ;;  %v938_v3 = vmul.f32 0.25, %v900_v58 }
 0x13f   :  { %v243_v52 = vpack.c.bf16 %v229_v49, %v228_v50  ;;  %1918 = vrsqrt.f32 %v200_v42  ;;  %v982_v26 = vmul.f32 %v1907_v39, %v2576_v2 }
 0x140   :  { %v1909_v51 = vpop.eup %1908  ;;  %v201_v18 = vadd.f32 1e-06, %v185_v63  ;;  %v954_v38 = vadd.f32 1e-06, %v938_v3  ;;  %v1408_v63 = vsel %vm275_vm1, %v2919_v59, 0 }
 0x141   :  { %v903_v10 = vpop.xlane.xlu1 %902  ;;  %1758 = vmatmul.mubr.msk.bf16.vlgmr.msra.gmra.mrb[0].mxu1 %vm33_vm0, %v243_v52  ;;  %v906_v34 = vpop.xlane.xlu0 %905  ;;  %v983_v14 = vmul.f32 %v1909_v51, %v2579_v5 }
 0x142   :  { %v1911_v60 = vpop.eup %1910  ;;  %1920 = vrsqrt.f32 %v201_v18  ;;  %v939_v56 = vmul.f32 0.25, %v903_v10  ;;  %v940_v46 = vmul.f32 0.25, %v906_v34  ;;  %1774 = vmatpush3.bf16.msra.mxu1 %v658_v47 }
 0x143   :  { %v998_v49 = vpack.c.bf16 %v983_v14, %v982_v26  ;;  %1922 = vrsqrt.f32 %v954_v38  ;;  %v984_v58 = vmul.f32 %v1911_v60, %v2588_v15 }
 0x144   :  { %v1913_v7 = vpop.eup %1912  ;;  %v955_v37 = vadd.f32 1e-06, %v939_v56  ;;  %v956_v44 = vadd.f32 1e-06, %v940_v46 }
 0x145   :  { %v909_v42 = vpop.xlane.xlu1 %908  ;;  %1793 = vmatprep.mubr.msk.bf16.mxu0 %vm33_vm0, %v998_v49  ;;  %v156_v6 = vpop.xlane.xlu0 %155  ;;  %v985_v2 = vmul.f32 %v1913_v7, %v2591_v9 }
 0x146   :  { %v1915_v43 = vpop.eup %1914  ;;  %1924 = vrsqrt.f32 %v955_v37  ;;  %v941_v5 = vmul.f32 0.25, %v909_v42  ;;  %v186_v50 = vmul.f32 0.25, %v156_v6 }
 0x147   :  { %v999_v39 = vpack.c.bf16 %v985_v2, %v984_v58  ;;  %1926 = vrsqrt.f32 %v956_v44  ;;  %v230_v15 = vmul.f32 %v1915_v43, %v2600_v0 }
 0x148   :  { %v1917_v3 = vpop.eup %1916  ;;  %v957_v52 = vadd.f32 1e-06, %v941_v5  ;;  %v202_v47 = vadd.f32 1e-06, %v186_v50 }
 0x149   :  { %v159_v51 = vpop.xlane.xlu1 %158  ;;  %1794 = vmatmul.mubr.msk.bf16.vlgmr.msra.gmra.mrb[0].mxu0 %vm33_vm0, %v999_v39  ;;  %v162_v18 = vpop.xlane.xlu0 %161  ;;  %v231_v9 = vmul.f32 %v1917_v3, %v2603_v13 }
 0x14a   :  { %v1919_v38 = vpop.eup %1918  ;;  %1928 = vrsqrt.f32 %v957_v52  ;;  %v187_v10 = vmul.f32 0.25, %v159_v51  ;;  %v188_v34 = vmul.f32 0.25, %v162_v18  ;;  %1810 = vmatpush3.bf16.msra.mxu0 %v1408_v63 }
 0x14b   :  { %v244_v26 = vpack.c.bf16 %v231_v9, %v230_v15  ;;  %1930 = vrsqrt.f32 %v202_v47  ;;  %v232_v49 = vmul.f32 %v1919_v38, %v2612_v22 }
 0x14c   :  { %v1921_v14 = vpop.eup %1920  ;;  %v203_v59 = vadd.f32 1e-06, %v187_v10  ;;  %v204_v60 = vadd.f32 1e-06, %v188_v34 }
 0x14d   :  { %v165_v56 = vpop.xlane.xlu1 %164  ;;  %1761 = vmatprep.mubr.msk.bf16.mxu1 %vm33_vm0, %v244_v26  ;;  %v912_v46 = vpop.xlane.xlu0 %911  ;;  %v233_v0 = vmul.f32 %v1921_v14, %v2615_v17 }
 0x14e   :  { %v1923_v7 = vpop.eup %1922  ;;  %1932 = vrsqrt.f32 %v203_v59  ;;  %v189_v13 = vmul.f32 0.25, %v165_v56  ;;  %v942_v37 = vmul.f32 0.25, %v912_v46 }
 0x14f   :  { %v245_v44 = vpack.c.bf16 %v233_v0, %v232_v49  ;;  %1934 = vrsqrt.f32 %v204_v60  ;;  %v986_v5 = vmul.f32 %v1923_v7, %v2624_v55 }
 0x150   :  { %v1925_v42 = vpop.eup %1924  ;;  %v205_v6 = vadd.f32 1e-06, %v189_v13  ;;  %v958_v58 = vadd.f32 1e-06, %v942_v37 }
 0x151   :  { %v915_v2 = vpop.xlane.xlu1 %914  ;;  %1762 = vmatmul.mubr.msk.bf16.gmra.mrb[4].mxu1 %vm33_vm0, %v245_v44  ;;  %v918_v43 = vpop.xlane.xlu0 %917  ;;  %v987_v50 = vmul.f32 %v1925_v42, %v2627_v21 }
 0x152   :  { %v1927_v22 = vpop.eup %1926  ;;  %1936 = vrsqrt.f32 %v205_v6  ;;  %v943_v17 = vmul.f32 0.25, %v915_v2  ;;  %v944_v39 = vmul.f32 0.25, %v918_v43 }
 0x153   :  { %v1000_v63 = vpack.c.bf16 %v987_v50, %v986_v5  ;;  %1938 = vrsqrt.f32 %v958_v58  ;;  %v988_v15 = vmul.f32 %v1927_v22, %v2636_v62 }
 0x154   :  { %v1929_v3 = vpop.eup %1928  ;;  %v959_v52 = vadd.f32 1e-06, %v943_v17  ;;  %v960_v47 = vadd.f32 1e-06, %v944_v39 }
 0x155   :  { %v921_v51 = vpop.xlane.xlu1 %920  ;;  %1797 = vmatprep.mubr.msk.bf16.mxu0 %vm33_vm0, %v1000_v63  ;;  %v168_v18 = vpop.xlane.xlu0 %167  ;;  %v989_v9 = vmul.f32 %v1929_v3, %v2639_v25  ;;  %v3182_v3 = vld [vmem:[#allocation19_spill] sm:$0xff] }
 0x156   :  { %v1931_v55 = vpop.eup %1930  ;;  %1940 = vrsqrt.f32 %v959_v52  ;;  %v945_v21 = vmul.f32 0.25, %v921_v51  ;;  %v190_v38 = vmul.f32 0.25, %v168_v18 }
 0x157   :  { %v1001_v10 = vpack.c.bf16 %v989_v9, %v988_v15  ;;  %1942 = vrsqrt.f32 %v960_v47  ;;  %v234_v56 = vmul.f32 %v1931_v55, %v2648_v31 }
 0x158   :  { %v1933_v34 = vpop.eup %1932  ;;  %v961_v26 = vadd.f32 1e-06, %v945_v21  ;;  %v206_v14 = vadd.f32 1e-06, %v190_v38 }
 0x159   :  { %v171_v59 = vpop.xlane.xlu1 %170  ;;  %1798 = vmatmul.mubr.msk.bf16.gmra.mrb[4].mxu0 %vm33_vm0, %v1001_v10  ;;  %v174_v60 = vpop.xlane.xlu0 %173  ;;  %v235_v46 = vmul.f32 %v1933_v34, %v2651_v29 }
 0x15a   :  { %v1935_v62 = vpop.eup %1934  ;;  %1944 = vrsqrt.f32 %v961_v26  ;;  %v191_v25 = vmul.f32 0.25, %v171_v59  ;;  %v192_v49 = vmul.f32 0.25, %v174_v60 }
 0x15b   :  { %v246_v0 = vpack.c.bf16 %v235_v46, %v234_v56  ;;  %1946 = vrsqrt.f32 %v206_v14  ;;  %v236_v6 = vmul.f32 %v1935_v62, %v2660_v8 }
 0x15c   :  { %v1937_v7 = vpop.eup %1936  ;;  %v207_v13 = vadd.f32 1e-06, %v191_v25  ;;  %v208_v37 = vadd.f32 1e-06, %v192_v49 }
 0x15d   :  { %v177_v44 = vpop.xlane.xlu1 %176  ;;  %1765 = vmatprep.mubr.msk.bf16.mxu1 %vm33_vm0, %v246_v0  ;;  %v924_v42 = vpop.xlane.xlu0 %923  ;;  %v237_v58 = vmul.f32 %v1937_v7, %v2663_v33 }
 0x15e   :  { %v1939_v31 = vpop.eup %1938  ;;  %1948 = vrsqrt.f32 %v207_v13  ;;  %v193_v29 = vmul.f32 0.25, %v177_v44  ;;  %v946_v2 = vmul.f32 0.25, %v924_v42 }
 0x15f   :  { %v247_v43 = vpack.c.bf16 %v237_v58, %v236_v6  ;;  %1950 = vrsqrt.f32 %v208_v37  ;;  %v990_v63 = vmul.f32 %v1939_v31, %v2672_v12 }
 0x160   :  { %v1941_v5 = vpop.eup %1940  ;;  %v209_v50 = vadd.f32 1e-06, %v193_v29  ;;  %v962_v22 = vadd.f32 1e-06, %v946_v2 }
 0x161   :  { %v927_v17 = vpop.xlane.xlu1 %926  ;;  %1766 = vmatmul.mubr.msk.bf16.gmra.mrb[8].mxu1 %vm33_vm0, %v247_v43  ;;  %v930_v39 = vpop.xlane.xlu0 %929  ;;  %v991_v52 = vmul.f32 %v1941_v5, %v3182_v3 }
 0x162   :  { %v1943_v8 = vpop.eup %1942  ;;  %1952 = vrsqrt.f32 %v209_v50  ;;  %v947_v33 = vmul.f32 0.25, %v927_v17  ;;  %v948_v47 = vmul.f32 0.25, %v930_v39 }
 0x163   :  { %v1002_v51 = vpack.c.bf16 %v991_v52, %v990_v63  ;;  %1954 = vrsqrt.f32 %v962_v22  ;;  %v992_v38 = vmul.f32 %v1943_v8, %v2687_v28 }
 0x164   :  { %v1945_v18 = vpop.eup %1944  ;;  %v963_v15 = vadd.f32 1e-06, %v947_v33  ;;  %v964_v9 = vadd.f32 1e-06, %v948_v47 }
 0x165   :  { %v933_v55 = vpop.xlane.xlu1 %932  ;;  %1801 = vmatprep.mubr.msk.bf16.mxu0 %vm33_vm0, %v1002_v51  ;;  %v513_v21 = vpop.xlane.xlu0 %512  ;;  %v993_v10 = vmul.f32 %v1945_v18, %v2690_v16 }
 0x166   :  { %v1947_v12 = vpop.eup %1946  ;;  %1956 = vrsqrt.f32 %v963_v15  ;;  %v949_v34 = vmul.f32 0.25, %v933_v55  ;;  %v559_v26 = vmul.f32 0.25, %v513_v21 }
 0x167   :  { %v1003_v14 = vpack.c.bf16 %v993_v10, %v992_v38  ;;  %1958 = vrsqrt.f32 %v964_v9  ;;  %v238_v25 = vmul.f32 %v1947_v12, %v2701_v20 }
 0x168   :  { %v1949_v59 = vpop.eup %1948  ;;  %v965_v60 = vadd.f32 1e-06, %v949_v34  ;;  %v575_v56 = vadd.f32 1e-06, %v559_v26 }
 0x169   :  { %v516_v46 = vpop.xlane.xlu1 %515  ;;  %1802 = vmatmul.mubr.msk.bf16.gmra.mrb[8].mxu0 %vm33_vm0, %v1003_v14  ;;  %v519_v62 = vpop.xlane.xlu0 %518  ;;  %v239_v49 = vmul.f32 %v1949_v59, %v2704_v32 }
 0x16a   :  { %v1951_v28 = vpop.eup %1950  ;;  %1960 = vrsqrt.f32 %v965_v60  ;;  %v560_v16 = vmul.f32 0.25, %v516_v46  ;;  %v561_v0 = vmul.f32 0.25, %v519_v62 }
 0x16b   :  { %v248_v7 = vpack.c.bf16 %v239_v49, %v238_v25  ;;  %1962 = vrsqrt.f32 %v575_v56  ;;  %v240_v58 = vmul.f32 %v1951_v28, %v2718_v24 }
 0x16c   :  { %v1953_v13 = vpop.eup %1952  ;;  %v576_v37 = vadd.f32 1e-06, %v560_v16  ;;  %v577_v44 = vadd.f32 1e-06, %v561_v0 }
 0x16d   :  { %v522_v42 = vpop.xlane.xlu1 %521  ;;  %1769 = vmatprep.mubr.msk.bf16.mxu1 %vm33_vm0, %v248_v7  ;;  %v1263_v6 = vpop.xlane.xlu0 %1262  ;;  %v241_v31 = vmul.f32 %v1953_v13, %v2721_v1 }
 0x16e   :  { %v1955_v20 = vpop.eup %1954  ;;  %1964 = vrsqrt.f32 %v576_v37  ;;  %v562_v32 = vmul.f32 0.25, %v522_v42  ;;  %v1309_v29 = vmul.f32 0.25, %v1263_v6 }
 0x16f   :  { %v249_v2 = vpack.c.bf16 %v241_v31, %v240_v58  ;;  %1966 = vrsqrt.f32 %v577_v44  ;;  %v994_v39 = vmul.f32 %v1955_v20, %v2730_v53 }
 0x170   :  { %v1957_v43 = vpop.eup %1956  ;;  %v578_v5 = vadd.f32 1e-06, %v562_v32  ;;  %v1325_v50 = vadd.f32 1e-06, %v1309_v29 }
 0x171   :  { %v1266_v22 = vpop.xlane.xlu1 %1265  ;;  %1770 = vmatmul.mubr.msk.bf16.gmra.mrb[12].mxu1 %vm33_vm0, %v249_v2  ;;  %v1269_v17 = vpop.xlane.xlu0 %1268  ;;  %v995_v63 = vmul.f32 %v1957_v43, %v2733_v23 }
 0x172   :  { %v1959_v24 = vpop.eup %1958  ;;  %1968 = vrsqrt.f32 %v578_v5  ;;  %v1310_v1 = vmul.f32 0.25, %v1266_v22  ;;  %v1311_v3 = vmul.f32 0.25, %v1269_v17 }
 0x173   :  { %v1004_v52 = vpack.c.bf16 %v995_v63, %v994_v39  ;;  %1970 = vrsqrt.f32 %v1325_v50  ;;  %v996_v15 = vmul.f32 %v1959_v24, %v2742_v45 }
 0x174   :  { %v1961_v8 = vpop.eup %1960  ;;  %v1326_v33 = vadd.f32 1e-06, %v1310_v1  ;;  %v1327_v47 = vadd.f32 1e-06, %v1311_v3 }
 0x175   :  { %v1272_v51 = vpop.xlane.xlu1 %1271  ;;  %1805 = vmatprep.mubr.msk.bf16.mxu0 %vm33_vm0, %v1004_v52  ;;  %v525_v18 = vpop.xlane.xlu0 %524  ;;  %v997_v9 = vmul.f32 %v1961_v8, %v2745_v57 }
 0x176   :  { %v1963_v53 = vpop.eup %1962  ;;  %1972 = vrsqrt.f32 %v1326_v33  ;;  %v1312_v23 = vmul.f32 0.25, %v1272_v51  ;;  %v563_v55 = vmul.f32 0.25, %v525_v18 }
 0x177   :  { %v1005_v21 = vpack.c.bf16 %v997_v9, %v996_v15  ;;  %1974 = vrsqrt.f32 %v1327_v47  ;;  %v607_v14 = vmul.f32 %v1963_v53, %v2754_v36 }
 0x178   :  { %v1965_v38 = vpop.eup %1964  ;;  %v1328_v10 = vadd.f32 1e-06, %v1312_v23  ;;  %v579_v12 = vadd.f32 1e-06, %v563_v55 }
 0x179   :  { %v528_v34 = vpop.xlane.xlu1 %527  ;;  %1806 = vmatmul.mubr.msk.bf16.gmra.mrb[12].mxu0 %vm33_vm0, %v1005_v21  ;;  %v531_v26 = vpop.xlane.xlu0 %530  ;;  %v608_v59 = vmul.f32 %v1965_v38, %v2757_v61 }
 0x17a   :  { %v1967_v45 = vpop.eup %1966  ;;  %1976 = vrsqrt.f32 %v1328_v10  ;;  %v564_v57 = vmul.f32 0.25, %v528_v34  ;;  %v565_v60 = vmul.f32 0.25, %v531_v26 }
 0x17b   :  { %v623_v56 = vpack.c.bf16 %v608_v59, %v607_v14  ;;  %1978 = vrsqrt.f32 %v579_v12  ;;  %v609_v49 = vmul.f32 %v1967_v45, %v2766_v40 }
 0x17c   :  { %v1969_v46 = vpop.eup %1968  ;;  %v580_v62 = vadd.f32 1e-06, %v564_v57  ;;  %v581_v25 = vadd.f32 1e-06, %v565_v60  ;;  %v3183_v60 = vld [vmem:[#allocation20_spill] sm:$0xff] }
 0x17d   :  { %v610_v28 = vmul.f32 %v1969_v46, %v2769_v4  ;;  %v534_v16 = vpop.xlane.xlu1 %533  ;;  %1775 = vmatprep.mubr.msk.bf16.mxu1 %vm33_vm0, %v623_v56  ;;  %v1275_v0 = vpop.xlane.xlu0 %1274  ;;  %v3184_v46 = vld [vmem:[#allocation21_spill] sm:$0xff] }
 0x17e   :  { %v1971_v36 = vpop.eup %1970  ;;  %1980 = vrsqrt.f32 %v580_v62  ;;  %v566_v61 = vmul.f32 0.25, %v534_v16  ;;  %v1313_v7 = vmul.f32 0.25, %v1275_v0 }
 0x17f   :  { %v624_v13 = vpack.c.bf16 %v610_v28, %v609_v49  ;;  %1982 = vrsqrt.f32 %v581_v25  ;;  %v1357_v40 = vmul.f32 %v1971_v36, %v2778_v54 }
 0x180   :  { %v1973_v37 = vpop.eup %1972  ;;  %v582_v44 = vadd.f32 1e-06, %v566_v61  ;;  %v1329_v42 = vadd.f32 1e-06, %v1313_v7  ;;  %v3185_v7 = vld [vmem:[#allocation22_spill] sm:$0xff] }
 0x181   :  { %v1278_v6 = vpop.xlane.xlu1 %1277  ;;  %1776 = vmatmul.mubr.msk.bf16.vlgmr.msra.gmra.mrb[0].mxu1 %vm33_vm0, %v624_v13  ;;  %v1281_v58 = vpop.xlane.xlu0 %1280  ;;  %v1358_v4 = vmul.f32 %v1973_v37, %v2781_v11  ;;  %v3186_v37 = vld [vmem:[#allocation23_spill] sm:$0xff] }
 0x182   :  { %v1975_v31 = vpop.eup %1974  ;;  %1984 = vrsqrt.f32 %v582_v44  ;;  %v1314_v20 = vmul.f32 0.25, %v1278_v6  ;;  %v1315_v32 = vmul.f32 0.25, %v1281_v58 }
 0x183   :  { %v1373_v29 = vpack.c.bf16 %v1358_v4, %v1357_v40  ;;  %1986 = vrsqrt.f32 %v1329_v42  ;;  %v1359_v50 = vmul.f32 %v1975_v31, %v2790_v41 }
 0x184   :  { %v1977_v2 = vpop.eup %1976  ;;  %v1330_v43 = vadd.f32 1e-06, %v1314_v20  ;;  %v1331_v5 = vadd.f32 1e-06, %v1315_v32 }
 0x185   :  { %v1360_v22 = vmul.f32 %v1977_v2, %v2793_v19  ;;  %v1284_v17 = vpop.xlane.xlu1 %1283  ;;  %1811 = vmatprep.mubr.msk.bf16.mxu0 %vm33_vm0, %v1373_v29  ;;  %v537_v39 = vpop.xlane.xlu0 %536  ;;  %v3187_v2 = vld [vmem:[#allocation24_spill] sm:$0xff] }
 0x186   :  { %v1979_v54 = vpop.eup %1978  ;;  %1988 = vrsqrt.f32 %v1330_v43  ;;  %v1316_v11 = vmul.f32 0.25, %v1284_v17  ;;  %v567_v63 = vmul.f32 0.25, %v537_v39 }
 0x187   :  { %v1374_v24 = vpack.c.bf16 %v1360_v22, %v1359_v50  ;;  %1990 = vrsqrt.f32 %v1331_v5  ;;  %v611_v41 = vmul.f32 %v1979_v54, %v2802_v30  ;;  %v3188_v5 = vld [vmem:[#allocation25_spill] sm:$0xff] }
 0x188   :  { %v1981_v1 = vpop.eup %1980  ;;  %v1332_v3 = vadd.f32 1e-06, %v1316_v11  ;;  %v583_v52 = vadd.f32 1e-06, %v567_v63 }
 0x189   :  { %v540_v8 = vpop.xlane.xlu1 %539  ;;  %1812 = vmatmul.mubr.msk.bf16.vlgmr.msra.gmra.mrb[0].mxu0 %vm33_vm0, %v1374_v24  ;;  %v543_v33 = vpop.xlane.xlu0 %542  ;;  %v612_v19 = vmul.f32 %v1981_v1, %v2805_v27 }
 0x18a   :  { %v1983_v47 = vpop.eup %1982  ;;  %1992 = vrsqrt.f32 %v1332_v3  ;;  %v568_v51 = vmul.f32 0.25, %v540_v8  ;;  %v569_v18 = vmul.f32 0.25, %v543_v33  ;;  %v3190_v33 = vld [vmem:[#allocation6_spill] sm:$0xff] }
 0x18b   :  { %v625_v15 = vpack.c.bf16 %v612_v19, %v611_v41  ;;  %1994 = vrsqrt.f32 %v583_v52  ;;  %v613_v38 = vmul.f32 %v1983_v47, %v2814_v48  ;;  %v3189_v52 = vld [vmem:[#allocation5_spill] sm:$0xff] }
 0x18c   :  { %v1985_v9 = vpop.eup %1984  ;;  %v584_v53 = vadd.f32 1e-06, %v568_v51  ;;  %v585_v23 = vadd.f32 1e-06, %v569_v18 }
 0x18d   :  { %v546_v55 = vpop.xlane.xlu1 %545  ;;  %1779 = vmatprep.mubr.msk.bf16.mxu1 %vm33_vm0, %v625_v15  ;;  %v1287_v21 = vpop.xlane.xlu0 %1286  ;;  %v614_v10 = vmul.f32 %v1985_v9, %v2817_v35 }
 0x18e   :  { %v1987_v30 = vpop.eup %1986  ;;  %1996 = vrsqrt.f32 %v584_v53  ;;  %v570_v27 = vmul.f32 0.25, %v546_v55  ;;  %v1317_v12 = vmul.f32 0.25, %v1287_v21  ;;  %v3191_v21 = vld [vmem:[#allocation7_spill] sm:$0xff] }
 0x18f   :  { %v626_v34 = vpack.c.bf16 %v614_v10, %v613_v38  ;;  %1998 = vrsqrt.f32 %v585_v23  ;;  %v1361_v56 = vmul.f32 %v1987_v30, %v3183_v60  ;;  %v3192_v10 = vld [vmem:[#allocation8_spill] sm:$0xff]  ;;  %v3193_v60 = vld [vmem:[#allocation9_spill] sm:$0xff] }
 0x190   :  { %v1989_v26 = vpop.eup %1988  ;;  %v586_v14 = vadd.f32 1e-06, %v570_v27  ;;  %v1333_v59 = vadd.f32 1e-06, %v1317_v12 }
 0x191   :  { %v1290_v45 = vpop.xlane.xlu1 %1289  ;;  %1780 = vmatmul.mubr.msk.bf16.gmra.mrb[4].mxu1 %vm33_vm0, %v626_v34  ;;  %v1293_v57 = vpop.xlane.xlu0 %1292  ;;  %v1362_v62 = vmul.f32 %v1989_v26, %v3184_v46  ;;  %v3194_v46 = vld [vmem:[#allocation10_spill] sm:$0xff] }
 0x192   :  { %v1991_v48 = vpop.eup %1990  ;;  %2000 = vrsqrt.f32 %v586_v14  ;;  %v1318_v35 = vmul.f32 0.25, %v1290_v45  ;;  %v1319_v25 = vmul.f32 0.25, %v1293_v57 }
 0x193   :  { %v1375_v49 = vpack.c.bf16 %v1362_v62, %v1361_v56  ;;  %2002 = vrsqrt.f32 %v1333_v59  ;;  %v1363_v13 = vmul.f32 %v1991_v48, %v3185_v7 }
 0x194   :  { %v1993_v28 = vpop.eup %1992  ;;  %v1334_v16 = vadd.f32 1e-06, %v1318_v35  ;;  %v1335_v0 = vadd.f32 1e-06, %v1319_v25 }
 0x195   :  { %v1296_v36 = vpop.xlane.xlu1 %1295  ;;  %1815 = vmatprep.mubr.msk.bf16.mxu0 %vm33_vm0, %v1375_v49  ;;  %v549_v61 = vpop.xlane.xlu0 %548  ;;  %v1364_v44 = vmul.f32 %v1993_v28, %v3186_v37 }
 0x196   :  { %v1995_v42 = vpop.eup %1994  ;;  %2004 = vrsqrt.f32 %v1334_v16  ;;  %v1320_v6 = vmul.f32 0.25, %v1296_v36  ;;  %v571_v58 = vmul.f32 0.25, %v549_v61  ;;  %v3195_v16 = vld [vmem:[#allocation11_spill] sm:$0xff]  ;;  %v3196_v36 = vld [vmem:[#allocation12_spill] sm:$0xff] }
 0x197   :  { %v1376_v40 = vpack.c.bf16 %v1364_v44, %v1363_v13  ;;  %2006 = vrsqrt.f32 %v1335_v0  ;;  %v615_v43 = vmul.f32 %v1995_v42, %v3187_v2  ;;  %v3197_v44 = vld [vmem:[#allocation13_spill] sm:$0xff] }
 0x198   :  { %v1997_v4 = vpop.eup %1996  ;;  %v1336_v31 = vadd.f32 1e-06, %v1320_v6  ;;  %v587_v20 = vadd.f32 1e-06, %v571_v58  ;;  %v3198_v6 = vld [vmem:[#allocation14_spill] sm:$0xff] }
 0x199   :  { %v552_v32 = vpop.xlane.xlu1 %551  ;;  %1816 = vmatmul.mubr.msk.bf16.gmra.mrb[4].mxu0 %vm33_vm0, %v1376_v40  ;;  %v555_v29 = vpop.xlane.xlu0 %554  ;;  %v616_v50 = vmul.f32 %v1997_v4, %v3188_v5 }
 0x19a   :  { %v1999_v22 = vpop.eup %1998  ;;  %2008 = vrsqrt.f32 %v1336_v31  ;;  %v572_v17 = vmul.f32 0.25, %v552_v32  ;;  %v573_v39 = vmul.f32 0.25, %v555_v29  ;;  %v3200_v29 = vld [vmem:[#allocation16_spill] sm:$0xff] }
 0x19b   :  { %v627_v54 = vpack.c.bf16 %v616_v50, %v615_v43  ;;  %2010 = vrsqrt.f32 %v587_v20  ;;  %v617_v8 = vmul.f32 %v1999_v22, %v3189_v52  ;;  %v3199_v20 = vld [vmem:[#allocation15_spill] sm:$0xff]  ;;  %v3201_v22 = vld [vmem:[#allocation17_spill] sm:$0xff] }
 0x19c   :  { %v2001_v11 = vpop.eup %2000  ;;  %v588_v63 = vadd.f32 1e-06, %v572_v17  ;;  %v589_v24 = vadd.f32 1e-06, %v573_v39  ;;  %v3202_v39 = vld [vmem:[#allocation26_spill] sm:$0xff] }
 0x19d   :  { %v558_v1 = vpop.xlane.xlu1 %557  ;;  %1783 = vmatprep.mubr.msk.bf16.mxu1 %vm33_vm0, %v627_v54  ;;  %v1299_v3 = vpop.xlane.xlu0 %1298  ;;  %v618_v41 = vmul.f32 %v2001_v11, %v3190_v33  ;;  %v3064_v52 = vld [vmem:[%s3096_s2] ss:$0 sm:$0xff]  ;;  %s2082_s2 = smov [#allocation2]  }
 0x19e   :  { %v2003_v19 = vpop.eup %2002  ;;  %2012 = vrsqrt.f32 %v588_v63  ;;  %v574_v47 = vmul.f32 0.25, %v558_v1  ;;  %v1321_v51 = vmul.f32 0.25, %v1299_v3  ;;  %s1624_s13 = sshll.u32 %s2082_s2, 4  ;;  %s1625_s13 = int_to_ptr.vmem [resolvable:$true] %s1624_s13 }
 0x19f   :  { %v628_v18 = vpack.c.bf16 %v618_v41, %v617_v8  ;;  %2014 = vrsqrt.f32 %v589_v24  ;;  %v1365_v38 = vmul.f32 %v2003_v19, %v3191_v21  ;;  %s2058_s14 = scalar_lea.vmem %s1625_s13, 2048  ;;  %p2063_p1 = scmp.lt.s32.totalorder %s1625_s13, %s1625_s13 }
 0x1a0   :  { %v2005_v15 = vpop.eup %2004  ;;  %v590_v9 = vadd.f32 1e-06, %v574_v47  ;;  %v1337_v53 = vadd.f32 1e-06, %v1321_v51  ;;  %p2059_p0 = scmp.ne.s32.totalorder %s1625_s13, %s2058_s14  ;;  %p2064_p2 = scmp.lt.s32.totalorder %s2058_s14, %s2058_s14 }
 0x1a1   :  { %v1302_v23 = vpop.xlane.xlu1 %1301  ;;  %1784 = vmatmul.mubr.msk.bf16.gmra.mrb[8].mxu1 %vm33_vm0, %v628_v18  ;;  %v1305_v55 = vpop.xlane.xlu0 %1304  ;;  %v1366_v30 = vmul.f32 %v2005_v15, %v3192_v10 }
 0x1a2   :  { %v2007_v27 = vpop.eup %2006  ;;  %2016 = vrsqrt.f32 %v590_v9  ;;  %v1322_v12 = vmul.f32 0.25, %v1302_v23  ;;  %v1323_v34 = vmul.f32 0.25, %v1305_v55  ;;  %p2065_p3 = por %p2064_p2, %p2063_p1 }
 0x1a3   :  { %v1377_v26 = vpack.c.bf16 %v1366_v30, %v1365_v38  ;;  %2018 = vrsqrt.f32 %v1337_v53  ;;  %v1367_v56 = vmul.f32 %v2007_v27, %v3193_v60 }
 0x1a4   :  { %v2009_v14 = vpop.eup %2008  ;;  %v1338_v59 = vadd.f32 1e-06, %v1322_v12  ;;  %v1339_v45 = vadd.f32 1e-06, %v1323_v34  ;;  %p2066_p4 = pnand %p2065_p3, %p2059_p0 }
 0x1a5   :  { %v1308_v57 = vpop.xlane.xlu1 %1307  ;;  %1819 = vmatprep.mubr.msk.bf16.mxu0 %vm33_vm0, %v1377_v26  ;;  %v1368_v62 = vmul.f32 %v2009_v14, %v3194_v46  ;;  %v2011_v48 = vpop.eup %2010 }
 0x1a6   :  { %2020 = vrsqrt.f32 %v1338_v59  ;;  %v1324_v35 = vmul.f32 0.25, %v1308_v57  ;;  %v619_v0 = vmul.f32 %v2011_v48, %v3195_v16 }
 0x1a7   :  { %v1378_v25 = vpack.c.bf16 %v1368_v62, %v1367_v56  ;;  %2022 = vrsqrt.f32 %v1339_v45 }
 0x1a8   :  { %v2013_v49 = vpop.eup %2012  ;;  %v1340_v28 = vadd.f32 1e-06, %v1324_v35 }
 0x1a9   :  { %1820 = vmatmul.mubr.msk.bf16.gmra.mrb[8].mxu0 %vm33_vm0, %v1378_v25  ;;  %v620_v61 = vmul.f32 %v2013_v49, %v3196_v36  ;;  %v2015_v7 = vpop.eup %2014 }
 0x1aa   :  { %2024 = vrsqrt.f32 %v1340_v28  ;;  %v621_v42 = vmul.f32 %v2015_v7, %v3197_v44 }
 0x1ab   :  { %v629_v13 = vpack.c.bf16 %v620_v61, %v619_v0 }
 0x1ac   :  { %v2017_v37 = vpop.eup %2016 }
 0x1ad   :  { %1787 = vmatprep.mubr.msk.bf16.mxu1 %vm33_vm0, %v629_v13  ;;  %v622_v58 = vmul.f32 %v2017_v37, %v3198_v6  ;;  %v2019_v40 = vpop.eup %2018 }
 0x1ae   :  { %v1369_v32 = vmul.f32 %v2019_v40, %v3199_v20 }
 0x1af   :  { %v630_v4 = vpack.c.bf16 %v622_v58, %v621_v42 }
 0x1b0   :  { %v2021_v31 = vpop.eup %2020 }
 0x1b1   :  { %1788 = vmatmul.mubr.msk.bf16.gmra.mrb[12].mxu1 %vm33_vm0, %v630_v4  ;;  %v1370_v2 = vmul.f32 %v2021_v31, %v3200_v29  ;;  %v2023_v43 = vpop.eup %2022 }
 0x1b2   :  { %v1371_v17 = vmul.f32 %v2023_v43, %v3201_v22 }
 0x1b3   :  { %v1379_v5 = vpack.c.bf16 %v1370_v2, %v1369_v32 }
 0x1b4   :  { %v2025_v50 = vpop.eup %2024 }
 0x1b5   :  { %1823 = vmatprep.mubr.msk.bf16.mxu0 %vm33_vm0, %v1379_v5  ;;  %v1372_v54 = vmul.f32 %v2025_v50, %v3202_v39 }
 0x1b7   :  { %v1380_v11 = vpack.c.bf16 %v1372_v54, %v1371_v17 }
 0x1b9   :  { %1824 = vmatmul.mubr.msk.bf16.gmra.mrb[12].mxu0 %vm33_vm0, %v1380_v11 }
 0x254   :  { %v1777_v63 = vpop.f32.mrb[0].mxu1 }
 0x255   :  { %v694_v24 = vpop.f32.mrb[1].mxu1  ;;  %v1827_v8 = vadd.f32 %v1777_v63, %v3064_v52 }
 0x256   :  { %v1778_v1 = vpop.f32.mrb[2].mxu1  ;;  %v1829_v33 = vadd.f32 %v3064_v52, %v694_v24 }
 0x257   :  { %v697_v3 = vpop.f32.mrb[3].mxu1  ;;  %v1831_v19 = vadd.f32 %v1778_v1, %v3064_v52 }
 0x258   :  { %v1833_v18 = vadd.f32 %v3064_v52, %v697_v3 }
 0x25c   :  { %v1813_v41 = vpop.f32.mrb[0].mxu0 }
 0x25d   :  { %v1828_v47 = vadd.f32 %v1827_v8, %v1813_v41  ;;  %v1444_v51 = vpop.f32.mrb[1].mxu0 }
 0x25e   :  { %v1830_v15 = vadd.f32 %v1829_v33, %v1444_v51  ;;  %v1814_v9 = vpop.f32.mrb[2].mxu0 }
 0x25f   :  { %v1541_v53 = vmul.f32 0.70710677, %v1828_v47  ;;  %v1832_v23 = vadd.f32 %v1831_v19, %v1814_v9  ;;  %v1447_v55 = vpop.f32.mrb[3].mxu0  ;;  %v1525_v57 = vmul.f32 0.5, %v1828_v47 }
 0x260   :  { %v1539_v21 = vmul.f32 0.70710677, %v1830_v15  ;;  %v1834_v38 = vadd.f32 %v1833_v18, %v1447_v55  ;;  %v1523_v56 = vmul.f32 0.5, %v1830_v15 }
 0x261   :  { %2026 = verf.f32 %v1541_v53  ;;  %v1542_v10 = vmul.f32 0.70710677, %v1832_v23  ;;  %v1526_v25 = vmul.f32 0.5, %v1832_v23 }
 0x262   :  { %2028 = verf.f32 %v1539_v21  ;;  %v1540_v30 = vmul.f32 0.70710677, %v1834_v38  ;;  %v1524_v49 = vmul.f32 0.5, %v1834_v38 }
 0x263   :  { %2030 = verf.f32 %v1542_v10 }
 0x264   :  { %2032 = verf.f32 %v1540_v30  ;;  %v1781_v27 = vpop.f32.mrb[4].mxu1 }
 0x265   :  { %v710_v12 = vpop.f32.mrb[5].mxu1  ;;  %v1835_v59 = vadd.f32 %v1781_v27, %v3064_v52 }
 0x266   :  { %v1782_v34 = vpop.f32.mrb[6].mxu1  ;;  %v1837_v46 = vadd.f32 %v3064_v52, %v710_v12 }
 0x267   :  { %v713_v26 = vpop.f32.mrb[7].mxu1  ;;  %v1839_v7 = vadd.f32 %v1782_v34, %v3064_v52 }
 0x268   :  { %v1841_v6 = vadd.f32 %v3064_v52, %v713_v26 }
 0x26b   :  { %v2027_v14 = vpop.eup %2026 }
 0x26c   :  { %v2029_v45 = vpop.eup %2028  ;;  %v1573_v60 = vadd.f32 1.0, %v2027_v14  ;;  %v1817_v62 = vpop.f32.mrb[4].mxu0 }
 0x26d   :  { %v2031_v48 = vpop.eup %2030  ;;  %v1571_v35 = vadd.f32 1.0, %v2029_v45  ;;  %v1836_v28 = vadd.f32 %v1835_v59, %v1817_v62  ;;  %v1460_v16 = vpop.f32.mrb[5].mxu0 }
 0x26e   :  { %v2033_v0 = vpop.eup %2032  ;;  %v1589_v36 = vmul.f32 %v1573_v60, %v1525_v57  ;;  %v1574_v61 = vadd.f32 1.0, %v2031_v48  ;;  %v1838_v13 = vadd.f32 %v1837_v46, %v1460_v16  ;;  %v1818_v37 = vpop.f32.mrb[6].mxu0 }
 0x26f   :  { %v1587_v44 = vmul.f32 %v1571_v35, %v1523_v56  ;;  %v1572_v42 = vadd.f32 1.0, %v2033_v0  ;;  %v1545_v58 = vmul.f32 0.70710677, %v1836_v28  ;;  %v1463_v40 = vpop.f32.mrb[7].mxu0  ;;  %v1840_v20 = vadd.f32 %v1839_v7, %v1818_v37 }
 0x270   :  { %1605 = vst [vmem:[#allocation2 + $0x10] sm:$0xff] %v1589_v36  ;;  %v1590_v4 = vmul.f32 %v1574_v61, %v1526_v25  ;;  %v1543_v31 = vmul.f32 0.70710677, %v1838_v13  ;;  %v1842_v29 = vadd.f32 %v1841_v6, %v1463_v40  ;;  %v1529_v63 = vmul.f32 0.5, %v1836_v28 }
 0x271   :  { %1603 = vst [vmem:[#allocation2] sm:$0xff] %v1587_v44  ;;  %v1588_v32 = vmul.f32 %v1572_v42, %v1524_v49  ;;  %2034 = verf.f32 %v1545_v58  ;;  %v1546_v2 = vmul.f32 0.70710677, %v1840_v20  ;;  %v1527_v8 = vmul.f32 0.5, %v1838_v13 }
 0x272   :  { %1606 = vst [vmem:[#allocation2 + $0x18] sm:$0xff] %v1590_v4  ;;  %2036 = verf.f32 %v1543_v31  ;;  %v1544_v43 = vmul.f32 0.70710677, %v1842_v29  ;;  %v1530_v18 = vmul.f32 0.5, %v1840_v20  ;;  %v1528_v27 = vmul.f32 0.5, %v1842_v29 }
 0x273   :  { %1604 = vst [vmem:[#allocation2 + $0x8] sm:$0xff] %v1588_v32  ;;  %2038 = verf.f32 %v1546_v2 }
 0x274   :  { %v1785_v5 = vpop.f32.mrb[8].mxu1  ;;  %2040 = verf.f32 %v1544_v43 }
 0x275   :  { %v726_v50 = vpop.f32.mrb[9].mxu1  ;;  %v1843_v54 = vadd.f32 %v1785_v5, %v3064_v52 }
 0x276   :  { %v1786_v22 = vpop.f32.mrb[10].mxu1  ;;  %v1845_v1 = vadd.f32 %v3064_v52, %v726_v50 }
 0x277   :  { %v729_v17 = vpop.f32.mrb[11].mxu1  ;;  %v1847_v15 = vadd.f32 %v1786_v22, %v3064_v52 }
 0x278   :  { %v1849_v38 = vadd.f32 %v3064_v52, %v729_v17 }
 0x27b   :  { %v2035_v39 = vpop.eup %2034 }
 0x27c   :  { %v2037_v11 = vpop.eup %2036  ;;  %v1577_v24 = vadd.f32 1.0, %v2035_v39  ;;  %v1821_v3 = vpop.f32.mrb[8].mxu0 }
 0x27d   :  { %v1575_v33 = vadd.f32 1.0, %v2037_v11  ;;  %v1844_v41 = vadd.f32 %v1843_v54, %v1821_v3  ;;  %v1476_v19 = vpop.f32.mrb[9].mxu0  ;;  %v2039_v47 = vpop.eup %2038 }
 0x27e   :  { %v1593_v51 = vmul.f32 %v1577_v24, %v1529_v63  ;;  %v1846_v9 = vadd.f32 %v1845_v1, %v1476_v19  ;;  %v1822_v53 = vpop.f32.mrb[10].mxu0  ;;  %v2041_v23 = vpop.eup %2040  ;;  %v1578_v21 = vadd.f32 1.0, %v2039_v47 }
 0x27f   :  { %v1591_v55 = vmul.f32 %v1575_v33, %v1527_v8  ;;  %v1549_v10 = vmul.f32 0.70710677, %v1844_v41  ;;  %v1479_v30 = vpop.f32.mrb[11].mxu0  ;;  %v1576_v12 = vadd.f32 1.0, %v2041_v23  ;;  %v1848_v26 = vadd.f32 %v1847_v15, %v1822_v53 }
 0x280   :  { %1609 = vst [vmem:[#allocation2 + $0x30] sm:$0xff] %v1593_v51  ;;  %v1547_v34 = vmul.f32 0.70710677, %v1846_v9  ;;  %v1594_v14 = vmul.f32 %v1578_v21, %v1530_v18  ;;  %v1850_v59 = vadd.f32 %v1849_v38, %v1479_v30  ;;  %v1533_v28 = vmul.f32 0.5, %v1844_v41 }
 0x281   :  { %1607 = vst [vmem:[#allocation2 + $0x20] sm:$0xff] %v1591_v55  ;;  %2042 = verf.f32 %v1549_v10  ;;  %v1592_v45 = vmul.f32 %v1576_v12, %v1528_v27  ;;  %v1550_v57 = vmul.f32 0.70710677, %v1848_v26  ;;  %v1531_v61 = vmul.f32 0.5, %v1846_v9 }
 0x282   :  { %2044 = verf.f32 %v1547_v34  ;;  %1610 = vst [vmem:[#allocation2 + $0x38] sm:$0xff] %v1594_v14  ;;  %v1548_v60 = vmul.f32 0.70710677, %v1850_v59  ;;  %v1534_v6 = vmul.f32 0.5, %v1848_v26  ;;  %v1532_v5 = vmul.f32 0.5, %v1850_v59 }
 0x283   :  { %1608 = vst [vmem:[#allocation2 + $0x28] sm:$0xff] %v1592_v45  ;;  %2046 = verf.f32 %v1550_v57 }
 0x284   :  { %v1789_v56 = vpop.f32.mrb[12].mxu1  ;;  %2048 = verf.f32 %v1548_v60 }
 0x285   :  { %v742_v46 = vpop.f32.mrb[13].mxu1  ;;  %v1851_v25 = vadd.f32 %v1789_v56, %v3064_v52 }
 0x286   :  { %v1790_v62 = vpop.f32.mrb[14].mxu1  ;;  %v1853_v0 = vadd.f32 %v3064_v52, %v742_v46 }
 0x287   :  { %v745_v48 = vpop.f32.mrb[15].mxu1  ;;  %v1855_v58 = vadd.f32 %v1790_v62, %v3064_v52 }
 0x288   :  { %v1857_v29 = vadd.f32 %v3064_v52, %v745_v48 }
 0x28b   :  { %v2043_v35 = vpop.eup %2042 }
 0x28c   :  { %v2045_v49 = vpop.eup %2044  ;;  %v1581_v16 = vadd.f32 1.0, %v2043_v35  ;;  %v1825_v36 = vpop.f32.mrb[12].mxu0 }
 0x28d   :  { %v1579_v7 = vadd.f32 1.0, %v2045_v49  ;;  %v1852_v13 = vadd.f32 %v1851_v25, %v1825_v36  ;;  %v1492_v37 = vpop.f32.mrb[13].mxu0  ;;  %v2047_v44 = vpop.eup %2046 }
 0x28e   :  { %v1597_v42 = vmul.f32 %v1581_v16, %v1533_v28  ;;  %v1854_v40 = vadd.f32 %v1853_v0, %v1492_v37  ;;  %v1826_v4 = vpop.f32.mrb[14].mxu0  ;;  %v2049_v31 = vpop.eup %2048  ;;  %v1582_v32 = vadd.f32 1.0, %v2047_v44 }
 0x28f   :  { %v1595_v20 = vmul.f32 %v1579_v7, %v1531_v61  ;;  %v1553_v2 = vmul.f32 0.70710677, %v1852_v13  ;;  %v1495_v43 = vpop.f32.mrb[15].mxu0  ;;  %v1580_v50 = vadd.f32 1.0, %v2049_v31  ;;  %v1856_v17 = vadd.f32 %v1855_v58, %v1826_v4 }
 0x290   :  { %1613 = vst [vmem:[#allocation2 + $0x50] sm:$0xff] %v1597_v42  ;;  %v1551_v22 = vmul.f32 0.70710677, %v1854_v40  ;;  %v1598_v39 = vmul.f32 %v1582_v32, %v1534_v6  ;;  %v1858_v54 = vadd.f32 %v1857_v29, %v1495_v43  ;;  %v1537_v3 = vmul.f32 0.5, %v1852_v13 }
 0x291   :  { %1611 = vst [vmem:[#allocation2 + $0x40] sm:$0xff] %v1595_v20  ;;  %2050 = verf.f32 %v1553_v2  ;;  %v1596_v11 = vmul.f32 %v1580_v50, %v1532_v5  ;;  %v1554_v63 = vmul.f32 0.70710677, %v1856_v17  ;;  %v1535_v33 = vmul.f32 0.5, %v1854_v40 }
 0x292   :  { %2052 = verf.f32 %v1551_v22  ;;  %1614 = vst [vmem:[#allocation2 + $0x58] sm:$0xff] %v1598_v39  ;;  %v1552_v24 = vmul.f32 0.70710677, %v1858_v54  ;;  %v1538_v15 = vmul.f32 0.5, %v1856_v17  ;;  %v1536_v53 = vmul.f32 0.5, %v1858_v54 }
 0x293   :  { %1612 = vst [vmem:[#allocation2 + $0x48] sm:$0xff] %v1596_v11  ;;  %2054 = verf.f32 %v1554_v63 }
 0x294   :  { %2056 = verf.f32 %v1552_v24 }
 0x29b   :  { %v2051_v52 = vpop.eup %2050 }
 0x29c   :  { %v2053_v1 = vpop.eup %2052  ;;  %v1585_v8 = vadd.f32 1.0, %v2051_v52 }
 0x29d   :  { %v1583_v41 = vadd.f32 1.0, %v2053_v1  ;;  %v2055_v19 = vpop.eup %2054 }
 0x29e   :  { %v1601_v47 = vmul.f32 %v1585_v8, %v1537_v3  ;;  %v2057_v51 = vpop.eup %2056  ;;  %v1586_v9 = vadd.f32 1.0, %v2055_v19 }
 0x29f   :  { %v1599_v18 = vmul.f32 %v1583_v41, %v1535_v33  ;;  %v1584_v23 = vadd.f32 1.0, %v2057_v51 }
 0x2a0   :  { %1617 = vst [vmem:[#allocation2 + $0x70] sm:$0xff] %v1601_v47  ;;  %v1602_v55 = vmul.f32 %v1586_v9, %v1538_v15 }
 0x2a1   :  { %1615 = vst [vmem:[#allocation2 + $0x60] sm:$0xff] %v1599_v18  ;;  %v1600_v21 = vmul.f32 %v1584_v23, %v1536_v53 }
 0x2a2   :  { %1618 = vst [vmem:[#allocation2 + $0x78] sm:$0xff] %v1602_v55 }
 0x2a3   :  { %1616 = vst [vmem:[#allocation2 + $0x68] sm:$0xff] %v1600_v21 }
 0x2a4   :  { %2069 = shalt.err (!%p2066_p4)
}
 0x2a5   :  { %s2070_s17 = scalar_lea.hbm %s3097_s3, 2048 }
 0x2a6   :  { %p2071_p5 = scmp.ne.s32.totalorder %s3097_s3, %s2070_s17  ;;  %p2074_p6 = scmp.lt.u32.totalorder %s2070_s17, %s3097_s3 }
 0x2a8   :  { %p2076_p7 = pnand %p2074_p6, %p2071_p5 }
 0x2aa   :  { %2079 = shalt.err (!%p2076_p7)
}
 0x2ab   :  { %s2083_s22 = smov 128   ;;  %s2084_s23 = smov 8  }
 0x2ac   :  { %1630 = dma.vmem_to_hbm [thread:$0]  %s1625_s13, 2048, %s3097_s3, [#allocation3], %s2083_s22, %s2083_s22, %s2084_s23  }
 0x2ad   :  { %2080 = dma.done.wait [#allocation3], 2048  }
 0x2ae   :  { %2081 = vsyncadd [#allocation3], 4294965248 }
 0x2af   :  { %1634 = vsyncpa [#allocation3], 1 }

</bundles_post_ra>
